<compile_context>
chip_gen: v7x
topology: tpu7x:2x2x1
jax: 0.10.0
libtpu: 0.0.40
codegen_flags: <defaults>
</compile_context>

<pallas_src>
import numpy as np
import jax
import jax.numpy as jnp
from jax import lax
from jax.experimental import pallas as pl
from jax.experimental.pallas import tpu as pltpu

# ---- constants fixed by the PyTorch module -----------------------------------
WAVELENGTH = 1.55e-6      # wavelength of light [m]
PIXEL_LENGTH = 8e-7       # pixel pitch from create_square_grid_pattern [m]
LAYER_DISTANCE = 1e-5     # z_next - z_coordinate == 10 um for every layer
NEURON_SIZE = 120         # n_size fixed in __init__
NPAD = 128                # lane-aligned padded plane size
N_LAYERS = 5              # five BinaryAmplitudeDiffractiveLayer's
B_TILE = 2                # images processed per grid step

# MXU operand dtype: bf16 operands + f32 accumulation (review item).  Set to
# jnp.float32 if bit-closer parity with the torch reference is required.
MXU_DTYPE = jnp.bfloat16


# ==============================================================================
# Kernel A: 2N block-complex form (256x256 MXUs: v6e / v7x)
# ==============================================================================
def _donn_kernel_block256(x_ref, ma_ref, mb_ref, h_ref, t_ref, o_ref):
    """Forward pass for B_TILE=2 images with 256-wide block-complex matmuls.

    Layouts (each quadrant a 128x128 plane, images 0/1, re/im parts):
      RB ("row-block"):    [[u0_re, u0_im], [u1_re, u1_im]]
      CB ("column-block"): [[u0_re, u1_re], [u0_im, u1_im]]
    Column DFTs (u @ F) act on RB, row DFTs (F @ u) act on CB; `swap` is the
    2x2 block transpose converting between them (cheap quadrant copies).
    Constants: ma = [[Fre,-Fim],[Fim,Fre]], mb = [[Fre,Fim],[-Fim,Fre]].
    """
    n = NPAD

    def dot_mxu(a, b):
        return jnp.dot(a.astype(MXU_DTYPE), b.astype(MXU_DTYPE),
                       preferred_element_type=jnp.float32)

    def swap(z):
        # 2x2 block transpose: swaps the two off-diagonal 128x128 quadrants.
        return jnp.concatenate(
            [jnp.concatenate([z[:n, :n], z[n:, :n]], axis=1),
             jnp.concatenate([z[:n, n:], z[n:, n:]], axis=1)], axis=0)

    def propagate(rb):
        # angular-spectrum propagation by LAYER_DISTANCE: u' = ifft2(fft2(u)*H)
        rb = dot_mxu(rb, mb_ref[...])        # column DFT          u @ F
        cb = swap(rb)
        cb = dot_mxu(ma_ref[...], cb)        # row DFT             F @ u
        # transfer function H (f32 elementwise; ifft2 1/N^2 folded into H)
        vre = cb[:n, :] * h_ref[0] - cb[n:, :] * h_ref[1]
        vim = cb[:n, :] * h_ref[1] + cb[n:, :] * h_ref[0]
        cb = jnp.concatenate([vre, vim], axis=0)
        cb = dot_mxu(mb_ref[...], cb)        # row inverse DFT     conj(F) @ v
        rb = swap(cb)
        return dot_mxu(rb, ma_ref[...])      # column inverse DFT  v @ conj(F)

    # InputDiffractiveLayer: real amplitude map -> complex field (zero phase),
    # then 10 um propagation to the first mask.  (The zero imaginary half makes
    # only the very first matmul half-useful -- ~2% of total MXU work.)
    zero = jnp.zeros((n, n), jnp.float32)
    rb = jnp.concatenate(
        [jnp.concatenate([x_ref[0], zero], axis=1),
         jnp.concatenate([x_ref[1], zero], axis=1)], axis=0)
    rb = propagate(rb)

    # Five BinaryAmplitudeDiffractiveLayer's: amplitude mask then propagation.
    # Rolled with fori_loop to bound live ranges (spill mitigation).
    def layer_body(layer, carry):
        return propagate(carry * t_ref[layer])
    rb = lax.fori_loop(0, N_LAYERS, layer_body, rb)

    # DetectorLayer: measured intensity |u|^2 per image.
    # TODO(synk): any detector-side normalization in pyonn is not reproduced.
    inten = rb[:, :n] * rb[:, :n] + rb[:, n:] * rb[:, n:]
    o_ref[0] = inten[:n, :]
    o_ref[1] = inten[n:, :]


# ==============================================================================
# Kernel B: Gauss 3-matmul complex products on 128^3 tiles (128x128 MXUs: v5e)
# ==============================================================================
def _donn_kernel_gauss128(x_ref, f_ref, h_ref, t_ref, o_ref):
    # f_ref (bf16): [Fre, Fim, Fre+Fim, Fre-Fim];  h_ref (f32): [Hre, Him]/N^2
    def dot_mxu(a, b):
        return jnp.dot(a.astype(MXU_DTYPE), b.astype(MXU_DTYPE),
                       preferred_element_type=jnp.float32)

    def row_dft(ur, ui):       # F @ u  (Gauss 3-matmul)
        p1 = dot_mxu(f_ref[0], ur)
        p2 = dot_mxu(f_ref[1], ui)
        p3 = dot_mxu(f_ref[2], ur + ui)
        return p1 - p2, p3 - p1 - p2

    def col_dft(ur, ui):       # u @ F
        p1 = dot_mxu(ur, f_ref[0])
        p2 = dot_mxu(ui, f_ref[1])
        p3 = dot_mxu(ur + ui, f_ref[2])
        return p1 - p2, p3 - p1 - p2

    def row_idft(vr, vi):      # conj(F) @ v
        p1 = dot_mxu(f_ref[0], vr)
        m2 = dot_mxu(f_ref[1], vi)
        p3 = dot_mxu(f_ref[3], vr + vi)
        return p1 + m2, p3 - p1 + m2

    def col_idft(vr, vi):      # v @ conj(F)
        p1 = dot_mxu(vr, f_ref[0])
        m2 = dot_mxu(vi, f_ref[1])
        p3 = dot_mxu(vr + vi, f_ref[3])
        return p1 + m2, p3 - p1 + m2

    def apply_h(vr, vi):
        hre = h_ref[0]
        him = h_ref[1]
        return vr * hre - vi * him, vr * him + vi * hre

    def propagate(ur, ui):
        tr, ti = row_dft(ur, ui)
        br, bi = col_dft(tr, ti)
        vr, vi = apply_h(br, bi)
        tr, ti = row_idft(vr, vi)
        return col_idft(tr, ti)

    for img in range(B_TILE):
        # InputDiffractiveLayer: first row-DFT specialized for a real field.
        ur0 = x_ref[img]
        tr = dot_mxu(f_ref[0], ur0)
        ti = dot_mxu(f_ref[1], ur0)
        br, bi = col_dft(tr, ti)
        vr, vi = apply_h(br, bi)
        tr, ti = row_idft(vr, vi)
        ur, ui = col_idft(tr, ti)

        def layer_body(layer, carry):
            cr, ci = carry
            t = t_ref[layer]
            return propagate(cr * t, ci * t)
        ur, ui = lax.fori_loop(0, N_LAYERS, layer_body, (ur, ui))

        # DetectorLayer: intensity.
        # TODO(synk): any detector-side normalization in pyonn is not reproduced.
        o_ref[img] = ur * ur + ui * ui


# ==============================================================================
# Host-side constants
# ==============================================================================
def _dft_and_transfer(n, dx, wavelength, distance):
    idx = np.arange(n)
    ang = -2.0 * np.pi * np.outer(idx, idx) / n
    F = np.exp(1j * ang)                            # forward DFT matrix
    fx = np.fft.fftfreq(n, d=dx)
    FX, FY = np.meshgrid(fx, fx, indexing="ij")
    arg = 1.0 / wavelength ** 2 - FX ** 2 - FY ** 2
    kz = 2.0 * np.pi * np.sqrt(np.maximum(arg, 0.0))
    # TODO(synk): evanescent components are hard-zeroed; pyonn may use complex
    # kz (exponential decay) near the bandlimit instead.
    H = np.where(arg >= 0.0, np.exp(1j * kz * distance), 0.0)
    return F, H / float(n * n)                      # fold ifft2 1/N^2 into H


def _pad2(a, npad):
    out = np.zeros((npad, npad), np.float32)
    out[: a.shape[0], : a.shape[1]] = a
    return out


def _block256_constants():
    F, H = _dft_and_transfer(NEURON_SIZE, PIXEL_LENGTH, WAVELENGTH, LAYER_DISTANCE)
    fre, fim = _pad2(F.real, NPAD), _pad2(F.imag, NPAD)
    hre, him = _pad2(H.real, NPAD), _pad2(H.imag, NPAD)
    ma = np.block([[fre, -fim], [fim, fre]]).astype(np.float32)   # F block
    mb = np.block([[fre, fim], [-fim, fre]]).astype(np.float32)   # conj(F) block
    h = np.stack([np.concatenate([hre, hre], axis=1),
                  np.concatenate([him, him], axis=1)]).astype(np.float32)
    return (jnp.asarray(ma, MXU_DTYPE), jnp.asarray(mb, MXU_DTYPE),
            jnp.asarray(h, jnp.float32))


def _gauss128_constants():
    F, H = _dft_and_transfer(NEURON_SIZE, PIXEL_LENGTH, WAVELENGTH, LAYER_DISTANCE)
    fre, fim = _pad2(F.real, NPAD), _pad2(F.imag, NPAD)
    f = np.stack([fre, fim, fre + fim, fre - fim]).astype(np.float32)
    h = np.stack([_pad2(H.real, NPAD), _pad2(H.imag, NPAD)]).astype(np.float32)
    return jnp.asarray(f, MXU_DTYPE), jnp.asarray(h, jnp.float32)


def _prefers_wide_mxu():
    """True on chips with 256x256 MXUs (v6e / v7x); False on 128-wide gens.

    v5e/v5p and older have 128x128 MXUs where the 128^3 Gauss form already
    fills the array; the 2N block form would only add work there.
    """
    try:
        kind = jax.devices()[0].device_kind.lower()
    except Exception:
        return True
    return not any(tag in kind for tag in ("v2", "v3", "v4", "v5"))


# ==============================================================================
# Wrapper
# ==============================================================================
def five_layer_binary_amplitude_dnn(x, weights, *, use_wide_mxu=None):
    """x: (B, 120, 120) float32 input amplitude maps; weights: (5, 120, 120)."""
    B, N, _ = x.shape
    assert N == NEURON_SIZE and x.shape[2] == NEURON_SIZE
    assert weights.shape == (N_LAYERS, NEURON_SIZE, NEURON_SIZE)
    if use_wide_mxu is None:
        use_wide_mxu = _prefers_wide_mxu()

    npad = NPAD
    # Pad the batch to a multiple of B_TILE and the planes to 128x128
    # (lane-dense tiles); jnp.pad avoids the extra zeros().at[].set() pass.
    bpad = ((B + B_TILE - 1) // B_TILE) * B_TILE
    xp = jnp.pad(x.astype(jnp.float32),
                 ((0, bpad - B), (0, npad - N), (0, npad - N)))

    # TODO(synk): sigmoid(weights) is assumed for pyonn's binary-amplitude
    # weight->transmission mapping (applied once here, batch-independent).
    t = jnp.pad(jax.nn.sigmoid(weights.astype(jnp.float32)),
                ((0, 0), (0, npad - N), (0, npad - N)))

    grid = (bpad // B_TILE,)
    batch_spec = pl.BlockSpec((B_TILE, npad, npad), lambda b: (b, 0, 0))
    # "parallel" shards the batch axis across TensorCores on v7x; CORE_PARALLEL
    # is intentionally not forced so the same code compiles on single-TC gens.
    params = pltpu.CompilerParams(dimension_semantics=("parallel",))
    out_shape = jax.ShapeDtypeStruct((bpad, npad, npad), jnp.float32)

    if use_wide_mxu:
        ma, mb, h = _block256_constants()
        t2 = jnp.tile(t, (1, 2, 2))   # mask tiled for the 2x2 block layouts
        out = pl.pallas_call(
            _donn_kernel_block256,
            out_shape=out_shape,
            grid=grid,
            in_specs=[
                batch_spec,                                                # x
                pl.BlockSpec((2 * npad, 2 * npad), lambda b: (0, 0)),      # Ma
                pl.BlockSpec((2 * npad, 2 * npad), lambda b: (0, 0)),      # Mb
                pl.BlockSpec((2, npad, 2 * npad), lambda b: (0, 0, 0)),    # H
                pl.BlockSpec((N_LAYERS, 2 * npad, 2 * npad),
                             lambda b: (0, 0, 0)),                         # masks
            ],
            out_specs=batch_spec,
            compiler_params=params,
        )(xp, ma, mb, h, t2)
    else:
        f, h = _gauss128_constants()
        out = pl.pallas_call(
            _donn_kernel_gauss128,
            out_shape=out_shape,
            grid=grid,
            in_specs=[
                batch_spec,                                                # x
                pl.BlockSpec((4, npad, npad), lambda b: (0, 0, 0)),        # F pack
                pl.BlockSpec((2, npad, npad), lambda b: (0, 0, 0)),        # H pack
                pl.BlockSpec((N_LAYERS, npad, npad), lambda b: (0, 0, 0)), # masks
            ],
            out_specs=batch_spec,
            compiler_params=params,
        )(xp, f, h, t)

    # Crop padding (batch + spatial) back off.
    return out[:B, :N, :N]


if __name__ == "__main__":
    N = NEURON_SIZE      # 120, fixed by the module
    B = 4                # 2 grid steps of B_TILE=2 images (even grid length)

    key = jax.random.PRNGKey(0)
    kx, kw = jax.random.split(key)
    # deterministic synthetic input amplitude maps and layer weights
    x = jax.random.uniform(kx, (B, N, N), dtype=jnp.float32)
    weights = jax.random.uniform(kw, (N_LAYERS, N, N), dtype=jnp.float32)

    out = five_layer_binary_amplitude_dnn(x, weights)
    out = jax.block_until_ready(out)

    assert out.shape == (B, N, N)
    assert out.dtype == jnp.float32
    assert bool(jnp.all(jnp.isfinite(out)))
    assert bool(jnp.all(out >= 0.0))   # detector intensity is non-negative
    print("KERNEL_OK")
</pallas_src>

<mosaic_0001>
module attributes {stable_mosaic.version = 11 : i64} {
  func.func @_donn_kernel_block256(%arg0: i32, %arg1: memref<2x128x128xf32, #tpu.memory_space<vmem>>, %arg2: memref<256x256xbf16, #tpu.memory_space<vmem>>, %arg3: memref<256x256xbf16, #tpu.memory_space<vmem>>, %arg4: memref<2x128x256xf32, #tpu.memory_space<vmem>>, %arg5: memref<5x256x256xf32, #tpu.memory_space<vmem>>, %arg6: memref<2x128x128xf32, #tpu.memory_space<vmem>>) attributes {dimension_semantics = [#tpu.dimension_semantics<parallel>], iteration_bounds = array<i64: 2>, scalar_prefetch = 0 : i64, scratch_operands = 0 : i64, tpu.core_type = #tpu.core_type<tc>, window_params = [{transform_indices = @transform_0, window_bounds = array<i64: 2, 128, 128>}, {pipeline_mode = #tpu.pipeline_mode<synchronous>, transform_indices = @transform_1, window_bounds = array<i64: 256, 256>}, {pipeline_mode = #tpu.pipeline_mode<synchronous>, transform_indices = @transform_2, window_bounds = array<i64: 256, 256>}, {pipeline_mode = #tpu.pipeline_mode<synchronous>, transform_indices = @transform_3, window_bounds = array<i64: 2, 128, 256>}, {pipeline_mode = #tpu.pipeline_mode<synchronous>, transform_indices = @transform_4, window_bounds = array<i64: 5, 256, 256>}, {transform_indices = @transform_5, window_bounds = array<i64: 2, 128, 128>}]} {
    %cst = arith.constant 0.000000e+00 : f32
    %0 = vector.broadcast %cst : f32 to vector<128x128xf32>
    %c0 = arith.constant 0 : index
    %c0_0 = arith.constant 0 : index
    %c0_1 = arith.constant 0 : index
    %1 = vector.load %arg1[%c0, %c0_0, %c0_1] : memref<2x128x128xf32, #tpu.memory_space<vmem>>, vector<1x128x128xf32>
    %2 = vector.shape_cast %1 : vector<1x128x128xf32> to vector<128x128xf32>
    %3 = tpu.concatenate %2, %0 in 1 : vector<128x128xf32>, vector<128x128xf32> -> vector<128x256xf32>
    %c1 = arith.constant 1 : index
    %c0_2 = arith.constant 0 : index
    %c0_3 = arith.constant 0 : index
    %4 = vector.load %arg1[%c1, %c0_2, %c0_3] : memref<2x128x128xf32, #tpu.memory_space<vmem>>, vector<1x128x128xf32>
    %5 = vector.shape_cast %4 : vector<1x128x128xf32> to vector<128x128xf32>
    %6 = tpu.concatenate %5, %0 in 1 : vector<128x128xf32>, vector<128x128xf32> -> vector<128x256xf32>
    %7 = tpu.concatenate %3, %6 in 0 : vector<128x256xf32>, vector<128x256xf32> -> vector<256x256xf32>
    %c0_4 = arith.constant 0 : index
    %c0_5 = arith.constant 0 : index
    %8 = vector.load %arg3[%c0_4, %c0_5] : memref<256x256xbf16, #tpu.memory_space<vmem>>, vector<256x256xbf16>
    %9 = arith.truncf %7 : vector<256x256xf32> to vector<256x256xbf16>
    %cst_6 = arith.constant dense<0.000000e+00> : vector<256x256xf32>
    %10 = tpu.matmul %9, %8, %cst_6 {dimension_numbers = #tpu.dot_dimension_numbers<[1], [0], [0], [1], [0, 0, 1, 1], [], []>} : vector<256x256xbf16>, vector<256x256xbf16>, vector<256x256xf32> -> vector<256x256xf32>
    %11 = vector.extract_strided_slice %10 {offsets = [0, 0], sizes = [128, 128], strides = [1, 1]} : vector<256x256xf32> to vector<128x128xf32>
    %12 = vector.extract_strided_slice %10 {offsets = [128, 0], sizes = [128, 128], strides = [1, 1]} : vector<256x256xf32> to vector<128x128xf32>
    %13 = tpu.concatenate %11, %12 in 1 : vector<128x128xf32>, vector<128x128xf32> -> vector<128x256xf32>
    %14 = vector.extract_strided_slice %10 {offsets = [0, 128], sizes = [128, 128], strides = [1, 1]} : vector<256x256xf32> to vector<128x128xf32>
    %15 = vector.extract_strided_slice %10 {offsets = [128, 128], sizes = [128, 128], strides = [1, 1]} : vector<256x256xf32> to vector<128x128xf32>
    %16 = tpu.concatenate %14, %15 in 1 : vector<128x128xf32>, vector<128x128xf32> -> vector<128x256xf32>
    %17 = tpu.concatenate %13, %16 in 0 : vector<128x256xf32>, vector<128x256xf32> -> vector<256x256xf32>
    %c0_7 = arith.constant 0 : index
    %c0_8 = arith.constant 0 : index
    %18 = vector.load %arg2[%c0_7, %c0_8] : memref<256x256xbf16, #tpu.memory_space<vmem>>, vector<256x256xbf16>
    %19 = arith.truncf %17 : vector<256x256xf32> to vector<256x256xbf16>
    %cst_9 = arith.constant dense<0.000000e+00> : vector<256x256xf32>
    %20 = tpu.matmul %18, %19, %cst_9 {dimension_numbers = #tpu.dot_dimension_numbers<[1], [0], [0], [1], [0, 0, 1, 1], [], []>} : vector<256x256xbf16>, vector<256x256xbf16>, vector<256x256xf32> -> vector<256x256xf32>
    %21 = vector.extract_strided_slice %20 {offsets = [0, 0], sizes = [128, 256], strides = [1, 1]} : vector<256x256xf32> to vector<128x256xf32>
    %c0_10 = arith.constant 0 : index
    %c0_11 = arith.constant 0 : index
    %c0_12 = arith.constant 0 : index
    %22 = vector.load %arg4[%c0_10, %c0_11, %c0_12] : memref<2x128x256xf32, #tpu.memory_space<vmem>>, vector<1x128x256xf32>
    %23 = vector.shape_cast %22 : vector<1x128x256xf32> to vector<128x256xf32>
    %24 = arith.mulf %21, %23 : vector<128x256xf32>
    %25 = vector.extract_strided_slice %20 {offsets = [128, 0], sizes = [128, 256], strides = [1, 1]} : vector<256x256xf32> to vector<128x256xf32>
    %c1_13 = arith.constant 1 : index
    %c0_14 = arith.constant 0 : index
    %c0_15 = arith.constant 0 : index
    %26 = vector.load %arg4[%c1_13, %c0_14, %c0_15] : memref<2x128x256xf32, #tpu.memory_space<vmem>>, vector<1x128x256xf32>
    %27 = vector.shape_cast %26 : vector<1x128x256xf32> to vector<128x256xf32>
    %28 = arith.mulf %25, %27 : vector<128x256xf32>
    %29 = arith.subf %24, %28 : vector<128x256xf32>
    %30 = vector.extract_strided_slice %20 {offsets = [0, 0], sizes = [128, 256], strides = [1, 1]} : vector<256x256xf32> to vector<128x256xf32>
    %c1_16 = arith.constant 1 : index
    %c0_17 = arith.constant 0 : index
    %c0_18 = arith.constant 0 : index
    %31 = vector.load %arg4[%c1_16, %c0_17, %c0_18] : memref<2x128x256xf32, #tpu.memory_space<vmem>>, vector<1x128x256xf32>
    %32 = vector.shape_cast %31 : vector<1x128x256xf32> to vector<128x256xf32>
    %33 = arith.mulf %30, %32 : vector<128x256xf32>
    %34 = vector.extract_strided_slice %20 {offsets = [128, 0], sizes = [128, 256], strides = [1, 1]} : vector<256x256xf32> to vector<128x256xf32>
    %c0_19 = arith.constant 0 : index
    %c0_20 = arith.constant 0 : index
    %c0_21 = arith.constant 0 : index
    %35 = vector.load %arg4[%c0_19, %c0_20, %c0_21] : memref<2x128x256xf32, #tpu.memory_space<vmem>>, vector<1x128x256xf32>
    %36 = vector.shape_cast %35 : vector<1x128x256xf32> to vector<128x256xf32>
    %37 = arith.mulf %34, %36 : vector<128x256xf32>
    %38 = arith.addf %33, %37 : vector<128x256xf32>
    %39 = tpu.concatenate %29, %38 in 0 : vector<128x256xf32>, vector<128x256xf32> -> vector<256x256xf32>
    %c0_22 = arith.constant 0 : index
    %c0_23 = arith.constant 0 : index
    %40 = vector.load %arg3[%c0_22, %c0_23] : memref<256x256xbf16, #tpu.memory_space<vmem>>, vector<256x256xbf16>
    %41 = arith.truncf %39 : vector<256x256xf32> to vector<256x256xbf16>
    %cst_24 = arith.constant dense<0.000000e+00> : vector<256x256xf32>
    %42 = tpu.matmul %40, %41, %cst_24 {dimension_numbers = #tpu.dot_dimension_numbers<[1], [0], [0], [1], [0, 0, 1, 1], [], []>} : vector<256x256xbf16>, vector<256x256xbf16>, vector<256x256xf32> -> vector<256x256xf32>
    %43 = vector.extract_strided_slice %42 {offsets = [0, 0], sizes = [128, 128], strides = [1, 1]} : vector<256x256xf32> to vector<128x128xf32>
    %44 = vector.extract_strided_slice %42 {offsets = [128, 0], sizes = [128, 128], strides = [1, 1]} : vector<256x256xf32> to vector<128x128xf32>
    %45 = tpu.concatenate %43, %44 in 1 : vector<128x128xf32>, vector<128x128xf32> -> vector<128x256xf32>
    %46 = vector.extract_strided_slice %42 {offsets = [0, 128], sizes = [128, 128], strides = [1, 1]} : vector<256x256xf32> to vector<128x128xf32>
    %47 = vector.extract_strided_slice %42 {offsets = [128, 128], sizes = [128, 128], strides = [1, 1]} : vector<256x256xf32> to vector<128x128xf32>
    %48 = tpu.concatenate %46, %47 in 1 : vector<128x128xf32>, vector<128x128xf32> -> vector<128x256xf32>
    %49 = tpu.concatenate %45, %48 in 0 : vector<128x256xf32>, vector<128x256xf32> -> vector<256x256xf32>
    %c0_25 = arith.constant 0 : index
    %c0_26 = arith.constant 0 : index
    %50 = vector.load %arg2[%c0_25, %c0_26] : memref<256x256xbf16, #tpu.memory_space<vmem>>, vector<256x256xbf16>
    %51 = arith.truncf %49 : vector<256x256xf32> to vector<256x256xbf16>
    %cst_27 = arith.constant dense<0.000000e+00> : vector<256x256xf32>
    %52 = tpu.matmul %51, %50, %cst_27 {dimension_numbers = #tpu.dot_dimension_numbers<[1], [0], [0], [1], [0, 0, 1, 1], [], []>} : vector<256x256xbf16>, vector<256x256xbf16>, vector<256x256xf32> -> vector<256x256xf32>
    %c0_i32 = arith.constant 0 : i32
    %c5_i32 = arith.constant 5 : i32
    %53 = arith.addi %c0_i32, %c5_i32 : i32
    %c1_i32 = arith.constant 1 : i32
    %54 = scf.for %arg7 = %c0_i32 to %53 step %c1_i32 iter_args(%arg8 = %52) -> (vector<256x256xf32>)  : i32 {
      %70 = arith.index_cast %arg7 : i32 to index
      %c0_35 = arith.constant 0 : index
      %c0_36 = arith.constant 0 : index
      %71 = vector.load %arg5[%70, %c0_35, %c0_36] : memref<5x256x256xf32, #tpu.memory_space<vmem>>, vector<1x256x256xf32>
      %72 = vector.shape_cast %71 : vector<1x256x256xf32> to vector<256x256xf32>
      %73 = arith.mulf %arg8, %72 : vector<256x256xf32>
      %c0_37 = arith.constant 0 : index
      %c0_38 = arith.constant 0 : index
      %74 = vector.load %arg3[%c0_37, %c0_38] : memref<256x256xbf16, #tpu.memory_space<vmem>>, vector<256x256xbf16>
      %75 = arith.truncf %73 : vector<256x256xf32> to vector<256x256xbf16>
      %cst_39 = arith.constant dense<0.000000e+00> : vector<256x256xf32>
      %76 = tpu.matmul %75, %74, %cst_39 {dimension_numbers = #tpu.dot_dimension_numbers<[1], [0], [0], [1], [0, 0, 1, 1], [], []>} : vector<256x256xbf16>, vector<256x256xbf16>, vector<256x256xf32> -> vector<256x256xf32>
      %77 = vector.extract_strided_slice %76 {offsets = [0, 0], sizes = [128, 128], strides = [1, 1]} : vector<256x256xf32> to vector<128x128xf32>
      %78 = vector.extract_strided_slice %76 {offsets = [128, 0], sizes = [128, 128], strides = [1, 1]} : vector<256x256xf32> to vector<128x128xf32>
      %79 = tpu.concatenate %77, %78 in 1 : vector<128x128xf32>, vector<128x128xf32> -> vector<128x256xf32>
      %80 = vector.extract_strided_slice %76 {offsets = [0, 128], sizes = [128, 128], strides = [1, 1]} : vector<256x256xf32> to vector<128x128xf32>
      %81 = vector.extract_strided_slice %76 {offsets = [128, 128], sizes = [128, 128], strides = [1, 1]} : vector<256x256xf32> to vector<128x128xf32>
      %82 = tpu.concatenate %80, %81 in 1 : vector<128x128xf32>, vector<128x128xf32> -> vector<128x256xf32>
      %83 = tpu.concatenate %79, %82 in 0 : vector<128x256xf32>, vector<128x256xf32> -> vector<256x256xf32>
      %c0_40 = arith.constant 0 : index
      %c0_41 = arith.constant 0 : index
      %84 = vector.load %arg2[%c0_40, %c0_41] : memref<256x256xbf16, #tpu.memory_space<vmem>>, vector<256x256xbf16>
      %85 = arith.truncf %83 : vector<256x256xf32> to vector<256x256xbf16>
      %cst_42 = arith.constant dense<0.000000e+00> : vector<256x256xf32>
      %86 = tpu.matmul %84, %85, %cst_42 {dimension_numbers = #tpu.dot_dimension_numbers<[1], [0], [0], [1], [0, 0, 1, 1], [], []>} : vector<256x256xbf16>, vector<256x256xbf16>, vector<256x256xf32> -> vector<256x256xf32>
      %87 = vector.extract_strided_slice %86 {offsets = [0, 0], sizes = [128, 256], strides = [1, 1]} : vector<256x256xf32> to vector<128x256xf32>
      %c0_43 = arith.constant 0 : index
      %c0_44 = arith.constant 0 : index
      %c0_45 = arith.constant 0 : index
      %88 = vector.load %arg4[%c0_43, %c0_44, %c0_45] : memref<2x128x256xf32, #tpu.memory_space<vmem>>, vector<1x128x256xf32>
      %89 = vector.shape_cast %88 : vector<1x128x256xf32> to vector<128x256xf32>
      %90 = arith.mulf %87, %89 : vector<128x256xf32>
      %91 = vector.extract_strided_slice %86 {offsets = [128, 0], sizes = [128, 256], strides = [1, 1]} : vector<256x256xf32> to vector<128x256xf32>
      %c1_46 = arith.constant 1 : index
      %c0_47 = arith.constant 0 : index
      %c0_48 = arith.constant 0 : index
      %92 = vector.load %arg4[%c1_46, %c0_47, %c0_48] : memref<2x128x256xf32, #tpu.memory_space<vmem>>, vector<1x128x256xf32>
      %93 = vector.shape_cast %92 : vector<1x128x256xf32> to vector<128x256xf32>
      %94 = arith.mulf %91, %93 : vector<128x256xf32>
      %95 = arith.subf %90, %94 : vector<128x256xf32>
      %96 = vector.extract_strided_slice %86 {offsets = [0, 0], sizes = [128, 256], strides = [1, 1]} : vector<256x256xf32> to vector<128x256xf32>
      %c1_49 = arith.constant 1 : index
      %c0_50 = arith.constant 0 : index
      %c0_51 = arith.constant 0 : index
      %97 = vector.load %arg4[%c1_49, %c0_50, %c0_51] : memref<2x128x256xf32, #tpu.memory_space<vmem>>, vector<1x128x256xf32>
      %98 = vector.shape_cast %97 : vector<1x128x256xf32> to vector<128x256xf32>
      %99 = arith.mulf %96, %98 : vector<128x256xf32>
      %100 = vector.extract_strided_slice %86 {offsets = [128, 0], sizes = [128, 256], strides = [1, 1]} : vector<256x256xf32> to vector<128x256xf32>
      %c0_52 = arith.constant 0 : index
      %c0_53 = arith.constant 0 : index
      %c0_54 = arith.constant 0 : index
      %101 = vector.load %arg4[%c0_52, %c0_53, %c0_54] : memref<2x128x256xf32, #tpu.memory_space<vmem>>, vector<1x128x256xf32>
      %102 = vector.shape_cast %101 : vector<1x128x256xf32> to vector<128x256xf32>
      %103 = arith.mulf %100, %102 : vector<128x256xf32>
      %104 = arith.addf %99, %103 : vector<128x256xf32>
      %105 = tpu.concatenate %95, %104 in 0 : vector<128x256xf32>, vector<128x256xf32> -> vector<256x256xf32>
      %c0_55 = arith.constant 0 : index
      %c0_56 = arith.constant 0 : index
      %106 = vector.load %arg3[%c0_55, %c0_56] : memref<256x256xbf16, #tpu.memory_space<vmem>>, vector<256x256xbf16>
      %107 = arith.truncf %105 : vector<256x256xf32> to vector<256x256xbf16>
      %cst_57 = arith.constant dense<0.000000e+00> : vector<256x256xf32>
      %108 = tpu.matmul %106, %107, %cst_57 {dimension_numbers = #tpu.dot_dimension_numbers<[1], [0], [0], [1], [0, 0, 1, 1], [], []>} : vector<256x256xbf16>, vector<256x256xbf16>, vector<256x256xf32> -> vector<256x256xf32>
      %109 = vector.extract_strided_slice %108 {offsets = [0, 0], sizes = [128, 128], strides = [1, 1]} : vector<256x256xf32> to vector<128x128xf32>
      %110 = vector.extract_strided_slice %108 {offsets = [128, 0], sizes = [128, 128], strides = [1, 1]} : vector<256x256xf32> to vector<128x128xf32>
      %111 = tpu.concatenate %109, %110 in 1 : vector<128x128xf32>, vector<128x128xf32> -> vector<128x256xf32>
      %112 = vector.extract_strided_slice %108 {offsets = [0, 128], sizes = [128, 128], strides = [1, 1]} : vector<256x256xf32> to vector<128x128xf32>
      %113 = vector.extract_strided_slice %108 {offsets = [128, 128], sizes = [128, 128], strides = [1, 1]} : vector<256x256xf32> to vector<128x128xf32>
      %114 = tpu.concatenate %112, %113 in 1 : vector<128x128xf32>, vector<128x128xf32> -> vector<128x256xf32>
      %115 = tpu.concatenate %111, %114 in 0 : vector<128x256xf32>, vector<128x256xf32> -> vector<256x256xf32>
      %c0_58 = arith.constant 0 : index
      %c0_59 = arith.constant 0 : index
      %116 = vector.load %arg2[%c0_58, %c0_59] : memref<256x256xbf16, #tpu.memory_space<vmem>>, vector<256x256xbf16>
      %117 = arith.truncf %115 : vector<256x256xf32> to vector<256x256xbf16>
      %cst_60 = arith.constant dense<0.000000e+00> : vector<256x256xf32>
      %118 = tpu.matmul %117, %116, %cst_60 {dimension_numbers = #tpu.dot_dimension_numbers<[1], [0], [0], [1], [0, 0, 1, 1], [], []>} : vector<256x256xbf16>, vector<256x256xbf16>, vector<256x256xf32> -> vector<256x256xf32>
      scf.yield %118 : vector<256x256xf32>
    }
    %c5_i32_28 = arith.constant 5 : i32
    %55 = vector.extract_strided_slice %54 {offsets = [0, 0], sizes = [256, 128], strides = [1, 1]} : vector<256x256xf32> to vector<256x128xf32>
    %56 = vector.extract_strided_slice %54 {offsets = [0, 0], sizes = [256, 128], strides = [1, 1]} : vector<256x256xf32> to vector<256x128xf32>
    %57 = arith.mulf %55, %56 : vector<256x128xf32>
    %58 = vector.extract_strided_slice %54 {offsets = [0, 128], sizes = [256, 128], strides = [1, 1]} : vector<256x256xf32> to vector<256x128xf32>
    %59 = vector.extract_strided_slice %54 {offsets = [0, 128], sizes = [256, 128], strides = [1, 1]} : vector<256x256xf32> to vector<256x128xf32>
    %60 = arith.mulf %58, %59 : vector<256x128xf32>
    %61 = arith.addf %57, %60 : vector<256x128xf32>
    %62 = vector.extract_strided_slice %61 {offsets = [0, 0], sizes = [128, 128], strides = [1, 1]} : vector<256x128xf32> to vector<128x128xf32>
    %c0_29 = arith.constant 0 : index
    %c0_30 = arith.constant 0 : index
    %c0_31 = arith.constant 0 : index
    %63 = vector.load %arg6[%c0_29, %c0_30, %c0_31] : memref<2x128x128xf32, #tpu.memory_space<vmem>>, vector<1x128x128xf32>
    %64 = vector.shape_cast %63 : vector<1x128x128xf32> to vector<128x128xf32>
    %65 = vector.shape_cast %62 : vector<128x128xf32> to vector<1x128x128xf32>
    tpu.vector_store %arg6[%c0_29, %c0_30, %c0_31], %65 {strides = array<i32>} : memref<2x128x128xf32, #tpu.memory_space<vmem>>, vector<1x128x128xf32>,
    %66 = vector.extract_strided_slice %61 {offsets = [128, 0], sizes = [128, 128], strides = [1, 1]} : vector<256x128xf32> to vector<128x128xf32>
    %c1_32 = arith.constant 1 : index
    %c0_33 = arith.constant 0 : index
    %c0_34 = arith.constant 0 : index
    %67 = vector.load %arg6[%c1_32, %c0_33, %c0_34] : memref<2x128x128xf32, #tpu.memory_space<vmem>>, vector<1x128x128xf32>
    %68 = vector.shape_cast %67 : vector<1x128x128xf32> to vector<128x128xf32>
    %69 = vector.shape_cast %66 : vector<128x128xf32> to vector<1x128x128xf32>
    tpu.vector_store %arg6[%c1_32, %c0_33, %c0_34], %69 {strides = array<i32>} : memref<2x128x128xf32, #tpu.memory_space<vmem>>, vector<1x128x128xf32>,
    return
  }
  func.func @transform_0(%arg0: i32) -> (i32, i32, i32) {
    %c0_i32 = arith.constant 0 : i32
    %c0_i32_0 = arith.constant 0 : i32
    %c0_i32_1 = arith.constant 0 : i32
    return %arg0, %c0_i32, %c0_i32_0 : i32, i32, i32
  }
  func.func @transform_1(%arg0: i32) -> (i32, i32) {
    %c0_i32 = arith.constant 0 : i32
    %c0_i32_0 = arith.constant 0 : i32
    %c0_i32_1 = arith.constant 0 : i32
    return %c0_i32, %c0_i32_0 : i32, i32
  }
  func.func @transform_2(%arg0: i32) -> (i32, i32) {
    %c0_i32 = arith.constant 0 : i32
    %c0_i32_0 = arith.constant 0 : i32
    %c0_i32_1 = arith.constant 0 : i32
    return %c0_i32, %c0_i32_0 : i32, i32
  }
  func.func @transform_3(%arg0: i32) -> (i32, i32, i32) {
    %c0_i32 = arith.constant 0 : i32
    %c0_i32_0 = arith.constant 0 : i32
    %c0_i32_1 = arith.constant 0 : i32
    %c0_i32_2 = arith.constant 0 : i32
    return %c0_i32, %c0_i32_0, %c0_i32_1 : i32, i32, i32
  }
  func.func @transform_4(%arg0: i32) -> (i32, i32, i32) {
    %c0_i32 = arith.constant 0 : i32
    %c0_i32_0 = arith.constant 0 : i32
    %c0_i32_1 = arith.constant 0 : i32
    %c0_i32_2 = arith.constant 0 : i32
    return %c0_i32, %c0_i32_0, %c0_i32_1 : i32, i32, i32
  }
  func.func @transform_5(%arg0: i32) -> (i32, i32, i32) {
    %c0_i32 = arith.constant 0 : i32
    %c0_i32_0 = arith.constant 0 : i32
    %c0_i32_1 = arith.constant 0 : i32
    return %arg0, %c0_i32, %c0_i32_0 : i32, i32, i32
  }
}

</mosaic_0001>

<bundles_post_ra>
// kernel: tpu_custom_call.1
= control target key start
LH: loop header
LB: loop body
LE: loop exit
PB: predicated region body
PF: predicated region fallthrough
CT: control target
= control target key end

     0   :  { %10 = vsyncpa [#allocation3], 0  ;;  %s8175_s0 = inlined_call_operand.hbm [shape: f32[4,128,128], index: 0, kind: input, shape index: {}]   ;;  %s8176_s1 = inlined_call_operand.hbm [shape: bf16[256,256], index: 1, kind: input, shape index: {}]   ;;  %s8177_s2 = inlined_call_operand.hbm [shape: bf16[256,256], index: 2, kind: input, shape index: {}]   ;;  %s8178_s3 = inlined_call_operand.hbm [shape: f32[2,128,256], index: 3, kind: input, shape index: {}]   ;;  %s8179_s4 = inlined_call_operand.hbm [shape: f32[5,256,256], index: 4, kind: input, shape index: {}]   ;;  %s8180_s5 = inlined_call_operand.hbm [shape: f32[4,128,128], index: 5, kind: output, shape index: {}]  }
   0x1   :  { %12 = vsyncpa [#allocation3 + $0x1], 0 }
   0x2   :  { %13 = vsyncpa [#allocation6], 0 }
   0x3   :  { %14 = vsyncpa [#allocation9], 0 }
   0x4   :  { %15 = vsyncpa [#allocation4], 0 }
   0x5   :  { %17 = vsyncpa [#allocation4 + $0x1], 0  ;;  %s5898_s18 = smov 0   ;;  %s5900_s19 = smov 0  }
   0x6   :  { %s5902_s20 = smov 0   ;;  %s5904_s21 = smov 0  }
   0x7 LB: > { %s5919_s22 = sadd.s32 4294967295, %s5593_s21   ;;  %s4058_s23 = sadd.s32 4294967294, %s5593_s21   ;;  %s5593_s21 = sphi %s5904_s21, %s8476_s21   ;;  %s5589_s20 = sphi %s5902_s20, %s8475_s20   ;;  %s5585_s19 = sphi %s5900_s19, %s8474_s19   ;;  %s5581_s18 = sphi %s5898_s18, %s8473_s18  }
   0x8   : > { %p43_p0 = scmp.ne.s32.totalorder %s5585_s19, %s5581_s18  ;;  %p8181_p1 = scmp.eq.s32.totalorder %s5919_s22, 0 }
   0x9   : > { %p157_p3 = scmp.eq.s32.totalorder %s4058_s23, 1  ;;  %p4059_p5 = scmp.ge.s32.totalorder %s5593_s21, 1 }
   0xa   : > { %p5928_p4 = por %p8181_p1, %p43_p0  ;;  %p164_p7 = scmp.lt.s32.totalorder %s5593_s21, 3 }
   0xb   : > { %p5933_p6 = por %p157_p3, %p43_p0  ;;  %s5855_s27 = smov [#allocation5]  }
   0xc   : > { %s8197_s24 = scalar_select %p5928_p4, 1, 0 }
   0xd   : > { %s8198_s25 = scalar_select %p5933_p6, 1, 0 }
   0xe   : > { %p5938_p8 = pnand %p4059_p5, %p164_p7  ;;  %s176_s28 = sshll.u32 %s5855_s27, 4  ;;  %s5942_s28 = int_to_ptr.vmem [resolvable:$true] %s176_s28 }
   0xf   : > { %s5856_s30 = smov [#allocation8]   ;;  %s5117_s9 = scalar_lea.hbm %s8176_s1, 4096 }
  0x10   : > { %s8199_s26 = scalar_select %p5938_p8, 1, 0 }
  0x11   : > { %p4269_p9 = pneg %p5938_p8  ;;  %s202_s6 = sshll.u32 %s5856_s30, 4  ;;  %s5953_s6 = int_to_ptr.vmem [resolvable:$true] %s202_s6 }
  0x12   : > { %p5118_p12 = scmp.ne.s32.totalorder %s8176_s1, %s5117_s9  ;;  %p5124_p5 = scmp.lt.u32.totalorder %s5117_s9, %s8176_s1 }
  0x13   : > { %p5949_p11 = pnand %p4269_p9, %p8181_p1 }
  0x15   : > { %p5963_p13 = pneg %p5949_p11 }
  0x17   : > { %p5120_p0 = pnand %p5963_p13, %p5118_p12 }
  0x19   : > { %p5121_p3 = pneg %p5120_p0 }
  0x1b   : > { %p5126_p7 = pnand %p5124_p5, %p5121_p3 }
  0x1d   : > { %5129 = shalt.err (!%p5126_p7)
}
  0x1e   : > { %s5130_s15 = scalar_lea.vmem %s5942_s28, 4096  ;;  %p5138_p2 = scmp.lt.s32.totalorder %s5942_s28, %s5942_s28 }
  0x1f   : > { %p5131_p9 = scmp.ne.s32.totalorder %s5942_s28, %s5130_s15  ;;  %p5139_p6 = scmp.lt.s32.totalorder %s5130_s15, %s5130_s15 }
  0x21   : > { %p5133_p10 = pnand %p5131_p9, %p5963_p13  ;;  %p5140_p12 = por %p5139_p6, %p5138_p2 }
  0x23   : > { %p5134_p1 = pneg %p5133_p10 }
  0x25   : > { %p5141_p0 = pnand %p5140_p12, %p5134_p1 }
  0x27   : > { %5144 = shalt.err (!%p5141_p0)
}
  0x28   : > { %s8182_s16 = smov 128   ;;  %s5858_s17 = smov 8  }
  0x29   : > { %4272 = dma.hbm_to_vmem [thread:$0]  (!%p5949_p11), %s8176_s1, 4096, %s5942_s28, [#allocation6], %s8182_s16, %s8182_s16, %s5858_s17  }
  0x2a   : > { %s5145_s8 = scalar_lea.hbm %s8178_s3, 8192 }
  0x2b   : > { %p5146_p1 = scmp.ne.s32.totalorder %s8178_s3, %s5145_s8  ;;  %p5152_p10 = scmp.lt.u32.totalorder %s5145_s8, %s8178_s3 }
  0x2d   : > { %p5148_p2 = pnand %p5146_p1, %p5963_p13 }
  0x2f   : > { %p5149_p6 = pneg %p5148_p2 }
  0x31   : > { %p5154_p3 = pnand %p5152_p10, %p5149_p6 }
  0x33   : > { %5157 = shalt.err (!%p5154_p3)
}
  0x34   : > { %s5158_s28 = scalar_lea.vmem %s5953_s6, 8192  ;;  %p5166_p12 = scmp.lt.s32.totalorder %s5953_s6, %s5953_s6 }
  0x35   : > { %p5159_p5 = scmp.ne.s32.totalorder %s5953_s6, %s5158_s28  ;;  %p5167_p0 = scmp.lt.s32.totalorder %s5158_s28, %s5158_s28 }
  0x37   : > { %p5161_p7 = pnand %p5159_p5, %p5963_p13  ;;  %p5168_p1 = por %p5167_p0, %p5166_p12 }
  0x39   : > { %p5162_p9 = pneg %p5161_p7 }
  0x3b   : > { %p5169_p2 = pnand %p5168_p1, %p5162_p9 }
  0x3d   : > { %5172 = shalt.err (!%p5169_p2)
}
  0x3e   : > { %s5859_s14 = smov 256   ;;  %s5860_s15 = smov 16  }
  0x3f   : > { %4278 = dma.hbm_to_vmem [thread:$0]  (!%p5949_p11), %s8178_s3, 8192, %s5953_s6, [#allocation9], %s5859_s14, %s5859_s14, %s5860_s15  }
  0x40   : > { %s5861_s30 = smov [#allocation7]   ;;  %s5862_s8 = smov [#allocation10]  }
  0x41   : > { %s189_s7 = sshll.u32 %s5861_s30, 4  ;;  %s215_s9 = sshll.u32 %s5862_s8, 4  ;;  %s190_s7 = int_to_ptr.vmem [resolvable:$true] %s189_s7  ;;  %s6013_s9 = int_to_ptr.vmem [resolvable:$true] %s215_s9 }
  0x42   : > { %s5173_s13 = scalar_lea.hbm %s8177_s2, 4096 }
  0x43   : > { %p5174_p6 = scmp.ne.s32.totalorder %s8177_s2, %s5173_s13  ;;  %p5180_p5 = scmp.lt.u32.totalorder %s5173_s13, %s8177_s2 }
  0x45   : > { %p5176_p10 = pnand %p5174_p6, %p5963_p13 }
  0x47   : > { %p5177_p3 = pneg %p5176_p10 }
  0x49   : > { %p5182_p7 = pnand %p5180_p5, %p5177_p3 }
  0x4b   : > { %5185 = shalt.err (!%p5182_p7)
}
  0x4c   : > { %s5186_s27 = scalar_lea.vmem %s190_s7, 4096  ;;  %p5194_p1 = scmp.lt.s32.totalorder %s190_s7, %s190_s7 }
  0x4d   : > { %p5187_p9 = scmp.ne.s32.totalorder %s190_s7, %s5186_s27  ;;  %p5195_p2 = scmp.lt.s32.totalorder %s5186_s27, %s5186_s27 }
  0x4f   : > { %p5189_p12 = pnand %p5187_p9, %p5963_p13  ;;  %p5196_p4 = por %p5195_p2, %p5194_p1 }
  0x51   : > { %p5190_p0 = pneg %p5189_p12 }
  0x53   : > { %p5197_p8 = pnand %p5196_p4, %p5190_p0 }
  0x55   : > { %5200 = shalt.err (!%p5197_p8)
}
  0x56   : > { %s8202_s16 = smov 128   ;;  %s5201_s13 = scalar_lea.hbm %s8179_s4, 40960 }
  0x57   : > { %4275 = dma.hbm_to_vmem [thread:$0]  (!%p5949_p11), %s8177_s2, 4096, %s190_s7, [#allocation6], %s8202_s16, %s8202_s16, %s5858_s17  }
  0x58   : > { %p5202_p6 = scmp.ne.s32.totalorder %s8179_s4, %s5201_s13  ;;  %p5208_p10 = scmp.lt.u32.totalorder %s5201_s13, %s8179_s4 }
  0x5a   : > { %p5204_p4 = pnand %p5202_p6, %p5963_p13 }
  0x5c   : > { %p5205_p8 = pneg %p5204_p4 }
  0x5e   : > { %p5210_p3 = pnand %p5208_p10, %p5205_p8 }
  0x60   : > { %5213 = shalt.err (!%p5210_p3)
}
  0x61   : > { %s5214_s7 = scalar_lea.vmem %s6013_s9, 40960  ;;  %p5222_p12 = scmp.lt.s32.totalorder %s6013_s9, %s6013_s9 }
  0x62   : > { %p5215_p5 = scmp.ne.s32.totalorder %s6013_s9, %s5214_s7  ;;  %p5223_p0 = scmp.lt.s32.totalorder %s5214_s7, %s5214_s7 }
  0x64   : > { %p5217_p7 = pnand %p5215_p5, %p5963_p13  ;;  %p5224_p1 = por %p5223_p0, %p5222_p12 }
  0x66   : > { %p5218_p9 = pneg %p5217_p7 }
  0x68   : > { %p5225_p2 = pnand %p5224_p1, %p5218_p9 }
  0x6a   : > { %5228 = shalt.err (!%p5225_p2)
}
  0x6b   : > { %4281 = dma.hbm_to_vmem [thread:$0]  (!%p5949_p11), %s8179_s4, 40960, %s6013_s9, [#allocation9], %s5859_s14, %s5859_s14, %s5860_s15  }
  0x6c   : > { %s6063_s29 = sadd.s32 1, %s5593_s21   ;;  %s30_s10 = sadd.s32 1, %s5589_s20 }
  0x6d   : > { %s27_s12 = ssub.s32 %s5593_s21, %s6063_s29  ;;  %p37_p6 = scmp.ne.s32.totalorder %s5589_s20, %s5585_s19 }
  0x6e   : > { %p28_p13 = scmp.eq.s32.totalorder %s27_s12, 0  ;;  %p38_p4 = scmp.eq.s32.totalorder %s5593_s21, 0 }
  0x6f   : > { %p8203_p10 = scmp.eq.s32.totalorder %s5919_s22, 1  ;;  %p4294_p5 = scmp.lt.s32.totalorder %s5593_s21, 2 }
  0x70   : > { %s6072_s11 = scalar_select %p28_p13, %s5589_s20, %s30_s10  }
  0x71   : > { %p39_p8 = por %p38_p4, %p37_p6  ;;  %p6076_p3 = por %p8203_p10, %p37_p6 }
  0x72   : > { %s229_s28 = sand.u32 1, %s5589_s20   ;;  %s4245_s14 = sshll.u32 %s5593_s21, 12 }
  0x73   : > { %s4065_s23 = sshll.u32 %s229_s28, 8  ;;  %s6086_s6 = scalar_lea.hbm %s8175_s0, %s4245_s14 }
  0x74   : > { %s233_s27 = scalar_lea.vmem [#allocation2], %s4065_s23  ;;  %p6090_p11 = pnand %p4294_p5, %p39_p8 }
  0x75   : > { %s241_s7 = sshll.u32 %s233_s27, 4  ;;  %s6094_s8 = scalar_lea.sflag [#allocation3], %s229_s28  ;;  %s6088_s7 = int_to_ptr.vmem [resolvable:$true] %s241_s7 }
  0x76   : > { %s5229_s12 = scalar_lea.hbm %s6086_s6, 4096  ;;  %p5231_p9 = pneg %p6090_p11 }
  0x77   : > { %p5230_p7 = scmp.ne.s32.totalorder %s6086_s6, %s5229_s12  ;;  %s5234_s14 = scalar_lea.hbm %s8175_s0, 8192 }
  0x78   : > { %p5235_p1 = scmp.lt.u32.totalorder %s6086_s6, %s8175_s0  ;;  %p5236_p2 = scmp.lt.u32.totalorder %s5234_s14, %s5229_s12 }
  0x79   : > { %p5232_p12 = pnand %p5231_p9, %p5230_p7  ;;  %p5238_p6 = scmp.lt.u32.totalorder %s5229_s12, %s6086_s6 }
  0x7a   : > { %p5237_p13 = por %p5236_p2, %p5235_p1 }
  0x7b   : > { %p5233_p0 = pneg %p5232_p12 }
  0x7c   : > { %p5239_p4 = por %p5238_p6, %p5237_p13 }
  0x7e   : > { %p5240_p8 = pnand %p5239_p4, %p5233_p0 }
  0x80   : > { %5243 = shalt.err (!%p5240_p8)
}
  0x81   : > { %s5244_s28 = scalar_lea.vmem %s6088_s7, 4096  ;;  %s5863_s27 = smov [#allocation2]  }
  0x82   : > { %p5245_p10 = scmp.ne.s32.totalorder %s6088_s7, %s5244_s28  ;;  %s5249_s10 = sshll.u32 %s5863_s27, 4  ;;  %s5250_s10 = int_to_ptr.vmem [resolvable:$false] %s5249_s10 }
  0x83   : > { %s5251_s23 = scalar_lea.vmem %s5250_s10, 8192  ;;  %p5252_p12 = scmp.lt.s32.totalorder %s6088_s7, %s5250_s10 }
  0x84   : > { %p5247_p5 = pnand %p5245_p10, %p5231_p9  ;;  %p5253_p1 = scmp.lt.s32.totalorder %s5251_s23, %s5244_s28 }
  0x86   : > { %p5248_p7 = pneg %p5247_p5  ;;  %p5254_p2 = por %p5253_p1, %p5252_p12 }
  0x88   : > { %p5255_p13 = pnand %p5254_p2, %p5248_p7 }
  0x8a   : > { %5258 = shalt.err (!%p5255_p13)
}
  0x8b   : > { %4285 = dma.hbm_to_vmem [thread:$0]  (!%p6090_p11), %s6086_s6, 4096, %s6088_s7, %s6094_s8, %s8202_s16, %s8202_s16, %s5858_s17  }
  0x8c   : > { %p8206_p9 = scmp.ne.s32.totalorder %s8199_s26, 0 }
  0x8e   : > { %253 = sbr.rel (%p8206_p9) target bundleno = 3061 (0xbf5), region = 40 }
  0x95   : > { %s6128_s12 = sand.u32 1, %s5585_s19   ;;  %p8207_p0 = scmp.ne.s32.totalorder %s8197_s24, 0 }
  0x96   : > { %s4070_s14 = sshll.u32 %s6128_s12, 8  ;;  %s256_s15 = scalar_lea.sflag [#allocation3], %s6128_s12 }
  0x97   : > { %s6134_s30 = scalar_lea.vmem [#allocation2], %s4070_s14 }
  0x98   : > { %5564 = dma.done.wait (%p8207_p0), %s256_s15, 4096  }
  0x99   : > { %5566 = vsyncadd (%p8207_p0), %s256_s15, 4294963200  ;;  %p8208_p11 = scmp.eq.s32.totalorder %s5919_s22, 0 }
  0x9b   : > { %5568 = dma.done.wait (%p8208_p11), [#allocation6], 8192   ;;  %p8209_p6 = pmov %p8208_p11 }
  0x9d   : > { %5570 = vsyncadd (%p8209_p6), [#allocation6], 4294959104  ;;  %p8210_p4 = pmov %p8209_p6 }
  0x9f   : > { %5572 = dma.done.wait (%p8210_p4), [#allocation9], 49152   ;;  %p8211_p8 = pmov %p8210_p4 }
  0xa0   : > { %v5864_v0 = vmov 0.0|0.0   ;;  %v6149_v1 = vld [vmem:[#allocation7 + $0x4] ss:$8 sps:$4 sm:$0xff]   ;;  %v4865_v2 = vld [vmem:[#allocation7] ss:$8 sps:$4 sm:$0xff]   ;;  %v306_v36 = vld [vmem:[%s6134_s30 + $0x10] sm:$0xff] }
  0xa1   : > { %5574 = vsyncadd (%p8211_p8), [#allocation9], 4294918144  ;;  %578 = vmatprep.mubr.bf16.mxu0 %v5864_v0  ;;  %546 = vmatprep.subr.bf16.mxu0 %v6149_v1  ;;  %v4866_v3 = vld [vmem:[#allocation7 + $0x14] ss:$8 sps:$4 sm:$0xff]   ;;  %v4868_v4 = vld [vmem:[#allocation7 + $0x10] ss:$8 sps:$4 sm:$0xff]  }
  0xa2   : > { %547 = vmatpush1.bf16.msra.mxu0 %v4865_v2  ;;  %v4869_v5 = vld [vmem:[#allocation7 + $0x24] ss:$8 sps:$4 sm:$0xff]   ;;  %v4871_v6 = vld [vmem:[#allocation7 + $0x20] ss:$8 sps:$4 sm:$0xff]   ;;  %v4872_v7 = vld [vmem:[#allocation7 + $0x34] ss:$8 sps:$4 sm:$0xff]  }
  0xa3   : > { %548 = vmatprep.subr.bf16.mxu0 %v4866_v3  ;;  %v4874_v8 = vld [vmem:[#allocation7 + $0x30] ss:$8 sps:$4 sm:$0xff]   ;;  %v4875_v9 = vld [vmem:[#allocation7 + $0x44] ss:$8 sps:$4 sm:$0xff]   ;;  %v4877_v10 = vld [vmem:[#allocation7 + $0x40] ss:$8 sps:$4 sm:$0xff]  }
  0xa4   : > { %v4878_v11 = vld [vmem:[#allocation7 + $0x54] ss:$8 sps:$4 sm:$0xff]   ;;  %v4880_v12 = vld [vmem:[#allocation7 + $0x50] ss:$8 sps:$4 sm:$0xff]   ;;  %v4881_v13 = vld [vmem:[#allocation7 + $0x64] ss:$8 sps:$4 sm:$0xff]  }
  0xa5   : > { %v4883_v14 = vld [vmem:[#allocation7 + $0x60] ss:$8 sps:$4 sm:$0xff]   ;;  %v4884_v15 = vld [vmem:[#allocation7 + $0x74] ss:$8 sps:$4 sm:$0xff]   ;;  %v4886_v16 = vld [vmem:[#allocation7 + $0x70] ss:$8 sps:$4 sm:$0xff]  }
  0xa6   : > { %549 = vmatpush1.bf16.msra.mxu0 %v4868_v4  ;;  %v4887_v17 = vld [vmem:[#allocation7 + $0x84] ss:$8 sps:$4 sm:$0xff]   ;;  %v4889_v18 = vld [vmem:[#allocation7 + $0x80] ss:$8 sps:$4 sm:$0xff]   ;;  %v4890_v19 = vld [vmem:[#allocation7 + $0x94] ss:$8 sps:$4 sm:$0xff]  }
  0xa7   : > { %550 = vmatprep.subr.bf16.mxu0 %v4869_v5  ;;  %v4892_v20 = vld [vmem:[#allocation7 + $0x90] ss:$8 sps:$4 sm:$0xff]   ;;  %v4893_v21 = vld [vmem:[#allocation7 + $0xa4] ss:$8 sps:$4 sm:$0xff]   ;;  %v4895_v22 = vld [vmem:[#allocation7 + $0xa0] ss:$8 sps:$4 sm:$0xff]  }
  0xa8   : > { %v4896_v23 = vld [vmem:[#allocation7 + $0xb4] ss:$8 sps:$4 sm:$0xff]   ;;  %v4898_v24 = vld [vmem:[#allocation7 + $0xb0] ss:$8 sps:$4 sm:$0xff]   ;;  %v4899_v25 = vld [vmem:[#allocation7 + $0xc4] ss:$8 sps:$4 sm:$0xff]  }
  0xa9   : > { %v4901_v26 = vld [vmem:[#allocation7 + $0xc0] ss:$8 sps:$4 sm:$0xff]   ;;  %v4902_v27 = vld [vmem:[#allocation7 + $0xd4] ss:$8 sps:$4 sm:$0xff]   ;;  %v4904_v28 = vld [vmem:[#allocation7 + $0xd0] ss:$8 sps:$4 sm:$0xff]  }
  0xaa   : > { %551 = vmatpush1.bf16.msra.mxu0 %v4871_v6  ;;  %v4905_v29 = vld [vmem:[#allocation7 + $0xe4] ss:$8 sps:$4 sm:$0xff]   ;;  %v4907_v30 = vld [vmem:[#allocation7 + $0xe0] ss:$8 sps:$4 sm:$0xff]   ;;  %v4908_v31 = vld [vmem:[#allocation7 + $0xf4] ss:$8 sps:$4 sm:$0xff]  }
  0xab   : > { %552 = vmatprep.subr.bf16.mxu0 %v4872_v7  ;;  %v4910_v32 = vld [vmem:[#allocation7 + $0xf0] ss:$8 sps:$4 sm:$0xff]   ;;  %v304_v33 = vld [vmem:[%s6134_s30] sm:$0xff]  ;;  %v305_v34 = vld [vmem:[%s6134_s30 + $0x8] sm:$0xff]  ;;  %s6705_s24 = scalar_lea.vmem [#allocation11], %s4070_s14  ;;  %s6868_s26 = smov 0  }
  0xac   : > { %v369_v35 = vpack.c.bf16 %v305_v34, %v304_v33  ;;  %v307_v37 = vld [vmem:[%s6134_s30 + $0x18] sm:$0xff]  ;;  %v308_v39 = vld [vmem:[%s6134_s30 + $0x20] sm:$0xff]  ;;  %v309_v40 = vld [vmem:[%s6134_s30 + $0x28] sm:$0xff] }
  0xad   : > { %v371_v38 = vpack.c.bf16 %v307_v37, %v306_v36  ;;  %v372_v41 = vpack.c.bf16 %v309_v40, %v308_v39  ;;  %v310_v42 = vld [vmem:[%s6134_s30 + $0x30] sm:$0xff]  ;;  %v311_v43 = vld [vmem:[%s6134_s30 + $0x38] sm:$0xff]  ;;  %v312_v45 = vld [vmem:[%s6134_s30 + $0x40] sm:$0xff] }
  0xae   : > { %553 = vmatpush1.bf16.msra.mxu0 %v4874_v8  ;;  %v373_v44 = vpack.c.bf16 %v311_v43, %v310_v42  ;;  %v313_v46 = vld [vmem:[%s6134_s30 + $0x48] sm:$0xff]  ;;  %v314_v48 = vld [vmem:[%s6134_s30 + $0x50] sm:$0xff]  ;;  %v315_v49 = vld [vmem:[%s6134_s30 + $0x58] sm:$0xff] }
  0xaf   : > { %554 = vmatprep.subr.bf16.mxu0 %v4875_v9  ;;  %v374_v47 = vpack.c.bf16 %v313_v46, %v312_v45  ;;  %v375_v50 = vpack.c.bf16 %v315_v49, %v314_v48  ;;  %v316_v51 = vld [vmem:[%s6134_s30 + $0x60] sm:$0xff]  ;;  %v317_v52 = vld [vmem:[%s6134_s30 + $0x68] sm:$0xff]  ;;  %v318_v54 = vld [vmem:[%s6134_s30 + $0x70] sm:$0xff] }
  0xb0   : > { %v376_v53 = vpack.c.bf16 %v317_v52, %v316_v51  ;;  %v319_v55 = vld [vmem:[%s6134_s30 + $0x78] sm:$0xff]  ;;  %v4076_v57 = vld [vmem:[%s6134_s30 + $0x80] sm:$0xff]  ;;  %v4077_v58 = vld [vmem:[%s6134_s30 + $0x88] sm:$0xff] }
  0xb1   : > { %v377_v56 = vpack.c.bf16 %v319_v55, %v318_v54  ;;  %v378_v59 = vpack.c.bf16 %v4077_v58, %v4076_v57  ;;  %v4078_v60 = vld [vmem:[%s6134_s30 + $0x90] sm:$0xff]  ;;  %v4079_v61 = vld [vmem:[%s6134_s30 + $0x98] sm:$0xff]  ;;  %v4080_v63 = vld [vmem:[%s6134_s30 + $0xa0] sm:$0xff] }
  0xb2   : > { %555 = vmatpush1.bf16.msra.mxu0 %v4877_v10  ;;  %v379_v62 = vpack.c.bf16 %v4079_v61, %v4078_v60  ;;  %v4081_v2 = vld [vmem:[%s6134_s30 + $0xa8] sm:$0xff]  ;;  %v4082_v4 = vld [vmem:[%s6134_s30 + $0xb0] sm:$0xff]  ;;  %v4083_v5 = vld [vmem:[%s6134_s30 + $0xb8] sm:$0xff] }
  0xb3   : > { %556 = vmatprep.subr.bf16.mxu0 %v4878_v11  ;;  %v380_v3 = vpack.c.bf16 %v4081_v2, %v4080_v63  ;;  %v381_v6 = vpack.c.bf16 %v4083_v5, %v4082_v4  ;;  %v4084_v7 = vld [vmem:[%s6134_s30 + $0xc0] sm:$0xff]  ;;  %v4085_v8 = vld [vmem:[%s6134_s30 + $0xc8] sm:$0xff]  ;;  %v4086_v10 = vld [vmem:[%s6134_s30 + $0xd0] sm:$0xff] }
  0xb4   : > { %v382_v9 = vpack.c.bf16 %v4085_v8, %v4084_v7  ;;  %v4087_v11 = vld [vmem:[%s6134_s30 + $0xd8] sm:$0xff] }
  0xb6   : > { %557 = vmatpush1.bf16.msra.mxu0 %v4880_v12  ;;  %v383_v12 = vpack.c.bf16 %v4087_v11, %v4086_v10 }
  0xb7   : > { %558 = vmatprep.subr.bf16.mxu0 %v4881_v13  ;;  %v4088_v13 = vld [vmem:[%s6134_s30 + $0xe0] sm:$0xff] }
  0xba   : > { %559 = vmatpush1.bf16.msra.mxu0 %v4883_v14  ;;  %v4089_v14 = vld [vmem:[%s6134_s30 + $0xe8] sm:$0xff] }
  0xbb   : > { %560 = vmatprep.subr.bf16.mxu0 %v4884_v15  ;;  %v384_v15 = vpack.c.bf16 %v4089_v14, %v4088_v13 }
  0xbe   : > { %561 = vmatpush1.bf16.msra.mxu0 %v4886_v16  ;;  %v4090_v16 = vld [vmem:[%s6134_s30 + $0xf0] sm:$0xff] }
  0xbf   : > { %562 = vmatprep.subr.bf16.mxu0 %v4887_v17  ;;  %v4091_v17 = vld [vmem:[%s6134_s30 + $0xf8] sm:$0xff] }
  0xc2   : > { %563 = vmatpush1.bf16.msra.mxu0 %v4889_v18  ;;  %v385_v18 = vpack.c.bf16 %v4091_v17, %v4090_v16 }
  0xc3   : > { %564 = vmatprep.subr.bf16.mxu0 %v4890_v19 }
  0xc6   : > { %565 = vmatpush1.bf16.msra.mxu0 %v4892_v20 }
  0xc7   : > { %566 = vmatprep.subr.bf16.mxu0 %v4893_v21 }
  0xca   : > { %567 = vmatpush1.bf16.msra.mxu0 %v4895_v22 }
  0xcb   : > { %568 = vmatprep.subr.bf16.mxu0 %v4896_v23 }
  0xce   : > { %569 = vmatpush1.bf16.msra.mxu0 %v4898_v24 }
  0xcf   : > { %570 = vmatprep.subr.bf16.mxu0 %v4899_v25 }
  0xd2   : > { %571 = vmatpush1.bf16.msra.mxu0 %v4901_v26 }
  0xd3   : > { %572 = vmatprep.subr.bf16.mxu0 %v4902_v27 }
  0xd6   : > { %573 = vmatpush1.bf16.msra.mxu0 %v4904_v28 }
  0xd7   : > { %574 = vmatprep.subr.bf16.mxu0 %v4905_v29 }
  0xda   : > { %575 = vmatpush1.bf16.msra.mxu0 %v4907_v30 }
  0xdb   : > { %576 = vmatprep.subr.bf16.mxu0 %v4908_v31 }
  0xde   : > { %577 = vmatpush1.bf16.msra.mxu0 %v4910_v32 }
  0xe1   : > { %579 = vmatmul.mubr.bf16.vlgmr.msra.gmra.mrb[0].mxu0 %v369_v35 }
  0xe2   : > { %588 = vmatprep.mubr.bf16.mxu0 %v5864_v0 }
  0xe9   : > { %589 = vmatmul.mubr.bf16.gmra.mrb[4].mxu0 %v371_v38 }
  0xea   : > { %598 = vmatprep.mubr.bf16.mxu0 %v5864_v0 }
  0xf1   : > { %599 = vmatmul.mubr.bf16.gmra.mrb[8].mxu0 %v372_v41  ;;  %v6227_v41 = vld [vmem:[#allocation5 + $0x4] ss:$8 sps:$4 sm:$0xff]  }
  0xf2   : > { %608 = vmatprep.mubr.bf16.mxu0 %v5864_v0  ;;  %995 = vmatprep.mubr.bf16.mxu1 %v6227_v41 }
  0xf9   : > { %609 = vmatmul.mubr.bf16.gmra.mrb[12].mxu0 %v373_v44 }
  0xfa   : > { %618 = vmatprep.mubr.bf16.mxu0 %v5864_v0 }
 0x101   : > { %619 = vmatmul.mubr.bf16.gmra.mrb[16].mxu0 %v374_v47 }
 0x102   : > { %628 = vmatprep.mubr.bf16.mxu0 %v5864_v0 }
 0x109   : > { %629 = vmatmul.mubr.bf16.gmra.mrb[20].mxu0 %v375_v50 }
 0x10a   : > { %638 = vmatprep.mubr.bf16.mxu0 %v5864_v0 }
 0x111   : > { %639 = vmatmul.mubr.bf16.gmra.mrb[24].mxu0 %v376_v53 }
 0x112   : > { %648 = vmatprep.mubr.bf16.mxu0 %v5864_v0 }
 0x119   : > { %649 = vmatmul.mubr.bf16.gmra.mrb[28].mxu0 %v377_v56 }
 0x11a   : > { %658 = vmatprep.mubr.bf16.mxu0 %v5864_v0 }
 0x121   : > { %659 = vmatmul.mubr.bf16.gmra.mrb[32].mxu0 %v378_v59 }
 0x122   : > { %668 = vmatprep.mubr.bf16.mxu0 %v5864_v0 }
 0x129   : > { %669 = vmatmul.mubr.bf16.gmra.mrb[36].mxu0 %v379_v62 }
 0x12a   : > { %678 = vmatprep.mubr.bf16.mxu0 %v5864_v0 }
 0x131   : > { %679 = vmatmul.mubr.bf16.gmra.mrb[40].mxu0 %v380_v3 }
 0x132   : > { %688 = vmatprep.mubr.bf16.mxu0 %v5864_v0 }
 0x139   : > { %689 = vmatmul.mubr.bf16.gmra.mrb[44].mxu0 %v381_v6 }
 0x13a   : > { %698 = vmatprep.mubr.bf16.mxu0 %v5864_v0 }
 0x141   : > { %699 = vmatmul.mubr.bf16.gmra.mrb[48].mxu0 %v382_v9 }
 0x142   : > { %708 = vmatprep.mubr.bf16.mxu0 %v5864_v0 }
 0x149   : > { %709 = vmatmul.mubr.bf16.gmra.mrb[52].mxu0 %v383_v12 }
 0x14a   : > { %718 = vmatprep.mubr.bf16.mxu0 %v5864_v0 }
 0x151   : > { %719 = vmatmul.mubr.bf16.gmra.mrb[56].mxu0 %v384_v15 }
 0x152   : > { %728 = vmatprep.mubr.bf16.mxu0 %v5864_v0 }
 0x159   : > { %729 = vmatmul.mubr.bf16.gmra.mrb[60].mxu0 %v385_v18 }
 0x15a   : > { %1477 = vmatprep.mubr.bf16.mxu0 %v6149_v1 }
 0x1b4   : > { %v580_v19 = vpop.f32.mrb[0].mxu0 }
 0x1b5   : > { %v6200_v20 = vpop.f32.mrb[1].mxu0 }
 0x1b6   : > { %v584_v21 = vpop.f32.mrb[2].mxu0 }
 0x1b7   : > { %v771_v22 = vpack.c.bf16 %v584_v21, %v580_v19  ;;  %v6202_v23 = vpop.f32.mrb[3].mxu0 }
 0x1b8   : > { %v787_v24 = vpack.c.bf16 %v6202_v23, %v6200_v20  ;;  %v4911_v20 = vld [vmem:[#allocation5] ss:$8 sps:$4 sm:$0xff]   ;;  %v4914_v23 = vld [vmem:[#allocation5 + $0x14] ss:$8 sps:$4 sm:$0xff]  }
 0x1bc   : > { %v590_v25 = vpop.f32.mrb[4].mxu0 }
 0x1bd   : > { %v6206_v26 = vpop.f32.mrb[5].mxu0 }
 0x1be   : > { %v594_v0 = vpop.f32.mrb[6].mxu0 }
 0x1bf   : > { %v773_v27 = vpack.c.bf16 %v594_v0, %v590_v25  ;;  %v6208_v28 = vpop.f32.mrb[7].mxu0 }
 0x1c0   : > { %v789_v1 = vpack.c.bf16 %v6208_v28, %v6206_v26  ;;  %v4917_v26 = vld [vmem:[#allocation5 + $0x24] ss:$8 sps:$4 sm:$0xff]   ;;  %v4919_v28 = vld [vmem:[#allocation5 + $0x20] ss:$8 sps:$4 sm:$0xff]  }
 0x1c4   : > { %v600_v29 = vpop.f32.mrb[8].mxu0 }
 0x1c5   : > { %v6212_v30 = vpop.f32.mrb[9].mxu0 }
 0x1c6   : > { %v604_v31 = vpop.f32.mrb[10].mxu0 }
 0x1c7   : > { %v775_v32 = vpack.c.bf16 %v604_v31, %v600_v29  ;;  %v6214_v33 = vpop.f32.mrb[11].mxu0 }
 0x1c8   : > { %v791_v34 = vpack.c.bf16 %v6214_v33, %v6212_v30  ;;  %v4922_v30 = vld [vmem:[#allocation5 + $0x30] ss:$8 sps:$4 sm:$0xff]   ;;  %v4923_v33 = vld [vmem:[#allocation5 + $0x44] ss:$8 sps:$4 sm:$0xff]  }
 0x1cc   : > { %v6218_v35 = vpop.f32.mrb[12].mxu0 }
 0x1cd   : > { %v6220_v36 = vpop.f32.mrb[13].mxu0 }
 0x1ce   : > { %v614_v37 = vpop.f32.mrb[14].mxu0 }
 0x1cf   : > { %v777_v38 = vpack.c.bf16 %v614_v37, %v6218_v35  ;;  %v6223_v39 = vpop.f32.mrb[15].mxu0 }
 0x1d0   : > { %v793_v40 = vpack.c.bf16 %v6223_v39, %v6220_v36  ;;  %v4926_v36 = vld [vmem:[#allocation5 + $0x54] ss:$8 sps:$4 sm:$0xff]   ;;  %v4928_v39 = vld [vmem:[#allocation5 + $0x50] ss:$8 sps:$4 sm:$0xff]  }
 0x1d4   : > { %v6229_v42 = vpop.f32.mrb[16].mxu0 }
 0x1d5   : > { %v6232_v43 = vpop.f32.mrb[17].mxu0 }
 0x1d6   : > { %v624_v44 = vpop.f32.mrb[18].mxu0 }
 0x1d7   : > { %v779_v45 = vpack.c.bf16 %v624_v44, %v6229_v42  ;;  %v6235_v46 = vpop.f32.mrb[19].mxu0 }
 0x1d8   : > { %v795_v47 = vpack.c.bf16 %v6235_v46, %v6232_v43  ;;  %v4932_v43 = vld [vmem:[#allocation5 + $0x74] ss:$8 sps:$4 sm:$0xff]   ;;  %v4934_v46 = vld [vmem:[#allocation5 + $0x70] ss:$8 sps:$4 sm:$0xff]  }
 0x1dc   : > { %v6239_v48 = vpop.f32.mrb[20].mxu0 }
 0x1dd   : > { %v6241_v49 = vpop.f32.mrb[21].mxu0 }
 0x1de   : > { %v6243_v50 = vpop.f32.mrb[22].mxu0 }
 0x1df   : > { %v781_v51 = vpack.c.bf16 %v6243_v50, %v6239_v48  ;;  %v6247_v52 = vpop.f32.mrb[23].mxu0 }
 0x1e0   : > { %v797_v53 = vpack.c.bf16 %v6247_v52, %v6241_v49  ;;  %v4937_v49 = vld [vmem:[#allocation5 + $0x80] ss:$8 sps:$4 sm:$0xff]   ;;  %v4940_v52 = vld [vmem:[#allocation5 + $0x90] ss:$8 sps:$4 sm:$0xff]  }
 0x1e4   : > { %v6251_v54 = vpop.f32.mrb[24].mxu0 }
 0x1e5   : > { %v6253_v55 = vpop.f32.mrb[25].mxu0 }
 0x1e6   : > { %v6255_v56 = vpop.f32.mrb[26].mxu0 }
 0x1e7   : > { %v783_v57 = vpack.c.bf16 %v6255_v56, %v6251_v54  ;;  %v6259_v58 = vpop.f32.mrb[27].mxu0  ;;  %v4943_v54 = vld [vmem:[#allocation5 + $0xa0] ss:$8 sps:$4 sm:$0xff]   ;;  %v4946_v56 = vld [vmem:[#allocation5 + $0xb0] ss:$8 sps:$4 sm:$0xff]  }
 0x1e8   : > { %v799_v59 = vpack.c.bf16 %v6259_v58, %v6253_v55  ;;  %v4944_v55 = vld [vmem:[#allocation5 + $0xb4] ss:$8 sps:$4 sm:$0xff]   ;;  %v4949_v58 = vld [vmem:[#allocation5 + $0xc0] ss:$8 sps:$4 sm:$0xff]  }
 0x1ec   : > { %v6263_v60 = vpop.f32.mrb[28].mxu0 }
 0x1ed   : > { %v6265_v61 = vpop.f32.mrb[29].mxu0 }
 0x1ee   : > { %v6267_v62 = vpop.f32.mrb[30].mxu0 }
 0x1ef   : > { %v785_v63 = vpack.c.bf16 %v6267_v62, %v6263_v60  ;;  %v6271_v2 = vpop.f32.mrb[31].mxu0  ;;  %v4952_v60 = vld [vmem:[#allocation5 + $0xd0] ss:$8 sps:$4 sm:$0xff]   ;;  %v4955_v62 = vld [vmem:[#allocation5 + $0xe0] ss:$8 sps:$4 sm:$0xff]  }
 0x1f0   : > { %v801_v3 = vpack.c.bf16 %v6271_v2, %v6265_v61  ;;  %v4953_v61 = vld [vmem:[#allocation5 + $0xe4] ss:$8 sps:$4 sm:$0xff]   ;;  %v4958_v2 = vld [vmem:[#allocation5 + $0xf0] ss:$8 sps:$4 sm:$0xff]  }
 0x1f4   : > { %v660_v4 = vpop.f32.mrb[32].mxu0 }
 0x1f5   : > { %v6275_v5 = vpop.f32.mrb[33].mxu0 }
 0x1f6   : > { %v664_v6 = vpop.f32.mrb[34].mxu0 }
 0x1f7   : > { %v666_v7 = vpop.f32.mrb[35].mxu0  ;;  %v772_v8 = vpack.c.bf16 %v664_v6, %v660_v4 }
 0x1f8   : > { %v788_v9 = vpack.c.bf16 %v666_v7, %v6275_v5 }
 0x1f9   : > { %963 = vmatprep.subr.bf16.mxu1 %v772_v8 }
 0x1fa   : > { %964 = vmatpush1.bf16.msra.mxu1 %v771_v22 }
 0x1fc   : > { %v670_v10 = vpop.f32.mrb[36].mxu0 }
 0x1fd   : > { %v672_v11 = vpop.f32.mrb[37].mxu0 }
 0x1fe   : > { %v674_v12 = vpop.f32.mrb[38].mxu0 }
 0x1ff   : > { %v774_v13 = vpack.c.bf16 %v674_v12, %v670_v10  ;;  %v676_v14 = vpop.f32.mrb[39].mxu0 }
 0x200   : > { %v790_v15 = vpack.c.bf16 %v676_v14, %v672_v11 }
 0x201   : > { %965 = vmatprep.subr.bf16.mxu1 %v774_v13 }
 0x202   : > { %966 = vmatpush1.bf16.msra.mxu1 %v773_v27 }
 0x204   : > { %v680_v16 = vpop.f32.mrb[40].mxu0 }
 0x205   : > { %v682_v17 = vpop.f32.mrb[41].mxu0 }
 0x206   : > { %v684_v18 = vpop.f32.mrb[42].mxu0 }
 0x207   : > { %v776_v19 = vpack.c.bf16 %v684_v18, %v680_v16  ;;  %v686_v21 = vpop.f32.mrb[43].mxu0 }
 0x208   : > { %v792_v25 = vpack.c.bf16 %v686_v21, %v682_v17 }
 0x209   : > { %967 = vmatprep.subr.bf16.mxu1 %v776_v19 }
 0x20a   : > { %968 = vmatpush1.bf16.msra.mxu1 %v775_v32 }
 0x20c   : > { %v690_v0 = vpop.f32.mrb[44].mxu0 }
 0x20d   : > { %v692_v29 = vpop.f32.mrb[45].mxu0 }
 0x20e   : > { %v694_v31 = vpop.f32.mrb[46].mxu0 }
 0x20f   : > { %v778_v22 = vpack.c.bf16 %v694_v31, %v690_v0  ;;  %v696_v35 = vpop.f32.mrb[47].mxu0 }
 0x210   : > { %v794_v37 = vpack.c.bf16 %v696_v35, %v692_v29 }
 0x211   : > { %969 = vmatprep.subr.bf16.mxu1 %v778_v22 }
 0x212   : > { %970 = vmatpush1.bf16.msra.mxu1 %v777_v38 }
 0x214   : > { %v700_v42 = vpop.f32.mrb[48].mxu0 }
 0x215   : > { %v702_v44 = vpop.f32.mrb[49].mxu0 }
 0x216   : > { %v704_v48 = vpop.f32.mrb[50].mxu0 }
 0x217   : > { %v780_v27 = vpack.c.bf16 %v704_v48, %v700_v42  ;;  %v706_v50 = vpop.f32.mrb[51].mxu0 }
 0x218   : > { %v796_v4 = vpack.c.bf16 %v706_v50, %v702_v44 }
 0x219   : > { %971 = vmatprep.subr.bf16.mxu1 %v780_v27 }
 0x21a   : > { %972 = vmatpush1.bf16.msra.mxu1 %v779_v45 }
 0x21c   : > { %v710_v5 = vpop.f32.mrb[52].mxu0 }
 0x21d   : > { %v712_v6 = vpop.f32.mrb[53].mxu0 }
 0x21e   : > { %v714_v7 = vpop.f32.mrb[54].mxu0 }
 0x21f   : > { %v782_v32 = vpack.c.bf16 %v714_v7, %v710_v5  ;;  %v716_v8 = vpop.f32.mrb[55].mxu0 }
 0x220   : > { %v798_v10 = vpack.c.bf16 %v716_v8, %v712_v6 }
 0x221   : > { %973 = vmatprep.subr.bf16.mxu1 %v782_v32 }
 0x222   : > { %974 = vmatpush1.bf16.msra.mxu1 %v781_v51  ;;  %v4938_v51 = vld [vmem:[#allocation5 + $0x94] ss:$8 sps:$4 sm:$0xff]  }
 0x224   : > { %v720_v11 = vpop.f32.mrb[56].mxu0 }
 0x225   : > { %v722_v12 = vpop.f32.mrb[57].mxu0 }
 0x226   : > { %v724_v13 = vpop.f32.mrb[58].mxu0 }
 0x227   : > { %v784_v38 = vpack.c.bf16 %v724_v13, %v720_v11  ;;  %v726_v14 = vpop.f32.mrb[59].mxu0 }
 0x228   : > { %v800_v16 = vpack.c.bf16 %v726_v14, %v722_v12 }
 0x229   : > { %975 = vmatprep.subr.bf16.mxu1 %v784_v38 }
 0x22a   : > { %976 = vmatpush1.bf16.msra.mxu1 %v783_v57  ;;  %v4947_v57 = vld [vmem:[#allocation5 + $0xc4] ss:$8 sps:$4 sm:$0xff]  }
 0x22c   : > { %v730_v45 = vpop.f32.mrb[60].mxu0 }
 0x22d   : > { %v732_v17 = vpop.f32.mrb[61].mxu0 }
 0x22e   : > { %v734_v18 = vpop.f32.mrb[62].mxu0 }
 0x22f   : > { %v786_v19 = vpack.c.bf16 %v734_v18, %v730_v45  ;;  %v736_v21 = vpop.f32.mrb[63].mxu0 }
 0x230   : > { %v802_v0 = vpack.c.bf16 %v736_v21, %v732_v17 }
 0x231   : > { %977 = vmatprep.subr.bf16.mxu1 %v786_v19 }
 0x232   : > { %978 = vmatpush1.bf16.msra.mxu1 %v785_v63  ;;  %v4956_v63 = vld [vmem:[#allocation5 + $0xf4] ss:$8 sps:$4 sm:$0xff]  }
 0x233   : > { %979 = vmatprep.subr.bf16.mxu1 %v788_v9 }
 0x236   : > { %980 = vmatpush1.bf16.msra.mxu1 %v787_v24  ;;  %v4916_v24 = vld [vmem:[#allocation5 + $0x10] ss:$8 sps:$4 sm:$0xff]  }
 0x237   : > { %981 = vmatprep.subr.bf16.mxu1 %v790_v15 }
 0x23a   : > { %982 = vmatpush1.bf16.msra.mxu1 %v789_v1  ;;  %v4920_v1 = vld [vmem:[#allocation5 + $0x34] ss:$8 sps:$4 sm:$0xff]  }
 0x23b   : > { %983 = vmatprep.subr.bf16.mxu1 %v792_v25 }
 0x23e   : > { %984 = vmatpush1.bf16.msra.mxu1 %v791_v34  ;;  %v4925_v34 = vld [vmem:[#allocation5 + $0x40] ss:$8 sps:$4 sm:$0xff]  }
 0x23f   : > { %985 = vmatprep.subr.bf16.mxu1 %v794_v37 }
 0x242   : > { %986 = vmatpush1.bf16.msra.mxu1 %v793_v40  ;;  %v4929_v40 = vld [vmem:[#allocation5 + $0x64] ss:$8 sps:$4 sm:$0xff]  }
 0x243   : > { %987 = vmatprep.subr.bf16.mxu1 %v796_v4 }
 0x246   : > { %988 = vmatpush1.bf16.msra.mxu1 %v795_v47  ;;  %v4935_v47 = vld [vmem:[#allocation5 + $0x84] ss:$8 sps:$4 sm:$0xff]  }
 0x247   : > { %989 = vmatprep.subr.bf16.mxu1 %v798_v10 }
 0x24a   : > { %990 = vmatpush1.bf16.msra.mxu1 %v797_v53  ;;  %v4941_v53 = vld [vmem:[#allocation5 + $0xa4] ss:$8 sps:$4 sm:$0xff]  }
 0x24b   : > { %991 = vmatprep.subr.bf16.mxu1 %v800_v16 }
 0x24e   : > { %992 = vmatpush1.bf16.msra.mxu1 %v799_v59  ;;  %v4950_v59 = vld [vmem:[#allocation5 + $0xd4] ss:$8 sps:$4 sm:$0xff]  }
 0x24f   : > { %993 = vmatprep.subr.bf16.mxu1 %v802_v0  ;;  %v1156_v0 = vld [vmem:[#allocation8] sm:$0xff] }
 0x252   : > { %994 = vmatpush1.bf16.msra.mxu1 %v801_v3 }
 0x253   : > { %1670 = vmatprep.subr.bf16.mxu1 %v6227_v41  ;;  %v4931_v41 = vld [vmem:[#allocation5 + $0x60] ss:$8 sps:$4 sm:$0xff]  }
 0x255   : > { %996 = vmatmul.mubr.bf16.vlgmr.msra.gmra.mrb[0].mxu1 %v4911_v20 }
 0x256   : > { %1005 = vmatprep.mubr.bf16.mxu1 %v4914_v23  ;;  %1671 = vmatpush1.bf16.msra.mxu1 %v4911_v20  ;;  %v1221_v20 = vld [vmem:[#allocation8 + $0x100] sm:$0xff] }
 0x257   : > { %1672 = vmatprep.subr.bf16.mxu1 %v4914_v23  ;;  %v1157_v23 = vld [vmem:[#allocation8 + $0x8] sm:$0xff] }
 0x25a   : > { %1673 = vmatpush1.bf16.msra.mxu1 %v4916_v24 }
 0x25b   : > { %1674 = vmatprep.subr.bf16.mxu1 %v4917_v26 }
 0x25d   : > { %1006 = vmatmul.mubr.bf16.gmra.mrb[4].mxu1 %v4916_v24  ;;  %v1222_v24 = vld [vmem:[#allocation8 + $0x108] sm:$0xff] }
 0x25e   : > { %1015 = vmatprep.mubr.bf16.mxu1 %v4917_v26  ;;  %1675 = vmatpush1.bf16.msra.mxu1 %v4919_v28  ;;  %v1158_v26 = vld [vmem:[#allocation8 + $0x10] sm:$0xff] }
 0x25f   : > { %1676 = vmatprep.subr.bf16.mxu1 %v4920_v1 }
 0x262   : > { %1677 = vmatpush1.bf16.msra.mxu1 %v4922_v30 }
 0x263   : > { %1678 = vmatprep.subr.bf16.mxu1 %v4923_v33 }
 0x265   : > { %1016 = vmatmul.mubr.bf16.gmra.mrb[8].mxu1 %v4919_v28  ;;  %v1223_v28 = vld [vmem:[#allocation8 + $0x110] sm:$0xff] }
 0x266   : > { %1025 = vmatprep.mubr.bf16.mxu1 %v4920_v1  ;;  %1679 = vmatpush1.bf16.msra.mxu1 %v4925_v34  ;;  %v1159_v1 = vld [vmem:[#allocation8 + $0x18] sm:$0xff] }
 0x267   : > { %1680 = vmatprep.subr.bf16.mxu1 %v4926_v36 }
 0x26a   : > { %1681 = vmatpush1.bf16.msra.mxu1 %v4928_v39 }
 0x26b   : > { %1682 = vmatprep.subr.bf16.mxu1 %v4929_v40 }
 0x26d   : > { %1026 = vmatmul.mubr.bf16.gmra.mrb[12].mxu1 %v4922_v30  ;;  %v1224_v30 = vld [vmem:[#allocation8 + $0x118] sm:$0xff] }
 0x26e   : > { %1035 = vmatprep.mubr.bf16.mxu1 %v4923_v33  ;;  %1683 = vmatpush1.bf16.msra.mxu1 %v4931_v41 }
 0x26f   : > { %1684 = vmatprep.subr.bf16.mxu1 %v4932_v43 }
 0x272   : > { %1685 = vmatpush1.bf16.msra.mxu1 %v4934_v46 }
 0x273   : > { %1686 = vmatprep.subr.bf16.mxu1 %v4935_v47 }
 0x275   : > { %1036 = vmatmul.mubr.bf16.gmra.mrb[16].mxu1 %v4925_v34 }
 0x276   : > { %1045 = vmatprep.mubr.bf16.mxu1 %v4926_v36  ;;  %1687 = vmatpush1.bf16.msra.mxu1 %v4937_v49 }
 0x277   : > { %1688 = vmatprep.subr.bf16.mxu1 %v4938_v51 }
 0x27a   : > { %1689 = vmatpush1.bf16.msra.mxu1 %v4940_v52 }
 0x27b   : > { %1690 = vmatprep.subr.bf16.mxu1 %v4941_v53 }
 0x27d   : > { %1046 = vmatmul.mubr.bf16.gmra.mrb[20].mxu1 %v4928_v39 }
 0x27e   : > { %1055 = vmatprep.mubr.bf16.mxu1 %v4929_v40  ;;  %1691 = vmatpush1.bf16.msra.mxu1 %v4943_v54 }
 0x27f   : > { %1692 = vmatprep.subr.bf16.mxu1 %v4944_v55 }
 0x282   : > { %1693 = vmatpush1.bf16.msra.mxu1 %v4946_v56 }
 0x283   : > { %1694 = vmatprep.subr.bf16.mxu1 %v4947_v57 }
 0x285   : > { %1056 = vmatmul.mubr.bf16.gmra.mrb[24].mxu1 %v4931_v41 }
 0x286   : > { %1065 = vmatprep.mubr.bf16.mxu1 %v4932_v43  ;;  %1695 = vmatpush1.bf16.msra.mxu1 %v4949_v58 }
 0x287   : > { %1696 = vmatprep.subr.bf16.mxu1 %v4950_v59 }
 0x28a   : > { %1697 = vmatpush1.bf16.msra.mxu1 %v4952_v60 }
 0x28b   : > { %1698 = vmatprep.subr.bf16.mxu1 %v4953_v61 }
 0x28d   : > { %1066 = vmatmul.mubr.bf16.gmra.mrb[28].mxu1 %v4934_v46 }
 0x28e   : > { %1075 = vmatprep.mubr.bf16.mxu1 %v4935_v47  ;;  %1699 = vmatpush1.bf16.msra.mxu1 %v4955_v62 }
 0x28f   : > { %1700 = vmatprep.subr.bf16.mxu1 %v4956_v63 }
 0x292   : > { %1701 = vmatpush1.bf16.msra.mxu1 %v4958_v2 }
 0x295   : > { %1076 = vmatmul.mubr.bf16.gmra.mrb[32].mxu1 %v4937_v49 }
 0x296   : > { %1085 = vmatprep.mubr.bf16.mxu1 %v4938_v51 }
 0x29d   : > { %1086 = vmatmul.mubr.bf16.gmra.mrb[36].mxu1 %v4940_v52 }
 0x29e   : > { %1095 = vmatprep.mubr.bf16.mxu1 %v4941_v53 }
 0x2a5   : > { %1096 = vmatmul.mubr.bf16.gmra.mrb[40].mxu1 %v4943_v54 }
 0x2a6   : > { %1105 = vmatprep.mubr.bf16.mxu1 %v4944_v55 }
 0x2ad   : > { %1106 = vmatmul.mubr.bf16.gmra.mrb[44].mxu1 %v4946_v56 }
 0x2ae   : > { %1115 = vmatprep.mubr.bf16.mxu1 %v4947_v57 }
 0x2b5   : > { %1116 = vmatmul.mubr.bf16.gmra.mrb[48].mxu1 %v4949_v58 }
 0x2b6   : > { %1125 = vmatprep.mubr.bf16.mxu1 %v4950_v59 }
 0x2bd   : > { %1126 = vmatmul.mubr.bf16.gmra.mrb[52].mxu1 %v4952_v60 }
 0x2be   : > { %1135 = vmatprep.mubr.bf16.mxu1 %v4953_v61  ;;  %v1160_v61 = vld [vmem:[#allocation8 + $0x20] sm:$0xff] }
 0x2c5   : > { %1136 = vmatmul.mubr.bf16.gmra.mrb[56].mxu1 %v4955_v62  ;;  %v1225_v62 = vld [vmem:[#allocation8 + $0x120] sm:$0xff] }
 0x2c6   : > { %1145 = vmatprep.mubr.bf16.mxu1 %v4956_v63 }
 0x2cd   : > { %1146 = vmatmul.mubr.bf16.gmra.mrb[60].mxu1 %v4958_v2 }
 0x328   : > { %v997_v3 = vpop.f32.mrb[0].mxu1 }
 0x329   : > { %v999_v9 = vpop.f32.mrb[1].mxu1  ;;  %v1188_v33 = vmul.f32 %v1156_v0, %v997_v3  ;;  %v1317_v34 = vmul.f32 %v1221_v20, %v997_v3 }
 0x32a   : > { %v1001_v15 = vpop.f32.mrb[2].mxu1  ;;  %v1189_v36 = vmul.f32 %v1157_v23, %v999_v9  ;;  %v1318_v39 = vmul.f32 %v1222_v24, %v999_v9 }
 0x32b   : > { %v1003_v25 = vpop.f32.mrb[3].mxu1  ;;  %v1190_v41 = vmul.f32 %v1158_v26, %v1001_v15  ;;  %v1319_v43 = vmul.f32 %v1223_v28, %v1001_v15  ;;  %v1161_v15 = vld [vmem:[#allocation8 + $0x28] sm:$0xff] }
 0x32c   : > { %v1191_v51 = vmul.f32 %v1159_v1, %v1003_v25  ;;  %v1320_v52 = vmul.f32 %v1224_v30, %v1003_v25 }
 0x330   : > { %v6309_v29 = vpop.f32.mrb[4].mxu1 }
 0x331   : > { %v6311_v31 = vpop.f32.mrb[5].mxu1 }
 0x332   : > { %v6313_v22 = vpop.f32.mrb[6].mxu1 }
 0x333   : > { %v6315_v35 = vpop.f32.mrb[7].mxu1 }
 0x338   : > { %v6317_v37 = vpop.f32.mrb[8].mxu1 }
 0x339   : > { %v6319_v42 = vpop.f32.mrb[9].mxu1 }
 0x33a   : > { %v6321_v44 = vpop.f32.mrb[10].mxu1 }
 0x33b   : > { %v6323_v48 = vpop.f32.mrb[11].mxu1 }
 0x340   : > { %v6325_v27 = vpop.f32.mrb[12].mxu1 }
 0x341   : > { %v6327_v50 = vpop.f32.mrb[13].mxu1 }
 0x342   : > { %v6329_v4 = vpop.f32.mrb[14].mxu1 }
 0x343   : > { %v6331_v5 = vpop.f32.mrb[15].mxu1 }
 0x348   : > { %v6333_v6 = vpop.f32.mrb[16].mxu1 }
 0x349   : > { %v6335_v7 = vpop.f32.mrb[17].mxu1 }
 0x34a   : > { %v6337_v32 = vpop.f32.mrb[18].mxu1 }
 0x34b   : > { %v6339_v8 = vpop.f32.mrb[19].mxu1 }
 0x350   : > { %v6341_v10 = vpop.f32.mrb[20].mxu1 }
 0x351   : > { %v6343_v11 = vpop.f32.mrb[21].mxu1 }
 0x352   : > { %v6345_v12 = vpop.f32.mrb[22].mxu1 }
 0x353   : > { %v6347_v13 = vpop.f32.mrb[23].mxu1 }
 0x358   : > { %v6349_v38 = vpop.f32.mrb[24].mxu1 }
 0x359   : > { %v6351_v14 = vpop.f32.mrb[25].mxu1 }
 0x35a   : > { %v6353_v16 = vpop.f32.mrb[26].mxu1 }
 0x35b   : > { %v6355_v45 = vpop.f32.mrb[27].mxu1 }
 0x360   : > { %v6357_v17 = vpop.f32.mrb[28].mxu1 }
 0x361   : > { %v6359_v18 = vpop.f32.mrb[29].mxu1 }
 0x362   : > { %v6361_v19 = vpop.f32.mrb[30].mxu1 }
 0x363   : > { %v6363_v21 = vpop.f32.mrb[31].mxu1 }
 0x368   : > { %v1077_v40 = vpop.f32.mrb[32].mxu1 }
 0x369   : > { %v1253_v46 = vmul.f32 %v1221_v20, %v1077_v40  ;;  %v1349_v47 = vmul.f32 %v1156_v0, %v1077_v40  ;;  %v1079_v49 = vpop.f32.mrb[33].mxu1  ;;  %v1226_v0 = vld [vmem:[#allocation8 + $0x128] sm:$0xff]  ;;  %v1163_v40 = vld [vmem:[#allocation8 + $0x38] sm:$0xff] }
 0x36a   : > { %v1254_v53 = vmul.f32 %v1222_v24, %v1079_v49  ;;  %v1350_v54 = vmul.f32 %v1157_v23, %v1079_v49  ;;  %v1081_v55 = vpop.f32.mrb[34].mxu1  ;;  %v1162_v23 = vld [vmem:[#allocation8 + $0x30] sm:$0xff] }
 0x36b   : > { %v1285_v56 = vsub.f32 %v1188_v33, %v1253_v46  ;;  %v6365_v57 = vadd.f32 %v1349_v47, %v1317_v34  ;;  %v1255_v58 = vmul.f32 %v1223_v28, %v1081_v55  ;;  %v1351_v59 = vmul.f32 %v1158_v26, %v1081_v55  ;;  %v1083_v60 = vpop.f32.mrb[35].mxu1  ;;  %v1227_v24 = vld [vmem:[#allocation8 + $0x130] sm:$0xff] }
 0x36c   : > { %v1286_v63 = vsub.f32 %v1189_v36, %v1254_v53  ;;  %v6367_v2 = vadd.f32 %v1350_v54, %v1318_v39  ;;  %v1256_v3 = vmul.f32 %v1224_v30, %v1083_v60  ;;  %v1352_v9 = vmul.f32 %v1159_v1, %v1083_v60  ;;  %v1228_v36 = vld [vmem:[#allocation8 + $0x138] sm:$0xff]  ;;  %v1165_v1 = vld [vmem:[#allocation8 + $0x48] sm:$0xff] }
 0x36d   : > { %v1287_v20 = vsub.f32 %v1190_v41, %v1255_v58  ;;  %v6369_v25 = vadd.f32 %v1351_v59, %v1319_v43  ;;  %v1192_v26 = vmul.f32 %v1160_v61, %v6309_v29  ;;  %v1321_v28 = vmul.f32 %v1225_v62, %v6309_v29 }
 0x36e   : > { %v1288_v33 = vsub.f32 %v1191_v51, %v1256_v3  ;;  %v6371_v34 = vadd.f32 %v1352_v9, %v1320_v52  ;;  %v1193_v30 = vmul.f32 %v1161_v15, %v6311_v31  ;;  %v1322_v41 = vmul.f32 %v1226_v0, %v6311_v31 }
 0x36f   : > { %v1413_v39 = vpack.c.bf16 %v1287_v20, %v1285_v56  ;;  %v1194_v49 = vmul.f32 %v1162_v23, %v6313_v22  ;;  %v1323_v51 = vmul.f32 %v1227_v24, %v6313_v22  ;;  %v1195_v54 = vmul.f32 %v1163_v40, %v6315_v35  ;;  %v1164_v20 = vld [vmem:[#allocation8 + $0x40] sm:$0xff] }
 0x370   : > { %v1087_v43 = vpop.f32.mrb[36].mxu1  ;;  %v1414_v46 = vpack.c.bf16 %v1288_v33, %v1286_v63  ;;  %v1430_v47 = vpack.c.bf16 %v6371_v34, %v6367_v2  ;;  %v1324_v55 = vmul.f32 %v1228_v36, %v6315_v35  ;;  %v1229_v22 = vld [vmem:[#allocation8 + $0x140] sm:$0xff]  ;;  %v1230_v35 = vld [vmem:[#allocation8 + $0x148] sm:$0xff] }
 0x371   : > { %v1257_v29 = vmul.f32 %v1225_v62, %v1087_v43  ;;  %v1353_v52 = vmul.f32 %v1160_v61, %v1087_v43  ;;  %v1089_v53 = vpop.f32.mrb[37].mxu1 }
 0x372   : > { %v1258_v56 = vmul.f32 %v1226_v0, %v1089_v53  ;;  %v1354_v58 = vmul.f32 %v1161_v15, %v1089_v53  ;;  %v1091_v59 = vpop.f32.mrb[38].mxu1  ;;  %1445 = vmatprep.subr.bf16.mxu0 %v1414_v46  ;;  %v1166_v46 = vld [vmem:[#allocation8 + $0x50] sm:$0xff]  ;;  %v1169_v53 = vld [vmem:[#allocation8 + $0x68] sm:$0xff] }
 0x373   : > { %v1289_v31 = vsub.f32 %v1192_v26, %v1257_v29  ;;  %v6385_v60 = vadd.f32 %v1353_v52, %v1321_v28  ;;  %v1259_v63 = vmul.f32 %v1227_v24, %v1091_v59  ;;  %v1355_v3 = vmul.f32 %v1162_v23, %v1091_v59  ;;  %v1093_v9 = vpop.f32.mrb[39].mxu1  ;;  %1446 = vmatpush1.bf16.msra.mxu0 %v1413_v39  ;;  %v1231_v26 = vld [vmem:[#allocation8 + $0x150] sm:$0xff]  ;;  %v1167_v39 = vld [vmem:[#allocation8 + $0x58] sm:$0xff] }
 0x374   : > { %v1290_v62 = vsub.f32 %v1193_v30, %v1258_v56  ;;  %v6387_v61 = vadd.f32 %v1354_v58, %v1322_v41  ;;  %v1260_v33 = vmul.f32 %v1228_v36, %v1093_v9  ;;  %v1356_v43 = vmul.f32 %v1163_v40, %v1093_v9  ;;  %v1232_v30 = vld [vmem:[#allocation8 + $0x158] sm:$0xff] }
 0x375   : > { %v1291_v0 = vsub.f32 %v1194_v49, %v1259_v63  ;;  %v6389_v15 = vadd.f32 %v1355_v3, %v1323_v51  ;;  %v1196_v23 = vmul.f32 %v1164_v20, %v6317_v37  ;;  %v1325_v24 = vmul.f32 %v1229_v22, %v6317_v37 }
 0x376   : > { %v1292_v28 = vsub.f32 %v1195_v54, %v1260_v33  ;;  %v6391_v29 = vadd.f32 %v1356_v43, %v1324_v55  ;;  %v1197_v36 = vmul.f32 %v1165_v1, %v6319_v42  ;;  %v1326_v49 = vmul.f32 %v1230_v35, %v6319_v42 }
 0x377   : > { %v1415_v41 = vpack.c.bf16 %v1291_v0, %v1289_v31  ;;  %v1198_v54 = vmul.f32 %v1166_v46, %v6321_v44  ;;  %v1327_v55 = vmul.f32 %v1231_v26, %v6321_v44  ;;  %v1199_v59 = vmul.f32 %v1167_v39, %v6323_v48  ;;  %v1233_v44 = vld [vmem:[#allocation8 + $0x160] sm:$0xff] }
 0x378   : > { %v1097_v51 = vpop.f32.mrb[40].mxu1  ;;  %v1416_v52 = vpack.c.bf16 %v1292_v28, %v1290_v62  ;;  %v1328_v31 = vmul.f32 %v1232_v30, %v6323_v48  ;;  %v1168_v28 = vld [vmem:[#allocation8 + $0x60] sm:$0xff]  ;;  %v1234_v48 = vld [vmem:[#allocation8 + $0x168] sm:$0xff] }
 0x379   : > { %v1261_v37 = vmul.f32 %v1229_v22, %v1097_v51  ;;  %v1357_v56 = vmul.f32 %v1164_v20, %v1097_v51  ;;  %v1099_v58 = vpop.f32.mrb[41].mxu1 }
 0x37a   : > { %v1262_v63 = vmul.f32 %v1230_v35, %v1099_v58  ;;  %v1358_v3 = vmul.f32 %v1165_v1, %v1099_v58  ;;  %v1101_v9 = vpop.f32.mrb[42].mxu1  ;;  %1447 = vmatprep.subr.bf16.mxu0 %v1416_v52  ;;  %v1170_v52 = vld [vmem:[#allocation8 + $0x70] sm:$0xff] }
 0x37b   : > { %v1293_v42 = vsub.f32 %v1196_v23, %v1261_v37  ;;  %v6405_v62 = vadd.f32 %v1357_v56, %v1325_v24  ;;  %v1263_v33 = vmul.f32 %v1231_v26, %v1101_v9  ;;  %v1359_v43 = vmul.f32 %v1166_v46, %v1101_v9  ;;  %v1103_v0 = vpop.f32.mrb[43].mxu1  ;;  %1448 = vmatpush1.bf16.msra.mxu0 %v1415_v41  ;;  %v1235_v23 = vld [vmem:[#allocation8 + $0x170] sm:$0xff]  ;;  %v1171_v41 = vld [vmem:[#allocation8 + $0x78] sm:$0xff] }
 0x37c   : > { %v1294_v22 = vsub.f32 %v1197_v36, %v1262_v63  ;;  %v6407_v20 = vadd.f32 %v1358_v3, %v1326_v49  ;;  %v1264_v51 = vmul.f32 %v1232_v30, %v1103_v0  ;;  %v1360_v40 = vmul.f32 %v1167_v39, %v1103_v0  ;;  %v1236_v36 = vld [vmem:[#allocation8 + $0x178] sm:$0xff] }
 0x37d   : > { %v1295_v35 = vsub.f32 %v1198_v54, %v1263_v33  ;;  %v6409_v1 = vadd.f32 %v1359_v43, %v1327_v55  ;;  %v1200_v46 = vmul.f32 %v1168_v28, %v6325_v27  ;;  %v1329_v26 = vmul.f32 %v1233_v44, %v6325_v27 }
 0x37e   : > { %v1296_v24 = vsub.f32 %v1199_v59, %v1264_v51  ;;  %v6411_v37 = vadd.f32 %v1360_v40, %v1328_v31  ;;  %v1201_v30 = vmul.f32 %v1169_v53, %v6327_v50  ;;  %v1330_v54 = vmul.f32 %v1234_v48, %v6327_v50  ;;  %v1173_v40 = vld [vmem:[#allocation8 + $0x88] sm:$0xff] }
 0x37f   : > { %v1417_v49 = vpack.c.bf16 %v1295_v35, %v1293_v42  ;;  %v1202_v58 = vmul.f32 %v1170_v52, %v6329_v4  ;;  %v1331_v59 = vmul.f32 %v1235_v23, %v6329_v4  ;;  %v1203_v3 = vmul.f32 %v1171_v41, %v6331_v5  ;;  %v1237_v4 = vld [vmem:[#allocation8 + $0x180] sm:$0xff] }
 0x380   : > { %v1107_v55 = vpop.f32.mrb[44].mxu1  ;;  %v1418_v56 = vpack.c.bf16 %v1296_v24, %v1294_v22  ;;  %v1332_v9 = vmul.f32 %v1236_v36, %v6331_v5  ;;  %v1172_v24 = vld [vmem:[#allocation8 + $0x80] sm:$0xff]  ;;  %v1238_v5 = vld [vmem:[#allocation8 + $0x188] sm:$0xff]  ;;  %v8216_v2 = vpack.c.bf16 %v6409_v1, %v6405_v62  ;;  %v4961_v62 = vld [vmem:[#allocation7 + $0x10] ss:$8 sps:$4 sm:$0xff]  }
 0x381   : > { %v1265_v27 = vmul.f32 %v1233_v44, %v1107_v55  ;;  %v1361_v31 = vmul.f32 %v1168_v28, %v1107_v55  ;;  %v1109_v63 = vpop.f32.mrb[45].mxu1  ;;  %v4963_v1 = vld [vmem:[#allocation7 + $0x20] ss:$8 sps:$4 sm:$0xff]  }
 0x382   : > { %v1266_v42 = vmul.f32 %v1234_v48, %v1109_v63  ;;  %v1362_v33 = vmul.f32 %v1169_v53, %v1109_v63  ;;  %v1111_v43 = vpop.f32.mrb[46].mxu1  ;;  %1449 = vmatprep.subr.bf16.mxu0 %v1418_v56  ;;  %v1174_v56 = vld [vmem:[#allocation8 + $0x90] sm:$0xff] }
 0x383   : > { %v1297_v50 = vsub.f32 %v1200_v46, %v1265_v27  ;;  %v6425_v0 = vadd.f32 %v1361_v31, %v1329_v26  ;;  %v1267_v22 = vmul.f32 %v1235_v23, %v1111_v43  ;;  %v1363_v51 = vmul.f32 %v1170_v52, %v1111_v43  ;;  %v1113_v35 = vpop.f32.mrb[47].mxu1  ;;  %1450 = vmatpush1.bf16.msra.mxu0 %v1417_v49  ;;  %v1239_v46 = vld [vmem:[#allocation8 + $0x190] sm:$0xff]  ;;  %v1175_v49 = vld [vmem:[#allocation8 + $0x98] sm:$0xff] }
 0x384   : > { %v1298_v44 = vsub.f32 %v1201_v30, %v1266_v42  ;;  %v6427_v28 = vadd.f32 %v1362_v33, %v1330_v54  ;;  %v1268_v55 = vmul.f32 %v1236_v36, %v1113_v35  ;;  %v1364_v39 = vmul.f32 %v1171_v41, %v1113_v35  ;;  %v1240_v30 = vld [vmem:[#allocation8 + $0x198] sm:$0xff] }
 0x385   : > { %v1299_v48 = vsub.f32 %v1202_v58, %v1267_v22  ;;  %v6429_v53 = vadd.f32 %v1363_v51, %v1331_v59  ;;  %v1204_v52 = vmul.f32 %v1172_v24, %v6333_v6  ;;  %v1333_v23 = vmul.f32 %v1237_v4, %v6333_v6 }
 0x386   : > { %v1300_v26 = vsub.f32 %v1203_v3, %v1268_v55  ;;  %v6431_v27 = vadd.f32 %v1364_v39, %v1332_v9  ;;  %v1205_v36 = vmul.f32 %v1173_v40, %v6335_v7  ;;  %v1334_v58 = vmul.f32 %v1238_v5, %v6335_v7  ;;  %v1177_v39 = vld [vmem:[#allocation8 + $0xa8] sm:$0xff] }
 0x387   : > { %v1419_v54 = vpack.c.bf16 %v1299_v48, %v1297_v50  ;;  %v1206_v63 = vmul.f32 %v1174_v56, %v6337_v32  ;;  %v1335_v3 = vmul.f32 %v1239_v46, %v6337_v32  ;;  %v1207_v33 = vmul.f32 %v1175_v49, %v6339_v8  ;;  %v1241_v32 = vld [vmem:[#allocation8 + $0x1a0] sm:$0xff] }
 0x388   : > { %v1117_v59 = vpop.f32.mrb[48].mxu1  ;;  %v1420_v31 = vpack.c.bf16 %v1300_v26, %v1298_v44  ;;  %v1336_v43 = vmul.f32 %v1240_v30, %v6339_v8  ;;  %v1176_v26 = vld [vmem:[#allocation8 + $0xa0] sm:$0xff]  ;;  %v1242_v8 = vld [vmem:[#allocation8 + $0x1a8] sm:$0xff] }
 0x389   : > { %v1269_v6 = vmul.f32 %v1237_v4, %v1117_v59  ;;  %v1365_v9 = vmul.f32 %v1172_v24, %v1117_v59  ;;  %v1119_v42 = vpop.f32.mrb[49].mxu1 }
 0x38a   : > { %v1270_v50 = vmul.f32 %v1238_v5, %v1119_v42  ;;  %v1366_v22 = vmul.f32 %v1173_v40, %v1119_v42  ;;  %v1121_v51 = vpop.f32.mrb[50].mxu1  ;;  %1451 = vmatprep.subr.bf16.mxu0 %v1420_v31  ;;  %v1178_v31 = vld [vmem:[#allocation8 + $0xb0] sm:$0xff] }
 0x38b   : > { %v1301_v7 = vsub.f32 %v1204_v52, %v1269_v6  ;;  %v6445_v35 = vadd.f32 %v1365_v9, %v1333_v23  ;;  %v1271_v44 = vmul.f32 %v1239_v46, %v1121_v51  ;;  %v1367_v55 = vmul.f32 %v1174_v56, %v1121_v51  ;;  %v1123_v48 = vpop.f32.mrb[51].mxu1  ;;  %1452 = vmatpush1.bf16.msra.mxu0 %v1419_v54  ;;  %v1243_v52 = vld [vmem:[#allocation8 + $0x1b0] sm:$0xff]  ;;  %v1179_v54 = vld [vmem:[#allocation8 + $0xb8] sm:$0xff] }
 0x38c   : > { %v1302_v4 = vsub.f32 %v1205_v36, %v1270_v50  ;;  %v6447_v24 = vadd.f32 %v1366_v22, %v1334_v58  ;;  %v1272_v59 = vmul.f32 %v1240_v30, %v1123_v48  ;;  %v1368_v41 = vmul.f32 %v1175_v49, %v1123_v48  ;;  %v1244_v36 = vld [vmem:[#allocation8 + $0x1b8] sm:$0xff] }
 0x38d   : > { %v1303_v5 = vsub.f32 %v1206_v63, %v1271_v44  ;;  %v6449_v40 = vadd.f32 %v1367_v55, %v1335_v3  ;;  %v1208_v56 = vmul.f32 %v1176_v26, %v6341_v10  ;;  %v1337_v46 = vmul.f32 %v1241_v32, %v6341_v10 }
 0x38e   : > { %v1304_v23 = vsub.f32 %v1207_v33, %v1272_v59  ;;  %v6451_v6 = vadd.f32 %v1368_v41, %v1336_v43  ;;  %v1209_v30 = vmul.f32 %v1177_v39, %v6343_v11  ;;  %v1338_v63 = vmul.f32 %v1242_v8, %v6343_v11  ;;  %v1181_v41 = vld [vmem:[#allocation8 + $0xc8] sm:$0xff] }
 0x38f   : > { %v1421_v58 = vpack.c.bf16 %v1303_v5, %v1301_v7  ;;  %v1210_v42 = vmul.f32 %v1178_v31, %v6345_v12  ;;  %v1339_v33 = vmul.f32 %v1243_v52, %v6345_v12  ;;  %v1211_v22 = vmul.f32 %v1179_v54, %v6347_v13  ;;  %v1245_v12 = vld [vmem:[#allocation8 + $0x1c0] sm:$0xff] }
 0x390   : > { %v1127_v3 = vpop.f32.mrb[52].mxu1  ;;  %v1422_v9 = vpack.c.bf16 %v1304_v23, %v1302_v4  ;;  %v1340_v51 = vmul.f32 %v1244_v36, %v6347_v13  ;;  %v1180_v23 = vld [vmem:[#allocation8 + $0xc0] sm:$0xff]  ;;  %v1246_v13 = vld [vmem:[#allocation8 + $0x1c8] sm:$0xff]  ;;  %v8219_v34 = vpack.c.bf16 %v6451_v6, %v6447_v24  ;;  %v4972_v6 = vld [vmem:[#allocation7 + $0x74] ss:$8 sps:$4 sm:$0xff]  }
 0x391   : > { %v1273_v10 = vmul.f32 %v1241_v32, %v1127_v3  ;;  %v1369_v43 = vmul.f32 %v1176_v26, %v1127_v3  ;;  %v1129_v50 = vpop.f32.mrb[53].mxu1  ;;  %v4970_v24 = vld [vmem:[#allocation7 + $0x64] ss:$8 sps:$4 sm:$0xff]  }
 0x392   : > { %v1274_v7 = vmul.f32 %v1242_v8, %v1129_v50  ;;  %v1370_v44 = vmul.f32 %v1177_v39, %v1129_v50  ;;  %v1131_v55 = vpop.f32.mrb[54].mxu1  ;;  %1453 = vmatprep.subr.bf16.mxu0 %v1422_v9  ;;  %v1182_v9 = vld [vmem:[#allocation8 + $0xd0] sm:$0xff] }
 0x393   : > { %v1305_v11 = vsub.f32 %v1208_v56, %v1273_v10  ;;  %v6465_v48 = vadd.f32 %v1369_v43, %v1337_v46  ;;  %v1275_v4 = vmul.f32 %v1243_v52, %v1131_v55  ;;  %v1371_v59 = vmul.f32 %v1178_v31, %v1131_v55  ;;  %v1133_v5 = vpop.f32.mrb[55].mxu1  ;;  %1454 = vmatpush1.bf16.msra.mxu0 %v1421_v58  ;;  %v1247_v56 = vld [vmem:[#allocation8 + $0x1d0] sm:$0xff]  ;;  %v1183_v58 = vld [vmem:[#allocation8 + $0xd8] sm:$0xff] }
 0x394   : > { %v1306_v32 = vsub.f32 %v1209_v30, %v1274_v7  ;;  %v6467_v26 = vadd.f32 %v1370_v44, %v1338_v63  ;;  %v1276_v3 = vmul.f32 %v1244_v36, %v1133_v5  ;;  %v1372_v49 = vmul.f32 %v1179_v54, %v1133_v5  ;;  %v1248_v30 = vld [vmem:[#allocation8 + $0x1d8] sm:$0xff] }
 0x395   : > { %v1307_v8 = vsub.f32 %v1210_v42, %v1275_v4  ;;  %v6469_v39 = vadd.f32 %v1371_v59, %v1339_v33  ;;  %v1212_v31 = vmul.f32 %v1180_v23, %v6349_v38  ;;  %v1341_v52 = vmul.f32 %v1245_v12, %v6349_v38 }
 0x396   : > { %v1308_v46 = vsub.f32 %v1211_v22, %v1276_v3  ;;  %v6471_v10 = vadd.f32 %v1372_v49, %v1340_v51  ;;  %v1213_v36 = vmul.f32 %v1181_v41, %v6351_v14  ;;  %v1342_v42 = vmul.f32 %v1246_v13, %v6351_v14  ;;  %v1185_v49 = vld [vmem:[#allocation8 + $0xe8] sm:$0xff] }
 0x397   : > { %v1423_v63 = vpack.c.bf16 %v1307_v8, %v1305_v11  ;;  %v1214_v50 = vmul.f32 %v1182_v9, %v6353_v16  ;;  %v1343_v22 = vmul.f32 %v1247_v56, %v6353_v16  ;;  %v1215_v44 = vmul.f32 %v1183_v58, %v6355_v45  ;;  %v1249_v16 = vld [vmem:[#allocation8 + $0x1e0] sm:$0xff] }
 0x398   : > { %v1137_v33 = vpop.f32.mrb[56].mxu1  ;;  %v1424_v43 = vpack.c.bf16 %v1308_v46, %v1306_v32  ;;  %v1344_v55 = vmul.f32 %v1248_v30, %v6355_v45  ;;  %v1184_v46 = vld [vmem:[#allocation8 + $0xe0] sm:$0xff]  ;;  %v1250_v45 = vld [vmem:[#allocation8 + $0x1e8] sm:$0xff] }
 0x399   : > { %v1277_v38 = vmul.f32 %v1245_v12, %v1137_v33  ;;  %v1373_v51 = vmul.f32 %v1180_v23, %v1137_v33  ;;  %v1139_v7 = vpop.f32.mrb[57].mxu1 }
 0x39a   : > { %v1278_v11 = vmul.f32 %v1246_v13, %v1139_v7  ;;  %v1374_v4 = vmul.f32 %v1181_v41, %v1139_v7  ;;  %v1141_v59 = vpop.f32.mrb[58].mxu1  ;;  %1455 = vmatprep.subr.bf16.mxu0 %v1424_v43  ;;  %v1186_v7 = vld [vmem:[#allocation8 + $0xf0] sm:$0xff] }
 0x39b   : > { %v1309_v14 = vsub.f32 %v1212_v31, %v1277_v38  ;;  %v6485_v5 = vadd.f32 %v1373_v51, %v1341_v52  ;;  %v1279_v32 = vmul.f32 %v1247_v56, %v1141_v59  ;;  %v1375_v3 = vmul.f32 %v1182_v9, %v1141_v59  ;;  %v1143_v8 = vpop.f32.mrb[59].mxu1  ;;  %1456 = vmatpush1.bf16.msra.mxu0 %v1423_v63  ;;  %v1251_v43 = vld [vmem:[#allocation8 + $0x1f0] sm:$0xff]  ;;  %v1187_v63 = vld [vmem:[#allocation8 + $0xf8] sm:$0xff] }
 0x39c   : > { %v1310_v12 = vsub.f32 %v1213_v36, %v1278_v11  ;;  %v6487_v23 = vadd.f32 %v1374_v4, %v1342_v42  ;;  %v1280_v33 = vmul.f32 %v1248_v30, %v1143_v8  ;;  %v1376_v54 = vmul.f32 %v1183_v58, %v1143_v8  ;;  %v1252_v38 = vld [vmem:[#allocation8 + $0x1f8] sm:$0xff] }
 0x39d   : > { %v1311_v13 = vsub.f32 %v1214_v50, %v1279_v32  ;;  %v1407_v41 = vadd.f32 %v1375_v3, %v1343_v22  ;;  %v1216_v56 = vmul.f32 %v1184_v46, %v6357_v17  ;;  %v1345_v9 = vmul.f32 %v1249_v16, %v6357_v17 }
 0x39e   : > { %v1312_v31 = vsub.f32 %v1215_v44, %v1280_v33  ;;  %v1408_v52 = vadd.f32 %v1376_v54, %v1344_v55  ;;  %v1217_v30 = vmul.f32 %v1185_v49, %v6359_v18  ;;  %v1346_v58 = vmul.f32 %v1250_v45, %v6359_v18 }
 0x39f   : > { %v1425_v51 = vpack.c.bf16 %v1311_v13, %v1309_v14  ;;  %v1441_v36 = vpack.c.bf16 %v1407_v41, %v6485_v5  ;;  %v1218_v44 = vmul.f32 %v1186_v7, %v6361_v19  ;;  %v1347_v54 = vmul.f32 %v1251_v43, %v6361_v19 }
 0x3a0   : > { %v1147_v42 = vpop.f32.mrb[60].mxu1  ;;  %v1426_v50 = vpack.c.bf16 %v1312_v31, %v1310_v12  ;;  %v1442_v22 = vpack.c.bf16 %v1408_v52, %v6487_v23  ;;  %v1219_v4 = vmul.f32 %v1187_v63, %v6363_v21  ;;  %v1348_v59 = vmul.f32 %v1252_v38, %v6363_v21 }
 0x3a1   : > { %v1281_v55 = vmul.f32 %v1249_v16, %v1147_v42  ;;  %v1377_v11 = vmul.f32 %v1184_v46, %v1147_v42  ;;  %v1149_v17 = vpop.f32.mrb[61].mxu1 }
 0x3a2   : > { %v1282_v14 = vmul.f32 %v1250_v45, %v1149_v17  ;;  %v1378_v5 = vmul.f32 %v1185_v49, %v1149_v17  ;;  %v1151_v32 = vpop.f32.mrb[62].mxu1  ;;  %1457 = vmatprep.subr.bf16.mxu0 %v1426_v50  ;;  %v4983_v50 = vld [vmem:[#allocation7 + $0xc0] ss:$8 sps:$4 sm:$0xff]   ;;  %v4989_v17 = vld [vmem:[#allocation7 + $0xf0] ss:$8 sps:$4 sm:$0xff]  }
 0x3a3   : > { %v1313_v18 = vsub.f32 %v1216_v56, %v1281_v55  ;;  %v1409_v3 = vadd.f32 %v1377_v11, %v1345_v9  ;;  %v1283_v8 = vmul.f32 %v1251_v43, %v1151_v32  ;;  %v1379_v12 = vmul.f32 %v1186_v7, %v1151_v32  ;;  %v1153_v23 = vpop.f32.mrb[63].mxu1  ;;  %1458 = vmatpush1.bf16.msra.mxu0 %v1425_v51  ;;  %v4979_v51 = vld [vmem:[#allocation7 + $0xa0] ss:$8 sps:$4 sm:$0xff]   ;;  %v4988_v11 = vld [vmem:[#allocation7 + $0xf4] ss:$8 sps:$4 sm:$0xff]  }
 0x3a4   : > { %v1314_v33 = vsub.f32 %v1217_v30, %v1282_v14  ;;  %v1410_v13 = vadd.f32 %v1378_v5, %v1346_v58  ;;  %v1284_v19 = vmul.f32 %v1252_v38, %v1153_v23  ;;  %v1380_v16 = vmul.f32 %v1187_v63, %v1153_v23  ;;  %v4977_v63 = vld [vmem:[#allocation7 + $0x90] ss:$8 sps:$4 sm:$0xff]   ;;  %v4978_v38 = vld [vmem:[#allocation7 + $0xa4] ss:$8 sps:$4 sm:$0xff]   ;;  %v4987_v55 = vld [vmem:[#allocation7 + $0xe0] ss:$8 sps:$4 sm:$0xff]  }
 0x3a5   : > { %v1315_v46 = vsub.f32 %v1218_v44, %v1283_v8  ;;  %v1411_v41 = vadd.f32 %v1379_v12, %v1347_v54  ;;  %v8212_v7 = vpack.c.bf16 %v6369_v25, %v6365_v57  ;;  %v8213_v43 = vpack.c.bf16 %v6391_v29, %v6387_v61  ;;  %v4960_v29 = vld [vmem:[#allocation7 + $0x14] ss:$8 sps:$4 sm:$0xff]   ;;  %v4981_v30 = vld [vmem:[#allocation7 + $0xb0] ss:$8 sps:$4 sm:$0xff]   ;;  %v4982_v58 = vld [vmem:[#allocation7 + $0xc4] ss:$8 sps:$4 sm:$0xff]  }
 0x3a6   : > { %v1316_v31 = vsub.f32 %v1219_v4, %v1284_v19  ;;  %v1412_v52 = vadd.f32 %v1380_v16, %v1348_v59  ;;  %v8214_v56 = vpack.c.bf16 %v6389_v15, %v6385_v60  ;;  %v8215_v9 = vpack.c.bf16 %v6411_v37, %v6407_v20  ;;  %v4959_v15 = vld [vmem:[#allocation7] ss:$8 sps:$4 sm:$0xff]   ;;  %v4962_v20 = vld [vmem:[#allocation7 + $0x24] ss:$8 sps:$4 sm:$0xff]   ;;  %v4964_v37 = vld [vmem:[#allocation7 + $0x34] ss:$8 sps:$4 sm:$0xff]  }
 0x3a7   : > { %v1427_v42 = vpack.c.bf16 %v1315_v46, %v1313_v18  ;;  %v1443_v21 = vpack.c.bf16 %v1411_v41, %v1409_v3  ;;  %v8217_v57 = vpack.c.bf16 %v6431_v27, %v6427_v28  ;;  %v8218_v25 = vpack.c.bf16 %v6429_v53, %v6425_v0  ;;  %v4965_v0 = vld [vmem:[#allocation7 + $0x30] ss:$8 sps:$4 sm:$0xff]   ;;  %v4966_v28 = vld [vmem:[#allocation7 + $0x44] ss:$8 sps:$4 sm:$0xff]   ;;  %v4967_v53 = vld [vmem:[#allocation7 + $0x40] ss:$8 sps:$4 sm:$0xff]  }
 0x3a8   : > { %v1428_v45 = vpack.c.bf16 %v1316_v31, %v1314_v33  ;;  %v1444_v49 = vpack.c.bf16 %v1412_v52, %v1410_v13  ;;  %v8221_v60 = vpack.c.bf16 %v6471_v10, %v6467_v26  ;;  %v8222_v61 = vpack.c.bf16 %v6469_v39, %v6465_v48  ;;  %v4968_v27 = vld [vmem:[#allocation7 + $0x54] ss:$8 sps:$4 sm:$0xff]   ;;  %v4973_v48 = vld [vmem:[#allocation7 + $0x70] ss:$8 sps:$4 sm:$0xff]   ;;  %v4974_v26 = vld [vmem:[#allocation7 + $0x84] ss:$8 sps:$4 sm:$0xff]  }
 0x3a9   : > { %v4975_v39 = vld [vmem:[#allocation7 + $0x80] ss:$8 sps:$4 sm:$0xff]   ;;  %v4976_v10 = vld [vmem:[#allocation7 + $0x94] ss:$8 sps:$4 sm:$0xff]   ;;  %v4985_v44 = vld [vmem:[#allocation7 + $0xd0] ss:$8 sps:$4 sm:$0xff]  }
 0x3aa   : > { %1459 = vmatprep.subr.bf16.mxu0 %v1428_v45  ;;  %v4986_v54 = vld [vmem:[#allocation7 + $0xe4] ss:$8 sps:$4 sm:$0xff]  }
 0x3ab   : > { %1460 = vmatpush1.bf16.msra.mxu0 %v1427_v42 }
 0x3ac   : > { %1461 = vmatprep.subr.bf16.mxu0 %v1430_v47  ;;  %v8220_v47 = vpack.c.bf16 %v6449_v40, %v6445_v35  ;;  %v4969_v35 = vld [vmem:[#allocation7 + $0x50] ss:$8 sps:$4 sm:$0xff]   ;;  %v4971_v40 = vld [vmem:[#allocation7 + $0x60] ss:$8 sps:$4 sm:$0xff]  }
 0x3af   : > { %1462 = vmatpush1.bf16.msra.mxu0 %v8212_v7 }
 0x3b0   : > { %1463 = vmatprep.subr.bf16.mxu0 %v8213_v43 }
 0x3b3   : > { %1464 = vmatpush1.bf16.msra.mxu0 %v8214_v56 }
 0x3b4   : > { %1465 = vmatprep.subr.bf16.mxu0 %v8215_v9 }
 0x3b7   : > { %1466 = vmatpush1.bf16.msra.mxu0 %v8216_v2 }
 0x3b8   : > { %1467 = vmatprep.subr.bf16.mxu0 %v8217_v57 }
 0x3bb   : > { %1468 = vmatpush1.bf16.msra.mxu0 %v8218_v25 }
 0x3bc   : > { %1469 = vmatprep.subr.bf16.mxu0 %v8219_v34 }
 0x3bf   : > { %1470 = vmatpush1.bf16.msra.mxu0 %v8220_v47 }
 0x3c0   : > { %1471 = vmatprep.subr.bf16.mxu0 %v8221_v60 }
 0x3c3   : > { %1472 = vmatpush1.bf16.msra.mxu0 %v8222_v61 }
 0x3c4   : > { %1473 = vmatprep.subr.bf16.mxu0 %v1442_v22  ;;  %v4984_v22 = vld [vmem:[#allocation7 + $0xd4] ss:$8 sps:$4 sm:$0xff]  }
 0x3c7   : > { %1474 = vmatpush1.bf16.msra.mxu0 %v1441_v36  ;;  %v4980_v36 = vld [vmem:[#allocation7 + $0xb4] ss:$8 sps:$4 sm:$0xff]  }
 0x3c8   : > { %1475 = vmatprep.subr.bf16.mxu0 %v1444_v49 }
 0x3cb   : > { %1476 = vmatpush1.bf16.msra.mxu0 %v1443_v21 }
 0x3ce   : > { %1478 = vmatmul.mubr.bf16.vlgmr.msra.gmra.mrb[64].mxu0 %v4959_v15 }
 0x3cf   : > { %1487 = vmatprep.mubr.bf16.mxu0 %v4960_v29 }
 0x3d6   : > { %1488 = vmatmul.mubr.bf16.gmra.mrb[68].mxu0 %v4961_v62 }
 0x3d7   : > { %1497 = vmatprep.mubr.bf16.mxu0 %v4962_v20 }
 0x3de   : > { %1498 = vmatmul.mubr.bf16.gmra.mrb[72].mxu0 %v4963_v1 }
 0x3df   : > { %1507 = vmatprep.mubr.bf16.mxu0 %v4964_v37 }
 0x3e6   : > { %1508 = vmatmul.mubr.bf16.gmra.mrb[76].mxu0 %v4965_v0 }
 0x3e7   : > { %1517 = vmatprep.mubr.bf16.mxu0 %v4966_v28 }
 0x3ee   : > { %1518 = vmatmul.mubr.bf16.gmra.mrb[80].mxu0 %v4967_v53 }
 0x3ef   : > { %1527 = vmatprep.mubr.bf16.mxu0 %v4968_v27 }
 0x3f6   : > { %1528 = vmatmul.mubr.bf16.gmra.mrb[84].mxu0 %v4969_v35 }
 0x3f7   : > { %1537 = vmatprep.mubr.bf16.mxu0 %v4970_v24 }
 0x3fe   : > { %1538 = vmatmul.mubr.bf16.gmra.mrb[88].mxu0 %v4971_v40 }
 0x3ff   : > { %1547 = vmatprep.mubr.bf16.mxu0 %v4972_v6 }
 0x406   : > { %1548 = vmatmul.mubr.bf16.gmra.mrb[92].mxu0 %v4973_v48 }
 0x407   : > { %1557 = vmatprep.mubr.bf16.mxu0 %v4974_v26 }
 0x40e   : > { %1558 = vmatmul.mubr.bf16.gmra.mrb[96].mxu0 %v4975_v39 }
 0x40f   : > { %1567 = vmatprep.mubr.bf16.mxu0 %v4976_v10 }
 0x416   : > { %1568 = vmatmul.mubr.bf16.gmra.mrb[100].mxu0 %v4977_v63 }
 0x417   : > { %1577 = vmatprep.mubr.bf16.mxu0 %v4978_v38 }
 0x41e   : > { %1578 = vmatmul.mubr.bf16.gmra.mrb[104].mxu0 %v4979_v51 }
 0x41f   : > { %1587 = vmatprep.mubr.bf16.mxu0 %v4980_v36 }
 0x426   : > { %1588 = vmatmul.mubr.bf16.gmra.mrb[108].mxu0 %v4981_v30 }
 0x427   : > { %1597 = vmatprep.mubr.bf16.mxu0 %v4982_v58 }
 0x42e   : > { %1598 = vmatmul.mubr.bf16.gmra.mrb[112].mxu0 %v4983_v50 }
 0x42f   : > { %1607 = vmatprep.mubr.bf16.mxu0 %v4984_v22 }
 0x436   : > { %1608 = vmatmul.mubr.bf16.gmra.mrb[116].mxu0 %v4985_v44 }
 0x437   : > { %1617 = vmatprep.mubr.bf16.mxu0 %v4986_v54 }
 0x43e   : > { %1618 = vmatmul.mubr.bf16.gmra.mrb[120].mxu0 %v4987_v55 }
 0x43f   : > { %1627 = vmatprep.mubr.bf16.mxu0 %v4988_v11 }
 0x446   : > { %1628 = vmatmul.mubr.bf16.gmra.mrb[124].mxu0 %v4989_v17 }
 0x4a1   : > { %v1479_v4 = vpop.f32.mrb[64].mxu0 }
 0x4a2   : > { %v6535_v59 = vpop.f32.mrb[65].mxu0 }
 0x4a3   : > { %v1483_v14 = vpop.f32.mrb[66].mxu0 }
 0x4a4   : > { %v1638_v5 = vpack.c.bf16 %v1483_v14, %v1479_v4  ;;  %v6537_v32 = vpop.f32.mrb[67].mxu0 }
 0x4a5   : > { %v1654_v18 = vpack.c.bf16 %v6537_v32, %v6535_v59 }
 0x4a9   : > { %v1489_v3 = vpop.f32.mrb[68].mxu0 }
 0x4aa   : > { %v6541_v8 = vpop.f32.mrb[69].mxu0 }
 0x4ab   : > { %v1493_v12 = vpop.f32.mrb[70].mxu0 }
 0x4ac   : > { %v1640_v23 = vpack.c.bf16 %v1493_v12, %v1489_v3  ;;  %v6543_v33 = vpop.f32.mrb[71].mxu0 }
 0x4ad   : > { %v1656_v13 = vpack.c.bf16 %v6543_v33, %v6541_v8 }
 0x4b1   : > { %v1499_v19 = vpop.f32.mrb[72].mxu0 }
 0x4b2   : > { %v6547_v16 = vpop.f32.mrb[73].mxu0 }
 0x4b3   : > { %v1503_v46 = vpop.f32.mrb[74].mxu0 }
 0x4b4   : > { %v1642_v41 = vpack.c.bf16 %v1503_v46, %v1499_v19  ;;  %v6549_v31 = vpop.f32.mrb[75].mxu0 }
 0x4b5   : > { %v1658_v52 = vpack.c.bf16 %v6549_v31, %v6547_v16 }
 0x4b9   : > { %v1509_v42 = vpop.f32.mrb[76].mxu0 }
 0x4ba   : > { %v6553_v21 = vpop.f32.mrb[77].mxu0 }
 0x4bb   : > { %v1513_v45 = vpop.f32.mrb[78].mxu0 }
 0x4bc   : > { %v1644_v49 = vpack.c.bf16 %v1513_v45, %v1509_v42  ;;  %v6555_v7 = vpop.f32.mrb[79].mxu0 }
 0x4bd   : > { %v1660_v43 = vpack.c.bf16 %v6555_v7, %v6553_v21 }
 0x4c1   : > { %v6559_v56 = vpop.f32.mrb[80].mxu0 }
 0x4c2   : > { %v6561_v9 = vpop.f32.mrb[81].mxu0 }
 0x4c3   : > { %v1523_v2 = vpop.f32.mrb[82].mxu0 }
 0x4c4   : > { %v1646_v57 = vpack.c.bf16 %v1523_v2, %v6559_v56  ;;  %v6564_v25 = vpop.f32.mrb[83].mxu0 }
 0x4c5   : > { %v1662_v34 = vpack.c.bf16 %v6564_v25, %v6561_v9 }
 0x4c9   : > { %v6568_v47 = vpop.f32.mrb[84].mxu0 }
 0x4ca   : > { %v6570_v60 = vpop.f32.mrb[85].mxu0 }
 0x4cb   : > { %v6572_v61 = vpop.f32.mrb[86].mxu0 }
 0x4cc   : > { %v1648_v15 = vpack.c.bf16 %v6572_v61, %v6568_v47  ;;  %v6576_v29 = vpop.f32.mrb[87].mxu0 }
 0x4cd   : > { %v1664_v62 = vpack.c.bf16 %v6576_v29, %v6570_v60 }
 0x4d1   : > { %v6580_v20 = vpop.f32.mrb[88].mxu0 }
 0x4d2   : > { %v6582_v1 = vpop.f32.mrb[89].mxu0 }
 0x4d3   : > { %v6584_v37 = vpop.f32.mrb[90].mxu0 }
 0x4d4   : > { %v1650_v0 = vpack.c.bf16 %v6584_v37, %v6580_v20  ;;  %v6588_v28 = vpop.f32.mrb[91].mxu0 }
 0x4d5   : > { %v1666_v53 = vpack.c.bf16 %v6588_v28, %v6582_v1 }
 0x4d9   : > { %v6592_v27 = vpop.f32.mrb[92].mxu0 }
 0x4da   : > { %v6594_v35 = vpop.f32.mrb[93].mxu0 }
 0x4db   : > { %v6596_v24 = vpop.f32.mrb[94].mxu0 }
 0x4dc   : > { %v1652_v40 = vpack.c.bf16 %v6596_v24, %v6592_v27  ;;  %v6600_v6 = vpop.f32.mrb[95].mxu0 }
 0x4dd   : > { %v1668_v48 = vpack.c.bf16 %v6600_v6, %v6594_v35 }
 0x4e1   : > { %v1559_v26 = vpop.f32.mrb[96].mxu0 }
 0x4e2   : > { %v6604_v39 = vpop.f32.mrb[97].mxu0 }
 0x4e3   : > { %v1563_v10 = vpop.f32.mrb[98].mxu0 }
 0x4e4   : > { %v1639_v63 = vpack.c.bf16 %v1563_v10, %v1559_v26  ;;  %v1565_v38 = vpop.f32.mrb[99].mxu0 }
 0x4e5   : > { %v1655_v51 = vpack.c.bf16 %v1565_v38, %v6604_v39 }
 0x4e6   : > { %1702 = vmatprep.mubr.bf16.mxu1 %v1639_v63 }
 0x4e7   : > { %1703 = vmatmul.mubr.bf16.vlgmr.msra.gmra.mrb[64].mxu1 %v1638_v5 }
 0x4e9   : > { %v1569_v36 = vpop.f32.mrb[100].mxu0 }
 0x4ea   : > { %v1571_v30 = vpop.f32.mrb[101].mxu0 }
 0x4eb   : > { %v1573_v58 = vpop.f32.mrb[102].mxu0 }
 0x4ec   : > { %v1641_v50 = vpack.c.bf16 %v1573_v58, %v1569_v36  ;;  %v1575_v22 = vpop.f32.mrb[103].mxu0 }
 0x4ed   : > { %v1657_v44 = vpack.c.bf16 %v1575_v22, %v1571_v30 }
 0x4ee   : > { %1712 = vmatprep.mubr.bf16.mxu1 %v1641_v50 }
 0x4ef   : > { %1713 = vmatmul.mubr.bf16.gmra.mrb[68].mxu1 %v1640_v23 }
 0x4f1   : > { %v1579_v54 = vpop.f32.mrb[104].mxu0 }
 0x4f2   : > { %v1581_v55 = vpop.f32.mrb[105].mxu0 }
 0x4f3   : > { %v1583_v11 = vpop.f32.mrb[106].mxu0 }
 0x4f4   : > { %v1643_v17 = vpack.c.bf16 %v1583_v11, %v1579_v54  ;;  %v1585_v4 = vpop.f32.mrb[107].mxu0 }
 0x4f5   : > { %v1659_v14 = vpack.c.bf16 %v1585_v4, %v1581_v55 }
 0x4f6   : > { %1722 = vmatprep.mubr.bf16.mxu1 %v1643_v17 }
 0x4f7   : > { %1723 = vmatmul.mubr.bf16.gmra.mrb[72].mxu1 %v1642_v41 }
 0x4f9   : > { %v1589_v3 = vpop.f32.mrb[108].mxu0 }
 0x4fa   : > { %v1591_v12 = vpop.f32.mrb[109].mxu0 }
 0x4fb   : > { %v1593_v19 = vpop.f32.mrb[110].mxu0 }
 0x4fc   : > { %v1645_v5 = vpack.c.bf16 %v1593_v19, %v1589_v3  ;;  %v1595_v46 = vpop.f32.mrb[111].mxu0 }
 0x4fd   : > { %v1661_v42 = vpack.c.bf16 %v1595_v46, %v1591_v12 }
 0x4fe   : > { %1732 = vmatprep.mubr.bf16.mxu1 %v1645_v5 }
 0x4ff   : > { %1733 = vmatmul.mubr.bf16.gmra.mrb[76].mxu1 %v1644_v49 }
 0x501   : > { %v1599_v45 = vpop.f32.mrb[112].mxu0 }
 0x502   : > { %v1601_v56 = vpop.f32.mrb[113].mxu0 }
 0x503   : > { %v1603_v2 = vpop.f32.mrb[114].mxu0 }
 0x504   : > { %v1647_v23 = vpack.c.bf16 %v1603_v2, %v1599_v45  ;;  %v1605_v47 = vpop.f32.mrb[115].mxu0 }
 0x505   : > { %v1663_v61 = vpack.c.bf16 %v1605_v47, %v1601_v56 }
 0x506   : > { %1742 = vmatprep.mubr.bf16.mxu1 %v1647_v23 }
 0x507   : > { %1743 = vmatmul.mubr.bf16.gmra.mrb[80].mxu1 %v1646_v57 }
 0x509   : > { %v1609_v26 = vpop.f32.mrb[116].mxu0 }
 0x50a   : > { %v1611_v39 = vpop.f32.mrb[117].mxu0 }
 0x50b   : > { %v1613_v10 = vpop.f32.mrb[118].mxu0 }
 0x50c   : > { %v1649_v41 = vpack.c.bf16 %v1613_v10, %v1609_v26  ;;  %v1615_v63 = vpop.f32.mrb[119].mxu0 }
 0x50d   : > { %v1665_v38 = vpack.c.bf16 %v1615_v63, %v1611_v39 }
 0x50e   : > { %1752 = vmatprep.mubr.bf16.mxu1 %v1649_v41 }
 0x50f   : > { %1753 = vmatmul.mubr.bf16.gmra.mrb[84].mxu1 %v1648_v15 }
 0x511   : > { %v1619_v36 = vpop.f32.mrb[120].mxu0 }
 0x512   : > { %v1621_v30 = vpop.f32.mrb[121].mxu0 }
 0x513   : > { %v1623_v58 = vpop.f32.mrb[122].mxu0 }
 0x514   : > { %v1651_v49 = vpack.c.bf16 %v1623_v58, %v1619_v36  ;;  %v1625_v50 = vpop.f32.mrb[123].mxu0 }
 0x515   : > { %v1667_v22 = vpack.c.bf16 %v1625_v50, %v1621_v30 }
 0x516   : > { %1762 = vmatprep.mubr.bf16.mxu1 %v1651_v49 }
 0x517   : > { %1763 = vmatmul.mubr.bf16.gmra.mrb[88].mxu1 %v1650_v0 }
 0x519   : > { %v1629_v57 = vpop.f32.mrb[124].mxu0 }
 0x51a   : > { %v1631_v54 = vpop.f32.mrb[125].mxu0 }
 0x51b   : > { %v1633_v55 = vpop.f32.mrb[126].mxu0 }
 0x51c   : > { %v1653_v11 = vpack.c.bf16 %v1633_v55, %v1629_v57  ;;  %v1635_v17 = vpop.f32.mrb[127].mxu0 }
 0x51d   : > { %v1669_v4 = vpack.c.bf16 %v1635_v17, %v1631_v54 }
 0x51e   : > { %1772 = vmatprep.mubr.bf16.mxu1 %v1653_v11 }
 0x51f   : > { %1773 = vmatmul.mubr.bf16.gmra.mrb[92].mxu1 %v1652_v40 }
 0x520   : > { %1782 = vmatprep.mubr.bf16.mxu1 %v1655_v51 }
 0x527   : > { %1783 = vmatmul.mubr.bf16.gmra.mrb[96].mxu1 %v1654_v18 }
 0x528   : > { %1792 = vmatprep.mubr.bf16.mxu1 %v1657_v44 }
 0x52f   : > { %1793 = vmatmul.mubr.bf16.gmra.mrb[100].mxu1 %v1656_v13 }
 0x530   : > { %1802 = vmatprep.mubr.bf16.mxu1 %v1659_v14 }
 0x537   : > { %1803 = vmatmul.mubr.bf16.gmra.mrb[104].mxu1 %v1658_v52 }
 0x538   : > { %1812 = vmatprep.mubr.bf16.mxu1 %v1661_v42 }
 0x53f   : > { %1813 = vmatmul.mubr.bf16.gmra.mrb[108].mxu1 %v1660_v43 }
 0x540   : > { %1822 = vmatprep.mubr.bf16.mxu1 %v1663_v61 }
 0x547   : > { %1823 = vmatmul.mubr.bf16.gmra.mrb[112].mxu1 %v1662_v34 }
 0x548   : > { %1832 = vmatprep.mubr.bf16.mxu1 %v1665_v38 }
 0x54f   : > { %1833 = vmatmul.mubr.bf16.gmra.mrb[116].mxu1 %v1664_v62 }
 0x550   : > { %1842 = vmatprep.mubr.bf16.mxu1 %v1667_v22 }
 0x557   : > { %1843 = vmatmul.mubr.bf16.gmra.mrb[120].mxu1 %v1666_v53 }
 0x558   : > { %1852 = vmatprep.mubr.bf16.mxu1 %v1669_v4 }
 0x55f   : > { %1853 = vmatmul.mubr.bf16.gmra.mrb[124].mxu1 %v1668_v48 }
 0x5ba   : > { %v6637_v59 = vpop.f32.mrb[64].mxu1  }
 0x5bb   : > { %v6639_v32 = vpop.f32.mrb[65].mxu1  }
 0x5bc   : > { %v6641_v18 = vpop.f32.mrb[66].mxu1   ;;  %8232 = vst [vmem:[#allocation25_spill] sm:$0xff] %v6639_v32 }
 0x5bd   : > { %v6643_v8 = vpop.f32.mrb[67].mxu1  }
 0x5be   : > { %8231 = vst [vmem:[#allocation24_spill] sm:$0xff] %v6643_v8 }
 0x5c2   : > { %v6645_v33 = vpop.f32.mrb[68].mxu1  }
 0x5c3   : > { %v6647_v13 = vpop.f32.mrb[69].mxu1   ;;  %8230 = vst [vmem:[#allocation23_spill] sm:$0xff] %v6645_v33 }
 0x5c4   : > { %v6649_v16 = vpop.f32.mrb[70].mxu1   ;;  %8229 = vst [vmem:[#allocation22_spill] sm:$0xff] %v6647_v13 }
 0x5c5   : > { %v6651_v31 = vpop.f32.mrb[71].mxu1   ;;  %8228 = vst [vmem:[#allocation21_spill] sm:$0xff] %v6649_v16 }
 0x5c6   : > { %8227 = vst [vmem:[#allocation20_spill] sm:$0xff] %v6651_v31 }
 0x5ca   : > { %v6653_v52 = vpop.f32.mrb[72].mxu1  }
 0x5cb   : > { %v6655_v21 = vpop.f32.mrb[73].mxu1   ;;  %8226 = vst [vmem:[#allocation19_spill] sm:$0xff] %v6653_v52 }
 0x5cc   : > { %v6657_v7 = vpop.f32.mrb[74].mxu1   ;;  %8225 = vst [vmem:[#allocation18_spill] sm:$0xff] %v6655_v21 }
 0x5cd   : > { %v6659_v43 = vpop.f32.mrb[75].mxu1   ;;  %8224 = vst [vmem:[#allocation17_spill] sm:$0xff] %v6657_v7 }
 0x5ce   : > { %8223 = vst [vmem:[#allocation16_spill] sm:$0xff] %v6659_v43 }
 0x5d2   : > { %v6661_v9 = vpop.f32.mrb[76].mxu1  }
 0x5d3   : > { %v6663_v25 = vpop.f32.mrb[77].mxu1  }
 0x5d4   : > { %v6665_v34 = vpop.f32.mrb[78].mxu1  }
 0x5d5   : > { %v6667_v60 = vpop.f32.mrb[79].mxu1  }
 0x5da   : > { %v6669_v15 = vpop.f32.mrb[80].mxu1  }
 0x5db   : > { %v6671_v29 = vpop.f32.mrb[81].mxu1  }
 0x5dc   : > { %v6673_v62 = vpop.f32.mrb[82].mxu1  }
 0x5dd   : > { %v6675_v20 = vpop.f32.mrb[83].mxu1  }
 0x5e2   : > { %v6677_v1 = vpop.f32.mrb[84].mxu1  }
 0x5e3   : > { %v6679_v37 = vpop.f32.mrb[85].mxu1  }
 0x5e4   : > { %v6681_v0 = vpop.f32.mrb[86].mxu1  }
 0x5e5   : > { %v6683_v28 = vpop.f32.mrb[87].mxu1  }
 0x5ea   : > { %v6685_v53 = vpop.f32.mrb[88].mxu1  }
 0x5eb   : > { %v6687_v27 = vpop.f32.mrb[89].mxu1  }
 0x5ec   : > { %v6689_v35 = vpop.f32.mrb[90].mxu1  }
 0x5ed   : > { %v6691_v24 = vpop.f32.mrb[91].mxu1  }
 0x5f2   : > { %v6693_v40 = vpop.f32.mrb[92].mxu1  }
 0x5f3   : > { %v6695_v6 = vpop.f32.mrb[93].mxu1  }
 0x5f4   : > { %v6697_v48 = vpop.f32.mrb[94].mxu1  }
 0x5f5   : > { %v6699_v51 = vpop.f32.mrb[95].mxu1  }
 0x5fa   : > { %v6701_v44 = vpop.f32.mrb[96].mxu1  }
 0x5fb   : > { %v1786_v14 = vpop.f32.mrb[97].mxu1  }
 0x5fc   : > { %v1788_v3 = vpop.f32.mrb[98].mxu1  }
 0x5fd   : > { %v1790_v12 = vpop.f32.mrb[99].mxu1  }
 0x602   : > { %v1794_v19 = vpop.f32.mrb[100].mxu1  }
 0x603   : > { %v1796_v5 = vpop.f32.mrb[101].mxu1  }
 0x604   : > { %v1798_v46 = vpop.f32.mrb[102].mxu1  }
 0x605   : > { %v1800_v42 = vpop.f32.mrb[103].mxu1  }
 0x60a   : > { %v1804_v45 = vpop.f32.mrb[104].mxu1  }
 0x60b   : > { %v1806_v56 = vpop.f32.mrb[105].mxu1  }
 0x60c   : > { %v1808_v2 = vpop.f32.mrb[106].mxu1  }
 0x60d   : > { %v1810_v23 = vpop.f32.mrb[107].mxu1  }
 0x612   : > { %v1814_v47 = vpop.f32.mrb[108].mxu1  }
 0x613   : > { %v1816_v61 = vpop.f32.mrb[109].mxu1  }
 0x614   : > { %v1818_v26 = vpop.f32.mrb[110].mxu1  }
 0x615   : > { %v1820_v39 = vpop.f32.mrb[111].mxu1  }
 0x61a   : > { %v1824_v10 = vpop.f32.mrb[112].mxu1  }
 0x61b   : > { %v1826_v41 = vpop.f32.mrb[113].mxu1  }
 0x61c   : > { %v1828_v63 = vpop.f32.mrb[114].mxu1  }
 0x61d   : > { %v1830_v38 = vpop.f32.mrb[115].mxu1  }
 0x622   : > { %v1834_v36 = vpop.f32.mrb[116].mxu1  }
 0x623   : > { %v1836_v30 = vpop.f32.mrb[117].mxu1  }
 0x624   : > { %v1838_v58 = vpop.f32.mrb[118].mxu1  }
 0x625   : > { %v1840_v49 = vpop.f32.mrb[119].mxu1  }
 0x62a   : > { %v1844_v50 = vpop.f32.mrb[120].mxu1  }
 0x62b   : > { %v1846_v22 = vpop.f32.mrb[121].mxu1  }
 0x62c   : > { %v1848_v57 = vpop.f32.mrb[122].mxu1  }
 0x62d   : > { %v1850_v54 = vpop.f32.mrb[123].mxu1  }
 0x632   : > { %v1854_v55 = vpop.f32.mrb[124].mxu1  }
 0x633   : > { %v1856_v11 = vpop.f32.mrb[125].mxu1  }
 0x634   : > { %v1858_v17 = vpop.f32.mrb[126].mxu1  }
 0x635   : > { %v1860_v4 = vpop.f32.mrb[127].mxu1  }
 0x636 LB: >> { %8243 = vst [vmem:[#allocation26_spill] sm:$0xff] %v5597_v4  ;;  %8244 = vst [vmem:[#allocation27_spill] sm:$0xff] %v5601_v17  ;;  %v8258_v43 = vld [vmem:[#allocation16_spill] sm:$0xff]  ;;  %v8259_v7 = vld [vmem:[#allocation17_spill] sm:$0xff]  ;;  %s4246_s17 = sshll.u32 %s5853_s26, 9  ;;  %s1868_s6 = sadd.s32 1, %s5853_s26   ;;  %s5853_s26 = sphi %s6868_s26, %s8406_s26   ;;  %v5849_v59 = vphi %v6637_v59, %v8405_v59   ;;  %v5841_v18 = vphi %v6641_v18, %v8402_v18   ;;  %v5801_v9 = vphi %v6661_v9, %v7655_v9   ;;  %v5797_v25 = vphi %v6663_v25, %v7657_v25   ;;  %v5793_v34 = vphi %v6665_v34, %v7659_v34   ;;  %v5789_v60 = vphi %v6667_v60, %v7661_v60   ;;  %v5785_v15 = vphi %v6669_v15, %v7663_v15   ;;  %v5781_v29 = vphi %v6671_v29, %v7665_v29   ;;  %v5777_v62 = vphi %v6673_v62, %v7667_v62   ;;  %v5773_v20 = vphi %v6675_v20, %v7669_v20   ;;  %v5769_v1 = vphi %v6677_v1, %v7671_v1   ;;  %v5765_v37 = vphi %v6679_v37, %v7673_v37   ;;  %v5761_v0 = vphi %v6681_v0, %v7675_v0   ;;  %v5757_v28 = vphi %v6683_v28, %v7677_v28   ;;  %v5753_v53 = vphi %v6685_v53, %v7679_v53   ;;  %v5749_v27 = vphi %v6687_v27, %v7681_v27   ;;  %v5745_v35 = vphi %v6689_v35, %v7683_v35   ;;  %v5741_v24 = vphi %v6691_v24, %v7685_v24   ;;  %v5737_v40 = vphi %v6693_v40, %v7687_v40   ;;  %v5733_v6 = vphi %v6695_v6, %v7689_v6   ;;  %v5729_v48 = vphi %v6697_v48, %v7691_v48   ;;  %v5725_v51 = vphi %v6699_v51, %v7693_v51   ;;  %v5721_v44 = vphi %v6701_v44, %v7695_v44   ;;  %v5717_v14 = vphi %v1786_v14, %v7697_v14   ;;  %v5713_v3 = vphi %v1788_v3, %v7699_v3   ;;  %v5709_v12 = vphi %v1790_v12, %v7701_v12   ;;  %v5705_v19 = vphi %v1794_v19, %v7703_v19   ;;  %v5701_v5 = vphi %v1796_v5, %v7705_v5   ;;  %v5697_v46 = vphi %v1798_v46, %v7707_v46   ;;  %v5693_v42 = vphi %v1800_v42, %v7709_v42   ;;  %v5689_v45 = vphi %v1804_v45, %v7711_v45   ;;  %v5685_v56 = vphi %v1806_v56, %v7713_v56   ;;  %v5681_v2 = vphi %v1808_v2, %v7715_v2   ;;  %v5677_v23 = vphi %v1810_v23, %v7717_v23   ;;  %v5673_v47 = vphi %v1814_v47, %v7719_v47   ;;  %v5669_v61 = vphi %v1816_v61, %v7721_v61   ;;  %v5665_v26 = vphi %v1818_v26, %v7723_v26   ;;  %v5661_v39 = vphi %v1820_v39, %v7725_v39   ;;  %v5657_v10 = vphi %v1824_v10, %v7727_v10   ;;  %v5653_v41 = vphi %v1826_v41, %v7729_v41   ;;  %v5649_v63 = vphi %v1828_v63, %v7731_v63   ;;  %v5645_v38 = vphi %v1830_v38, %v7733_v38   ;;  %v5641_v36 = vphi %v1834_v36, %v7735_v36   ;;  %v5637_v30 = vphi %v1836_v30, %v7737_v30   ;;  %v5633_v58 = vphi %v1838_v58, %v8383_v58   ;;  %v5629_v49 = vphi %v1840_v49, %v8382_v49   ;;  %v5625_v50 = vphi %v1844_v50, %v8381_v50   ;;  %v5621_v22 = vphi %v1846_v22, %v8380_v22   ;;  %v5617_v57 = vphi %v1848_v57, %v8378_v57   ;;  %v5613_v54 = vphi %v1850_v54, %v8377_v54   ;;  %v5609_v55 = vphi %v1854_v55, %v8376_v55   ;;  %v5605_v11 = vphi %v1856_v11, %v8375_v11   ;;  %v5601_v17 = vphi %v1858_v17, %v8374_v17   ;;  %v5597_v4 = vphi %v1860_v4, %v8372_v4  }
 0x637   : >> { %8245 = vst [vmem:[#allocation28_spill] sm:$0xff] %v5605_v11  ;;  %8246 = vst [vmem:[#allocation29_spill] sm:$0xff] %v5609_v55  ;;  %v8260_v21 = vld [vmem:[#allocation18_spill] sm:$0xff]  ;;  %v8261_v52 = vld [vmem:[#allocation19_spill] sm:$0xff]  ;;  %s7065_s16 = scalar_lea.vmem [#allocation10], %s4246_s17  ;;  %p7762_p10 = scmp.ge.s32.totalorder %s1868_s6, 5  }
 0x638   : >> { %8247 = vst [vmem:[#allocation30_spill] sm:$0xff] %v5613_v54  ;;  %8248 = vst [vmem:[#allocation31_spill] sm:$0xff] %v5617_v57  ;;  %v8262_v31 = vld [vmem:[#allocation20_spill] sm:$0xff]  ;;  %v8263_v16 = vld [vmem:[#allocation21_spill] sm:$0xff]  ;;  %s8406_s26 = smov %s1868_s6  ;;  %s4248_s8 = sshll.u32 (%p7762_p10), %s5919_s22, 12 }
 0x639   : >> { %8249 = vst [vmem:[#allocation32_spill] sm:$0xff] %v5621_v22  ;;  %8250 = vst [vmem:[#allocation33_spill] sm:$0xff] %v5625_v50  ;;  %v8264_v13 = vld [vmem:[#allocation22_spill] sm:$0xff]  ;;  %v8265_v33 = vld [vmem:[#allocation23_spill] sm:$0xff]  ;;  %s3748_s9 = sshll.u32 (%p7762_p10), %s6705_s24, 4  ;;  %s8126_s27 = scalar_lea.hbm (%p7762_p10), %s8180_s5, %s4248_s8  ;;  %s8128_s9 = int_to_ptr.vmem [resolvable:$true] %s3748_s9 }
 0x63a   : >> { %8251 = vst [vmem:[#allocation34_spill] sm:$0xff] %v5629_v49  ;;  %8252 = vst [vmem:[#allocation35_spill] sm:$0xff] %v5633_v58  ;;  %v8266_v8 = vld [vmem:[#allocation24_spill] sm:$0xff]  ;;  %v8267_v32 = vld [vmem:[#allocation25_spill] sm:$0xff]  ;;  %s3734_s10 = scalar_lea.sflag (%p7762_p10), [#allocation4], %s6128_s12  ;;  %s5259_s23 = scalar_lea.vmem (%p7762_p10), %s8128_s9, 4096 }
 0x63b   : >> { %8253 = vst [vmem:[#allocation36_spill] sm:$0xff] %v5637_v30  ;;  %8254 = vst [vmem:[#allocation37_spill] sm:$0xff] %v5641_v36  ;;  %v7061_v17 = vld [vmem:[#allocation7 + $0x4] ss:$8 sps:$4 sm:$0xff]   ;;  %v4992_v55 = vld [vmem:[#allocation7] ss:$8 sps:$4 sm:$0xff]   ;;  %p5260_p5 = scmp.ne.s32.totalorder (%p7762_p10), %s8128_s9, %s5259_s23 }
 0x63c   : >> { %8255 = vst [vmem:[#allocation38_spill] sm:$0xff] %v5645_v38  ;;  %8256 = vst [vmem:[#allocation39_spill] sm:$0xff] %v5649_v63  ;;  %2288 = vmatprep.subr.bf16.mxu0 %v7061_v17  ;;  %v4993_v4 = vld [vmem:[#allocation7 + $0x14] ss:$8 sps:$4 sm:$0xff]   ;;  %v4995_v11 = vld [vmem:[#allocation7 + $0x10] ss:$8 sps:$4 sm:$0xff]  }
 0x63d   : >> { %8257 = vst [vmem:[#allocation40_spill] sm:$0xff] %v5657_v10  ;;  %8268 = vst [vmem:[#allocation16_spill] sm:$0xff] %v7061_v17  ;;  %2289 = vmatpush1.bf16.msra.mxu0 %v4992_v55  ;;  %v4996_v57 = vld [vmem:[#allocation7 + $0x24] ss:$8 sps:$4 sm:$0xff]   ;;  %v4998_v50 = vld [vmem:[#allocation7 + $0x20] ss:$8 sps:$4 sm:$0xff]   ;;  %p5261_p7 = pnand (%p7762_p10), %p5260_p5, %p6076_p3 }
 0x63e   : >> { %2290 = vmatprep.subr.bf16.mxu0 %v4993_v4  ;;  %v4999_v54 = vld [vmem:[#allocation7 + $0x34] ss:$8 sps:$4 sm:$0xff]   ;;  %v5001_v22 = vld [vmem:[#allocation7 + $0x30] ss:$8 sps:$4 sm:$0xff]   ;;  %v5002_v58 = vld [vmem:[#allocation7 + $0x44] ss:$8 sps:$4 sm:$0xff]  }
 0x63f   : >> { %v5004_v36 = vld [vmem:[#allocation7 + $0x40] ss:$8 sps:$4 sm:$0xff]   ;;  %v5005_v49 = vld [vmem:[#allocation7 + $0x54] ss:$8 sps:$4 sm:$0xff]   ;;  %v5007_v17 = vld [vmem:[#allocation7 + $0x50] ss:$8 sps:$4 sm:$0xff]   ;;  %p5262_p12 = pneg (%p7762_p10), %p5261_p7 }
 0x640   : >> { %v5008_v55 = vld [vmem:[#allocation7 + $0x64] ss:$8 sps:$4 sm:$0xff]   ;;  %v5017_v63 = vld [vmem:[#allocation7 + $0x94] ss:$8 sps:$4 sm:$0xff]   ;;  %v5019_v10 = vld [vmem:[#allocation7 + $0x90] ss:$8 sps:$4 sm:$0xff]  }
 0x641   : >> { %2291 = vmatpush1.bf16.msra.mxu0 %v4995_v11  ;;  %v1937_v11 = vld [vmem:[%s7065_s16 + $0x8] sm:$0xff]  ;;  %s5865_s14 = smov (%p7762_p10), [#allocation11]  }
 0x642   : >> { %2292 = vmatprep.subr.bf16.mxu0 %v4996_v57  ;;  %v1939_v57 = vld [vmem:[%s7065_s16 + $0x18] sm:$0xff]  ;;  %v2001_v4 = vmul.f32 %v8267_v32, %v1937_v11  ;;  %v5020_v38 = vld [vmem:[#allocation7 + $0xa4] ss:$8 sps:$4 sm:$0xff]   ;;  %v5022_v32 = vld [vmem:[#allocation7 + $0xa0] ss:$8 sps:$4 sm:$0xff]   ;;  %s5263_s15 = sshll.u32 (%p7762_p10), %s5865_s14, 4  ;;  %s5264_s15 = int_to_ptr.vmem [resolvable:$false] %s5263_s15 }
 0x643   : >> { %v5029_v11 = vld [vmem:[#allocation7 + $0xd4] ss:$8 sps:$4 sm:$0xff]   ;;  %s5265_s30 = scalar_lea.vmem (%p7762_p10), %s5264_s15, 8192  ;;  %p5266_p1 = scmp.lt.s32.totalorder (%p7762_p10), %s8128_s9, %s5264_s15 }
 0x644   : > { %p5267_p2 = scmp.lt.s32.totalorder (%p7762_p10), %s5265_s30, %s5259_s23 }
 0x645   : >> { %2293 = vmatpush1.bf16.msra.mxu0 %v4998_v50  ;;  %v2003_v50 = vmul.f32 %v8266_v8, %v1939_v57  ;;  %v5023_v8 = vld [vmem:[#allocation7 + $0xb4] ss:$8 sps:$4 sm:$0xff]   ;;  %v5031_v57 = vld [vmem:[#allocation7 + $0xd0] ss:$8 sps:$4 sm:$0xff]  }
 0x646   : >> { %2294 = vmatprep.subr.bf16.mxu0 %v4999_v54  ;;  %v5010_v54 = vld [vmem:[#allocation7 + $0x60] ss:$8 sps:$4 sm:$0xff]   ;;  %p5268_p13 = por (%p7762_p10), %p5267_p2, %p5266_p1 }
 0x647   : >> { %v2097_v30 = vpack.c.bf16 %v2003_v50, %v2001_v4  ;;  %v1936_v4 = vld [vmem:[%s7065_s16] sm:$0xff]  ;;  %v5035_v50 = vld [vmem:[#allocation7 + $0xf4] ss:$8 sps:$4 sm:$0xff]  }
 0x648   : > { %p5269_p9 = pnand (%p7762_p10), %p5268_p13, %p5262_p12 }
 0x649   : >> { %2295 = vmatpush1.bf16.msra.mxu0 %v5001_v22  ;;  %v5011_v22 = vld [vmem:[#allocation7 + $0x74] ss:$8 sps:$4 sm:$0xff]   ;;  %2320 = vmatprep.mubr.bf16.mxu0 %v2097_v30  ;;  %v5025_v30 = vld [vmem:[#allocation7 + $0xb0] ss:$8 sps:$4 sm:$0xff]  }
 0x64a   : >> { %2296 = vmatprep.subr.bf16.mxu0 %v5002_v58  ;;  %v5013_v58 = vld [vmem:[#allocation7 + $0x70] ss:$8 sps:$4 sm:$0xff]  }
 0x64d   : >> { %2297 = vmatpush1.bf16.msra.mxu0 %v5004_v36  ;;  %v5014_v36 = vld [vmem:[#allocation7 + $0x84] ss:$8 sps:$4 sm:$0xff]  }
 0x64e   : >> { %2298 = vmatprep.subr.bf16.mxu0 %v5005_v49  ;;  %v5016_v49 = vld [vmem:[#allocation7 + $0x80] ss:$8 sps:$4 sm:$0xff]  }
 0x651   : >> { %2299 = vmatpush1.bf16.msra.mxu0 %v5007_v17  ;;  %v5026_v17 = vld [vmem:[#allocation7 + $0xc4] ss:$8 sps:$4 sm:$0xff]  }
 0x652   : >> { %2300 = vmatprep.subr.bf16.mxu0 %v5008_v55  ;;  %v5028_v55 = vld [vmem:[#allocation7 + $0xc0] ss:$8 sps:$4 sm:$0xff]  }
 0x655   : >> { %2301 = vmatpush1.bf16.msra.mxu0 %v5010_v54  ;;  %v1941_v54 = vld [vmem:[%s7065_s16 + $0x28] sm:$0xff] }
 0x656   : >> { %2302 = vmatprep.subr.bf16.mxu0 %v5011_v22  ;;  %v1943_v22 = vld [vmem:[%s7065_s16 + $0x38] sm:$0xff] }
 0x659   : >> { %2303 = vmatpush1.bf16.msra.mxu0 %v5013_v58  ;;  %v2000_v58 = vmul.f32 %v5849_v59, %v1936_v4  ;;  %v1947_v59 = vld [vmem:[%s7065_s16 + $0x58] sm:$0xff] }
 0x65a   : >> { %2304 = vmatprep.subr.bf16.mxu0 %v5014_v36 }
 0x65d   : >> { %2305 = vmatpush1.bf16.msra.mxu0 %v5016_v49  ;;  %v5037_v49 = vld [vmem:[#allocation7 + $0xf0] ss:$8 sps:$4 sm:$0xff]  }
 0x65e   : >> { %2306 = vmatprep.subr.bf16.mxu0 %v5017_v63  ;;  %v5032_v63 = vld [vmem:[#allocation7 + $0xe4] ss:$8 sps:$4 sm:$0xff]  }
 0x661   : >> { %2307 = vmatpush1.bf16.msra.mxu0 %v5019_v10  ;;  %v5034_v10 = vld [vmem:[#allocation7 + $0xe0] ss:$8 sps:$4 sm:$0xff]  }
 0x662   : >> { %2308 = vmatprep.subr.bf16.mxu0 %v5020_v38  ;;  %v1938_v38 = vld [vmem:[%s7065_s16 + $0x10] sm:$0xff] }
 0x663   : >> { %v2002_v36 = vmul.f32 %v5841_v18, %v1938_v38  ;;  %v1944_v38 = vld [vmem:[%s7065_s16 + $0x40] sm:$0xff] }
 0x665   : >> { %2309 = vmatpush1.bf16.msra.mxu0 %v5022_v32  ;;  %v2005_v32 = vmul.f32 %v8264_v13, %v1941_v54  ;;  %v1949_v54 = vld [vmem:[%s7065_s16 + $0x68] sm:$0xff] }
 0x666   : >> { %2310 = vmatprep.subr.bf16.mxu0 %v5023_v8  ;;  %v2007_v8 = vmul.f32 %v8262_v31, %v1943_v22  ;;  %v2011_v31 = vmul.f32 %v8258_v43, %v1947_v59  ;;  %v1951_v22 = vld [vmem:[%s7065_s16 + $0x78] sm:$0xff]  ;;  %v1957_v59 = vld [vmem:[%s7065_s16 + $0xa8] sm:$0xff] }
 0x667   : >> { %v2015_v43 = vmul.f32 %v5789_v60, %v1951_v22  ;;  %v1960_v22 = vld [vmem:[%s7065_s16 + $0xc0] sm:$0xff] }
 0x669   : >> { %2311 = vmatpush1.bf16.msra.mxu0 %v5025_v30  ;;  %v2096_v30 = vpack.c.bf16 %v2002_v36, %v2000_v58 }
 0x66a   : >> { %2312 = vmatprep.subr.bf16.mxu0 %v5026_v17  ;;  %v2099_v17 = vpack.c.bf16 %v2007_v8, %v2005_v32  ;;  %v1950_v32 = vld [vmem:[%s7065_s16 + $0x70] sm:$0xff]  ;;  %v1953_v8 = vld [vmem:[%s7065_s16 + $0x88] sm:$0xff] }
 0x66d   : >> { %2313 = vmatpush1.bf16.msra.mxu0 %v5028_v55  ;;  %v1940_v55 = vld [vmem:[%s7065_s16 + $0x20] sm:$0xff] }
 0x66e   : >> { %2314 = vmatprep.subr.bf16.mxu0 %v5029_v11  ;;  %v1942_v11 = vld [vmem:[%s7065_s16 + $0x30] sm:$0xff]  ;;  %v2004_v18 = vmul.f32 %v8265_v33, %v1940_v55  ;;  %v2008_v33 = vmul.f32 %v8261_v52, %v1944_v38  ;;  %v1963_v38 = vld [vmem:[%s7065_s16 + $0xd8] sm:$0xff] }
 0x671   : >> { %2315 = vmatpush1.bf16.msra.mxu0 %v5031_v57  ;;  %v1945_v57 = vld [vmem:[%s7065_s16 + $0x48] sm:$0xff] }
 0x672   : >> { %2316 = vmatprep.subr.bf16.mxu0 %v5032_v63  ;;  %v2006_v63 = vmul.f32 %v8263_v16, %v1942_v11  ;;  %v2009_v13 = vmul.f32 %v8260_v21, %v1945_v57  ;;  %v2013_v21 = vmul.f32 %v5797_v25, %v1949_v54  ;;  %v2017_v25 = vmul.f32 %v5781_v29, %v1953_v8  ;;  %v1952_v11 = vld [vmem:[%s7065_s16 + $0x80] sm:$0xff]  ;;  %v1954_v57 = vld [vmem:[%s7065_s16 + $0x90] sm:$0xff]  ;;  %v1971_v8 = vld [vmem:[%s7065_s16 + $0x118] sm:$0xff] }
 0x673   : >> { %v2021_v29 = vmul.f32 %v5765_v37, %v1957_v59  ;;  %v1974_v59 = vld [vmem:[%s7065_s16 + $0x130] sm:$0xff] }
 0x674   : >> { %v2101_v4 = vpack.c.bf16 %v2011_v31, %v2009_v13  ;;  %v2103_v36 = vpack.c.bf16 %v2015_v43, %v2013_v21  ;;  %v1956_v31 = vld [vmem:[%s7065_s16 + $0xa0] sm:$0xff]  ;;  %v1967_v21 = vld [vmem:[%s7065_s16 + $0xf8] sm:$0xff] }
 0x675   : >> { %2317 = vmatpush1.bf16.msra.mxu0 %v5034_v10  ;;  %v2098_v10 = vpack.c.bf16 %v2006_v63, %v2004_v18  ;;  %v1959_v18 = vld [vmem:[%s7065_s16 + $0xb8] sm:$0xff] }
 0x676   : >> { %2318 = vmatprep.subr.bf16.mxu0 %v5035_v50  ;;  %v1946_v50 = vld [vmem:[%s7065_s16 + $0x50] sm:$0xff] }
 0x677   : >> { %v2010_v16 = vmul.f32 %v8259_v7, %v1946_v50  ;;  %v2014_v7 = vmul.f32 %v5793_v34, %v1950_v32  ;;  %v2018_v34 = vmul.f32 %v5777_v62, %v1954_v57  ;;  %v1969_v32 = vld [vmem:[%s7065_s16 + $0x108] sm:$0xff]  ;;  %v1972_v57 = vld [vmem:[%s7065_s16 + $0x120] sm:$0xff] }
 0x679   : >> { %2319 = vmatpush1.bf16.msra.mxu0 %v5037_v49  ;;  %v2100_v58 = vpack.c.bf16 %v2010_v16, %v2008_v33  ;;  %v1948_v49 = vld [vmem:[%s7065_s16 + $0x60] sm:$0xff]  ;;  %v1962_v33 = vld [vmem:[%s7065_s16 + $0xd0] sm:$0xff]  ;;  %v1965_v16 = vld [vmem:[%s7065_s16 + $0xe8] sm:$0xff] }
 0x67a   : >> { %v2012_v52 = vmul.f32 %v5801_v9, %v1948_v49  ;;  %v2016_v9 = vmul.f32 %v5785_v15, %v1952_v11  ;;  %v2020_v15 = vmul.f32 %v5769_v1, %v1956_v31  ;;  %v2024_v1 = vmul.f32 %v5753_v53, %v1960_v22  ;;  %v1966_v49 = vld [vmem:[%s7065_s16 + $0xf0] sm:$0xff]  ;;  %v1983_v31 = vld [vmem:[%s7065_s16 + $0x178] sm:$0xff]  ;;  %v1984_v22 = vld [vmem:[%s7065_s16 + $0x180] sm:$0xff] }
 0x67c   : >> { %2321 = vmatmul.mubr.bf16.vlgmr.msra.gmra.mrb[0].mxu0 %v2096_v30  ;;  %v1955_v30 = vld [vmem:[%s7065_s16 + $0x98] sm:$0xff]  ;;  %v2104_v63 = vpack.c.bf16 %v2018_v34, %v2016_v9 }
 0x67d   : >> { %2330 = vmatprep.mubr.bf16.mxu0 %v2099_v17  ;;  %v2019_v60 = vmul.f32 %v5773_v20, %v1955_v30  ;;  %v2102_v17 = vpack.c.bf16 %v2014_v7, %v2012_v52  ;;  %v2023_v20 = vmul.f32 %v5757_v28, %v1959_v18  ;;  %v2027_v28 = vmul.f32 %v5741_v24, %v1963_v38  ;;  %v1968_v7 = vld [vmem:[%s7065_s16 + $0x100] sm:$0xff]  ;;  %v1977_v18 = vld [vmem:[%s7065_s16 + $0x148] sm:$0xff]  ;;  %v1979_v9 = vld [vmem:[%s7065_s16 + $0x158] sm:$0xff] }
 0x67e   : >> { %v2031_v24 = vmul.f32 %v5725_v51, %v1967_v21  ;;  %v2035_v51 = vmul.f32 %v5709_v12, %v1971_v8  ;;  %v1980_v38 = vld [vmem:[%s7065_s16 + $0x160] sm:$0xff]  ;;  %v1991_v21 = vld [vmem:[%s7065_s16 + $0x1b8] sm:$0xff]  ;;  %v1993_v8 = vld [vmem:[%s7065_s16 + $0x1c8] sm:$0xff] }
 0x67f   : >> { %v2105_v55 = vpack.c.bf16 %v2019_v60, %v2017_v25  ;;  %v2107_v13 = vpack.c.bf16 %v2023_v20, %v2021_v29  ;;  %v1970_v25 = vld [vmem:[%s7065_s16 + $0x110] sm:$0xff]  ;;  %v1973_v60 = vld [vmem:[%s7065_s16 + $0x128] sm:$0xff]  ;;  %v1976_v20 = vld [vmem:[%s7065_s16 + $0x140] sm:$0xff] }
 0x684   : >> { %2331 = vmatmul.mubr.bf16.gmra.mrb[4].mxu0 %v2098_v10  ;;  %v1958_v10 = vld [vmem:[%s7065_s16 + $0xb0] sm:$0xff] }
 0x685   : >> { %2340 = vmatprep.mubr.bf16.mxu0 %v2101_v4  ;;  %v1961_v4 = vld [vmem:[%s7065_s16 + $0xc8] sm:$0xff]  ;;  %v2022_v62 = vmul.f32 %v5761_v0, %v1958_v10  ;;  %v2026_v0 = vmul.f32 %v5745_v35, %v1962_v33  ;;  %v2030_v35 = vmul.f32 %v5729_v48, %v1966_v49  ;;  %v2034_v48 = vmul.f32 %v5713_v3, %v1970_v25  ;;  %v1986_v33 = vld [vmem:[%s7065_s16 + $0x190] sm:$0xff]  ;;  %v1988_v49 = vld [vmem:[%s7065_s16 + $0x1a0] sm:$0xff] }
 0x686   : >> { %v2025_v37 = vmul.f32 %v5749_v27, %v1961_v4  ;;  %v2029_v27 = vmul.f32 %v5733_v6, %v1965_v16  ;;  %v2033_v6 = vmul.f32 %v5717_v14, %v1969_v32  ;;  %v2037_v14 = vmul.f32 %v5701_v5, %v1973_v60  ;;  %v1989_v16 = vld [vmem:[%s7065_s16 + $0x1a8] sm:$0xff]  ;;  %v1990_v32 = vld [vmem:[%s7065_s16 + $0x1b0] sm:$0xff] }
 0x687   : >> { %v2106_v50 = vpack.c.bf16 %v2022_v62, %v2020_v15  ;;  %v2108_v43 = vpack.c.bf16 %v2026_v0, %v2024_v1  ;;  %v2038_v3 = vmul.f32 %v5697_v46, %v1974_v59  ;;  %v2041_v5 = vmul.f32 %v5685_v56, %v1977_v18  ;;  %v1982_v15 = vld [vmem:[%s7065_s16 + $0x170] sm:$0xff]  ;;  %v1985_v62 = vld [vmem:[%s7065_s16 + $0x188] sm:$0xff]  ;;  %v8270_v1 = vld [vmem:[#allocation40_spill] sm:$0xff] }
 0x688   : >> { %v2109_v54 = vpack.c.bf16 %v2027_v28, %v2025_v37  ;;  %v2113_v52 = vpack.c.bf16 %v2035_v51, %v2033_v6  ;;  %v1987_v37 = vld [vmem:[%s7065_s16 + $0x198] sm:$0xff]  ;;  %v8269_v28 = vld [vmem:[#allocation38_spill] sm:$0xff] }
 0x689   : >> { %v8271_v0 = vld [vmem:[#allocation39_spill] sm:$0xff]  ;;  %v8277_v25 = vld [vmem:[#allocation30_spill] sm:$0xff] }
 0x68a   : >> { %v8275_v51 = vld [vmem:[#allocation35_spill] sm:$0xff] }
 0x68b   : >> { %v8279_v59 = vld [vmem:[#allocation31_spill] sm:$0xff] }
 0x68c   : >> { %2341 = vmatmul.mubr.bf16.gmra.mrb[8].mxu0 %v2100_v58  ;;  %v2111_v58 = vpack.c.bf16 %v2031_v24, %v2029_v27  ;;  %v8272_v27 = vld [vmem:[#allocation36_spill] sm:$0xff]  ;;  %v8273_v24 = vld [vmem:[#allocation34_spill] sm:$0xff] }
 0x68d   : >> { %2350 = vmatprep.mubr.bf16.mxu0 %v2103_v36  ;;  %v1964_v36 = vld [vmem:[%s7065_s16 + $0xe0] sm:$0xff] }
 0x68e   : >> { %v2028_v53 = vmul.f32 %v5737_v40, %v1964_v36  ;;  %v2032_v40 = vmul.f32 %v5721_v44, %v1968_v7  ;;  %v2036_v44 = vmul.f32 %v5705_v19, %v1972_v57  ;;  %v2040_v19 = vmul.f32 %v5689_v45, %v1976_v20  ;;  %v1998_v20 = vld [vmem:[%s7065_s16 + $0x1f0] sm:$0xff] }
 0x68f   : >> { %v2044_v45 = vmul.f32 %v5673_v47, %v1980_v38  ;;  %v2048_v47 = vmul.f32 %v8270_v1, %v1984_v22 }
 0x690   : >> { %v2110_v30 = vpack.c.bf16 %v2030_v35, %v2028_v53  ;;  %v2114_v34 = vpack.c.bf16 %v2038_v3, %v2036_v44  ;;  %v1995_v53 = vld [vmem:[%s7065_s16 + $0x1d8] sm:$0xff]  ;;  %v8274_v35 = vld [vmem:[#allocation37_spill] sm:$0xff]  ;;  %v8281_v3 = vld [vmem:[#allocation26_spill] sm:$0xff] }
 0x691   : >> { %v2052_v6 = vmul.f32 %v8274_v35, %v1988_v49  ;;  %v2059_v60 = vmul.f32 %v8277_v25, %v1995_v53 }
 0x694   : >> { %2351 = vmatmul.mubr.bf16.gmra.mrb[12].mxu0 %v2102_v17  ;;  %v1975_v17 = vld [vmem:[%s7065_s16 + $0x138] sm:$0xff] }
 0x695   : >> { %2360 = vmatprep.mubr.bf16.mxu0 %v2105_v55  ;;  %v2039_v12 = vmul.f32 %v5693_v42, %v1975_v17  ;;  %v2112_v55 = vpack.c.bf16 %v2034_v48, %v2032_v40  ;;  %v2043_v42 = vmul.f32 %v5677_v23, %v1979_v9  ;;  %v2047_v23 = vmul.f32 %v5661_v39, %v1983_v31  ;;  %v1992_v48 = vld [vmem:[%s7065_s16 + $0x1c0] sm:$0xff]  ;;  %v8283_v31 = vld [vmem:[#allocation27_spill] sm:$0xff] }
 0x696   : >> { %v2051_v39 = vmul.f32 %v8269_v28, %v1987_v37  ;;  %v8280_v9 = vld [vmem:[#allocation28_spill] sm:$0xff] }
 0x697   : >> { %v2115_v11 = vpack.c.bf16 %v2039_v12, %v2037_v14  ;;  %v2117_v29 = vpack.c.bf16 %v2043_v42, %v2041_v5  ;;  %v1994_v14 = vld [vmem:[%s7065_s16 + $0x1d0] sm:$0xff]  ;;  %v1997_v12 = vld [vmem:[%s7065_s16 + $0x1e8] sm:$0xff] }
 0x698   : >> { %v2058_v18 = vmul.f32 %v8279_v59, %v1994_v14  ;;  %v2061_v44 = vmul.f32 %v8280_v9, %v1997_v12 }
 0x69c   : >> { %2361 = vmatmul.mubr.bf16.gmra.mrb[16].mxu0 %v2104_v63  ;;  %v1978_v63 = vld [vmem:[%s7065_s16 + $0x150] sm:$0xff] }
 0x69d   : >> { %2370 = vmatprep.mubr.bf16.mxu0 %v2107_v13  ;;  %v1981_v13 = vld [vmem:[%s7065_s16 + $0x168] sm:$0xff]  ;;  %v2042_v46 = vmul.f32 %v5681_v2, %v1978_v63  ;;  %v2046_v2 = vmul.f32 %v5665_v26, %v1982_v15  ;;  %v2050_v26 = vmul.f32 %v8271_v0, %v1986_v33 }
 0x69e   : >> { %v2045_v56 = vmul.f32 %v5669_v61, %v1981_v13  ;;  %v2049_v61 = vmul.f32 %v5653_v41, %v1985_v62  ;;  %v2053_v41 = vmul.f32 %v8272_v27, %v1989_v16  ;;  %v8282_v63 = vld [vmem:[#allocation29_spill] sm:$0xff] }
 0x69f   : >> { %v2116_v10 = vpack.c.bf16 %v2042_v46, %v2040_v19  ;;  %v2062_v19 = vmul.f32 %v8283_v31, %v1998_v20 }
 0x6a0   : >> { %v2119_v4 = vpack.c.bf16 %v2047_v23, %v2045_v56  ;;  %v8284_v56 = vld [vmem:[#allocation16_spill] sm:$0xff] }
 0x6a4   : >> { %2371 = vmatmul.mubr.bf16.gmra.mrb[20].mxu0 %v2106_v50  ;;  %v2118_v50 = vpack.c.bf16 %v2046_v2, %v2044_v45 }
 0x6a5   : >> { %2380 = vmatprep.mubr.bf16.mxu0 %v2109_v54  ;;  %v2121_v54 = vpack.c.bf16 %v2051_v39, %v2049_v61 }
 0x6ac   : >> { %2381 = vmatmul.mubr.bf16.gmra.mrb[24].mxu0 %v2108_v43  ;;  %v2055_v43 = vmul.f32 %v8273_v24, %v1991_v21  ;;  %v7221_v24 = vld [vmem:[#allocation5 + $0x4] ss:$8 sps:$4 sm:$0xff]  }
 0x6ad   : >> { %2390 = vmatprep.mubr.bf16.mxu0 %v2111_v58  ;;  %v2120_v58 = vpack.c.bf16 %v2050_v26, %v2048_v47  ;;  %2737 = vmatprep.mubr.bf16.mxu1 %v7221_v24 }
 0x6ae   : >> { %v2123_v36 = vpack.c.bf16 %v2055_v43, %v2053_v41 }
 0x6b4   : >> { %2391 = vmatmul.mubr.bf16.gmra.mrb[28].mxu0 %v2110_v30  ;;  %v2054_v30 = vmul.f32 %v8275_v51, %v1990_v32 }
 0x6b5   : >> { %2400 = vmatprep.mubr.bf16.mxu0 %v2113_v52  ;;  %v8276_v52 = vld [vmem:[#allocation32_spill] sm:$0xff] }
 0x6b6   : >> { %v2057_v7 = vmul.f32 %v8276_v52, %v1993_v8  ;;  %v2122_v17 = vpack.c.bf16 %v2054_v30, %v2052_v6 }
 0x6b8   : >> { %v2125_v40 = vpack.c.bf16 %v2059_v60, %v2057_v7 }
 0x6bc   : >> { %2401 = vmatmul.mubr.bf16.gmra.mrb[32].mxu0 %v2112_v55  ;;  %v1999_v55 = vld [vmem:[%s7065_s16 + $0x1f8] sm:$0xff] }
 0x6bd   : >> { %2410 = vmatprep.mubr.bf16.mxu0 %v2115_v11  ;;  %v8278_v11 = vld [vmem:[#allocation33_spill] sm:$0xff]  ;;  %v2063_v5 = vmul.f32 %v8281_v3, %v1999_v55 }
 0x6be   : >> { %v2056_v57 = vmul.f32 %v8278_v11, %v1992_v48 }
 0x6c0   : >> { %v2124_v42 = vpack.c.bf16 %v2058_v18, %v2056_v57 }
 0x6c4   : >> { %2411 = vmatmul.mubr.bf16.gmra.mrb[36].mxu0 %v2114_v34  ;;  %v2127_v34 = vpack.c.bf16 %v2063_v5, %v2061_v44 }
 0x6c5   : >> { %2420 = vmatprep.mubr.bf16.mxu0 %v2117_v29  ;;  %v1996_v29 = vld [vmem:[%s7065_s16 + $0x1e0] sm:$0xff] }
 0x6c6   : >> { %v2060_v13 = vmul.f32 %v8282_v63, %v1996_v29 }
 0x6c8   : >> { %v2126_v46 = vpack.c.bf16 %v2062_v19, %v2060_v13 }
 0x6cc   : >> { %2421 = vmatmul.mubr.bf16.gmra.mrb[40].mxu0 %v2116_v10 }
 0x6cd   : >> { %2430 = vmatprep.mubr.bf16.mxu0 %v2119_v4 }
 0x6d4   : >> { %2431 = vmatmul.mubr.bf16.gmra.mrb[44].mxu0 %v2118_v50 }
 0x6d5   : >> { %2440 = vmatprep.mubr.bf16.mxu0 %v2121_v54 }
 0x6dc   : >> { %2441 = vmatmul.mubr.bf16.gmra.mrb[48].mxu0 %v2120_v58 }
 0x6dd   : >> { %2450 = vmatprep.mubr.bf16.mxu0 %v2123_v36 }
 0x6e4   : >> { %2451 = vmatmul.mubr.bf16.gmra.mrb[52].mxu0 %v2122_v17 }
 0x6e5   : >> { %2460 = vmatprep.mubr.bf16.mxu0 %v2125_v40 }
 0x6ec   : >> { %2461 = vmatmul.mubr.bf16.gmra.mrb[56].mxu0 %v2124_v42 }
 0x6ed   : >> { %2470 = vmatprep.mubr.bf16.mxu0 %v2127_v34 }
 0x6f4   : >> { %2471 = vmatmul.mubr.bf16.gmra.mrb[60].mxu0 %v2126_v46 }
 0x6f5   : >> { %3218 = vmatprep.mubr.bf16.mxu0 %v8284_v56 }
 0x74f   : >> { %v2322_v23 = vpop.f32.mrb[0].mxu0 }
 0x750   : >> { %v7194_v10 = vpop.f32.mrb[1].mxu0 }
 0x751   : >> { %v2326_v4 = vpop.f32.mrb[2].mxu0 }
 0x752   : >> { %v2513_v38 = vpack.c.bf16 %v2326_v4, %v2322_v23  ;;  %v7196_v15 = vpop.f32.mrb[3].mxu0 }
 0x753   : >> { %v2529_v62 = vpack.c.bf16 %v7196_v15, %v7194_v10  ;;  %v5038_v10 = vld [vmem:[#allocation5] ss:$8 sps:$4 sm:$0xff]   ;;  %v5041_v15 = vld [vmem:[#allocation5 + $0x14] ss:$8 sps:$4 sm:$0xff]  }
 0x757   : >> { %v2332_v37 = vpop.f32.mrb[4].mxu0 }
 0x758   : >> { %v7200_v45 = vpop.f32.mrb[5].mxu0 }
 0x759   : >> { %v2336_v2 = vpop.f32.mrb[6].mxu0 }
 0x75a   : >> { %v2515_v61 = vpack.c.bf16 %v2336_v2, %v2332_v37  ;;  %v7202_v28 = vpop.f32.mrb[7].mxu0 }
 0x75b   : >> { %v2531_v39 = vpack.c.bf16 %v7202_v28, %v7200_v45  ;;  %v5044_v45 = vld [vmem:[#allocation5 + $0x24] ss:$8 sps:$4 sm:$0xff]   ;;  %v5046_v28 = vld [vmem:[#allocation5 + $0x20] ss:$8 sps:$4 sm:$0xff]  }
 0x75f   : >> { %v2342_v50 = vpop.f32.mrb[8].mxu0 }
 0x760   : >> { %v7206_v54 = vpop.f32.mrb[9].mxu0 }
 0x761   : >> { %v2346_v22 = vpop.f32.mrb[10].mxu0 }
 0x762   : >> { %v2517_v33 = vpack.c.bf16 %v2346_v22, %v2342_v50  ;;  %v7208_v16 = vpop.f32.mrb[11].mxu0 }
 0x763   : >> { %v2533_v21 = vpack.c.bf16 %v7208_v16, %v7206_v54  ;;  %v5049_v54 = vld [vmem:[#allocation5 + $0x30] ss:$8 sps:$4 sm:$0xff]   ;;  %v5050_v16 = vld [vmem:[#allocation5 + $0x44] ss:$8 sps:$4 sm:$0xff]  }
 0x767   : >> { %v7212_v1 = vpop.f32.mrb[12].mxu0 }
 0x768   : >> { %v7214_v47 = vpop.f32.mrb[13].mxu0 }
 0x769   : >> { %v2356_v0 = vpop.f32.mrb[14].mxu0 }
 0x76a   : >> { %v2519_v26 = vpack.c.bf16 %v2356_v0, %v7212_v1  ;;  %v7217_v27 = vpop.f32.mrb[15].mxu0 }
 0x76b   : >> { %v2535_v41 = vpack.c.bf16 %v7217_v27, %v7214_v47  ;;  %v5053_v47 = vld [vmem:[#allocation5 + $0x54] ss:$8 sps:$4 sm:$0xff]   ;;  %v5055_v27 = vld [vmem:[#allocation5 + $0x50] ss:$8 sps:$4 sm:$0xff]  }
 0x76f   : >> { %v7223_v43 = vpop.f32.mrb[16].mxu0 }
 0x770   : >> { %v7226_v58 = vpop.f32.mrb[17].mxu0 }
 0x771   : >> { %v2366_v36 = vpop.f32.mrb[18].mxu0 }
 0x772   : >> { %v2521_v49 = vpack.c.bf16 %v2366_v36, %v7223_v43  ;;  %v7229_v32 = vpop.f32.mrb[19].mxu0 }
 0x773   : >> { %v2537_v8 = vpack.c.bf16 %v7229_v32, %v7226_v58  ;;  %v5059_v58 = vld [vmem:[#allocation5 + $0x74] ss:$8 sps:$4 sm:$0xff]   ;;  %v5061_v32 = vld [vmem:[#allocation5 + $0x70] ss:$8 sps:$4 sm:$0xff]  }
 0x777   : >> { %v7233_v53 = vpop.f32.mrb[20].mxu0 }
 0x778   : >> { %v7235_v35 = vpop.f32.mrb[21].mxu0 }
 0x779   : >> { %v7237_v6 = vpop.f32.mrb[22].mxu0 }
 0x77a   : >> { %v2523_v51 = vpack.c.bf16 %v7237_v6, %v7233_v53  ;;  %v7241_v30 = vpop.f32.mrb[23].mxu0 }
 0x77b   : >> { %v2539_v52 = vpack.c.bf16 %v7241_v30, %v7235_v35  ;;  %v5064_v35 = vld [vmem:[#allocation5 + $0x80] ss:$8 sps:$4 sm:$0xff]   ;;  %v5067_v30 = vld [vmem:[#allocation5 + $0x90] ss:$8 sps:$4 sm:$0xff]  }
 0x77f   : >> { %v7245_v7 = vpop.f32.mrb[24].mxu0 }
 0x780   : >> { %v7247_v25 = vpop.f32.mrb[25].mxu0 }
 0x781   : >> { %v7249_v60 = vpop.f32.mrb[26].mxu0 }
 0x782   : >> { %v2525_v17 = vpack.c.bf16 %v7249_v60, %v7245_v7  ;;  %v7253_v40 = vpop.f32.mrb[27].mxu0  ;;  %v5070_v7 = vld [vmem:[#allocation5 + $0xa0] ss:$8 sps:$4 sm:$0xff]   ;;  %v5073_v60 = vld [vmem:[#allocation5 + $0xb0] ss:$8 sps:$4 sm:$0xff]  }
 0x783   : >> { %v2541_v48 = vpack.c.bf16 %v7253_v40, %v7247_v25  ;;  %v5071_v25 = vld [vmem:[#allocation5 + $0xb4] ss:$8 sps:$4 sm:$0xff]   ;;  %v5076_v40 = vld [vmem:[#allocation5 + $0xc0] ss:$8 sps:$4 sm:$0xff]  }
 0x787   : >> { %v7257_v14 = vpop.f32.mrb[28].mxu0 }
 0x788   : >> { %v7259_v12 = vpop.f32.mrb[29].mxu0 }
 0x789   : >> { %v7261_v55 = vpop.f32.mrb[30].mxu0 }
 0x78a   : >> { %v2527_v11 = vpack.c.bf16 %v7261_v55, %v7257_v14  ;;  %v7265_v57 = vpop.f32.mrb[31].mxu0  ;;  %v5079_v14 = vld [vmem:[#allocation5 + $0xd0] ss:$8 sps:$4 sm:$0xff]   ;;  %v5082_v55 = vld [vmem:[#allocation5 + $0xe0] ss:$8 sps:$4 sm:$0xff]  }
 0x78b   : >> { %v2543_v59 = vpack.c.bf16 %v7265_v57, %v7259_v12  ;;  %v5080_v12 = vld [vmem:[#allocation5 + $0xe4] ss:$8 sps:$4 sm:$0xff]   ;;  %v5085_v57 = vld [vmem:[#allocation5 + $0xf0] ss:$8 sps:$4 sm:$0xff]  }
 0x78f   : >> { %v2402_v18 = vpop.f32.mrb[32].mxu0 }
 0x790   : >> { %v7269_v9 = vpop.f32.mrb[33].mxu0 }
 0x791   : >> { %v2406_v44 = vpop.f32.mrb[34].mxu0 }
 0x792   : >> { %v2408_v3 = vpop.f32.mrb[35].mxu0  ;;  %v2514_v5 = vpack.c.bf16 %v2406_v44, %v2402_v18 }
 0x793   : >> { %v2530_v42 = vpack.c.bf16 %v2408_v3, %v7269_v9 }
 0x794   : >> { %2705 = vmatprep.subr.bf16.mxu1 %v2514_v5 }
 0x795   : >> { %2706 = vmatpush1.bf16.msra.mxu1 %v2513_v38 }
 0x797   : >> { %v2412_v34 = vpop.f32.mrb[36].mxu0 }
 0x798   : >> { %v2414_v29 = vpop.f32.mrb[37].mxu0 }
 0x799   : >> { %v2416_v20 = vpop.f32.mrb[38].mxu0 }
 0x79a   : >> { %v2516_v63 = vpack.c.bf16 %v2416_v20, %v2412_v34  ;;  %v2418_v13 = vpop.f32.mrb[39].mxu0 }
 0x79b   : >> { %v2532_v31 = vpack.c.bf16 %v2418_v13, %v2414_v29 }
 0x79c   : >> { %2707 = vmatprep.subr.bf16.mxu1 %v2516_v63 }
 0x79d   : >> { %2708 = vmatpush1.bf16.msra.mxu1 %v2515_v61 }
 0x79f   : >> { %v2422_v19 = vpop.f32.mrb[40].mxu0 }
 0x7a0   : >> { %v2424_v46 = vpop.f32.mrb[41].mxu0 }
 0x7a1   : >> { %v2426_v56 = vpop.f32.mrb[42].mxu0 }
 0x7a2   : >> { %v2518_v23 = vpack.c.bf16 %v2426_v56, %v2422_v19  ;;  %v2428_v4 = vpop.f32.mrb[43].mxu0 }
 0x7a3   : >> { %v2534_v37 = vpack.c.bf16 %v2428_v4, %v2424_v46 }
 0x7a4   : >> { %2709 = vmatprep.subr.bf16.mxu1 %v2518_v23 }
 0x7a5   : >> { %2710 = vmatpush1.bf16.msra.mxu1 %v2517_v33 }
 0x7a7   : >> { %v2432_v2 = vpop.f32.mrb[44].mxu0 }
 0x7a8   : >> { %v2434_v50 = vpop.f32.mrb[45].mxu0 }
 0x7a9   : >> { %v2436_v22 = vpop.f32.mrb[46].mxu0 }
 0x7aa   : >> { %v2520_v38 = vpack.c.bf16 %v2436_v22, %v2432_v2  ;;  %v2438_v1 = vpop.f32.mrb[47].mxu0 }
 0x7ab   : >> { %v2536_v0 = vpack.c.bf16 %v2438_v1, %v2434_v50 }
 0x7ac   : >> { %2711 = vmatprep.subr.bf16.mxu1 %v2520_v38 }
 0x7ad   : >> { %2712 = vmatpush1.bf16.msra.mxu1 %v2519_v26 }
 0x7af   : >> { %v2442_v43 = vpop.f32.mrb[48].mxu0 }
 0x7b0   : >> { %v2444_v36 = vpop.f32.mrb[49].mxu0 }
 0x7b1   : >> { %v2446_v53 = vpop.f32.mrb[50].mxu0 }
 0x7b2   : >> { %v2522_v61 = vpack.c.bf16 %v2446_v53, %v2442_v43  ;;  %v2448_v6 = vpop.f32.mrb[51].mxu0 }
 0x7b3   : >> { %v2538_v18 = vpack.c.bf16 %v2448_v6, %v2444_v36 }
 0x7b4   : >> { %2713 = vmatprep.subr.bf16.mxu1 %v2522_v61 }
 0x7b5   : >> { %2714 = vmatpush1.bf16.msra.mxu1 %v2521_v49 }
 0x7b7   : >> { %v2452_v9 = vpop.f32.mrb[52].mxu0 }
 0x7b8   : >> { %v2454_v44 = vpop.f32.mrb[53].mxu0 }
 0x7b9   : >> { %v2456_v3 = vpop.f32.mrb[54].mxu0 }
 0x7ba   : >> { %v2524_v33 = vpack.c.bf16 %v2456_v3, %v2452_v9  ;;  %v2458_v5 = vpop.f32.mrb[55].mxu0 }
 0x7bb   : >> { %v2540_v34 = vpack.c.bf16 %v2458_v5, %v2454_v44 }
 0x7bc   : >> { %2715 = vmatprep.subr.bf16.mxu1 %v2524_v33 }
 0x7bd   : >> { %2716 = vmatpush1.bf16.msra.mxu1 %v2523_v51  ;;  %v5065_v51 = vld [vmem:[#allocation5 + $0x94] ss:$8 sps:$4 sm:$0xff]  }
 0x7bf   : >> { %v2462_v29 = vpop.f32.mrb[56].mxu0 }
 0x7c0   : >> { %v2464_v20 = vpop.f32.mrb[57].mxu0 }
 0x7c1   : >> { %v2466_v63 = vpop.f32.mrb[58].mxu0 }
 0x7c2   : >> { %v2526_v26 = vpack.c.bf16 %v2466_v63, %v2462_v29  ;;  %v2468_v13 = vpop.f32.mrb[59].mxu0 }
 0x7c3   : >> { %v2542_v19 = vpack.c.bf16 %v2468_v13, %v2464_v20 }
 0x7c4   : >> { %2717 = vmatprep.subr.bf16.mxu1 %v2526_v26 }
 0x7c5   : >> { %2718 = vmatpush1.bf16.msra.mxu1 %v2525_v17  ;;  %v5074_v17 = vld [vmem:[#allocation5 + $0xc4] ss:$8 sps:$4 sm:$0xff]  }
 0x7c7   : >> { %v2472_v49 = vpop.f32.mrb[60].mxu0 }
 0x7c8   : >> { %v2474_v46 = vpop.f32.mrb[61].mxu0 }
 0x7c9   : >> { %v2476_v56 = vpop.f32.mrb[62].mxu0 }
 0x7ca   : >> { %v2528_v23 = vpack.c.bf16 %v2476_v56, %v2472_v49  ;;  %v2478_v4 = vpop.f32.mrb[63].mxu0 }
 0x7cb   : >> { %v2544_v2 = vpack.c.bf16 %v2478_v4, %v2474_v46 }
 0x7cc   : >> { %2719 = vmatprep.subr.bf16.mxu1 %v2528_v23 }
 0x7cd   : >> { %2720 = vmatpush1.bf16.msra.mxu1 %v2527_v11  ;;  %v5083_v11 = vld [vmem:[#allocation5 + $0xf4] ss:$8 sps:$4 sm:$0xff]  }
 0x7ce   : >> { %2721 = vmatprep.subr.bf16.mxu1 %v2530_v42 }
 0x7d1   : >> { %2722 = vmatpush1.bf16.msra.mxu1 %v2529_v62  ;;  %v5043_v62 = vld [vmem:[#allocation5 + $0x10] ss:$8 sps:$4 sm:$0xff]  }
 0x7d2   : >> { %2723 = vmatprep.subr.bf16.mxu1 %v2532_v31 }
 0x7d5   : >> { %2724 = vmatpush1.bf16.msra.mxu1 %v2531_v39  ;;  %v5047_v39 = vld [vmem:[#allocation5 + $0x34] ss:$8 sps:$4 sm:$0xff]  }
 0x7d6   : >> { %2725 = vmatprep.subr.bf16.mxu1 %v2534_v37 }
 0x7d9   : >> { %2726 = vmatpush1.bf16.msra.mxu1 %v2533_v21  ;;  %v5052_v21 = vld [vmem:[#allocation5 + $0x40] ss:$8 sps:$4 sm:$0xff]  }
 0x7da   : >> { %2727 = vmatprep.subr.bf16.mxu1 %v2536_v0 }
 0x7dd   : >> { %2728 = vmatpush1.bf16.msra.mxu1 %v2535_v41  ;;  %v5056_v41 = vld [vmem:[#allocation5 + $0x64] ss:$8 sps:$4 sm:$0xff]  }
 0x7de   : >> { %2729 = vmatprep.subr.bf16.mxu1 %v2538_v18 }
 0x7e1   : >> { %2730 = vmatpush1.bf16.msra.mxu1 %v2537_v8  ;;  %v5062_v8 = vld [vmem:[#allocation5 + $0x84] ss:$8 sps:$4 sm:$0xff]  }
 0x7e2   : >> { %2731 = vmatprep.subr.bf16.mxu1 %v2540_v34 }
 0x7e5   : >> { %2732 = vmatpush1.bf16.msra.mxu1 %v2539_v52  ;;  %v5068_v52 = vld [vmem:[#allocation5 + $0xa4] ss:$8 sps:$4 sm:$0xff]  }
 0x7e6   : >> { %2733 = vmatprep.subr.bf16.mxu1 %v2542_v19 }
 0x7e9   : >> { %2734 = vmatpush1.bf16.msra.mxu1 %v2541_v48  ;;  %v5077_v48 = vld [vmem:[#allocation5 + $0xd4] ss:$8 sps:$4 sm:$0xff]  }
 0x7ea   : >> { %2735 = vmatprep.subr.bf16.mxu1 %v2544_v2  ;;  %v2898_v2 = vld [vmem:[#allocation8] sm:$0xff] }
 0x7ed   : >> { %2736 = vmatpush1.bf16.msra.mxu1 %v2543_v59 }
 0x7ee   : >> { %3411 = vmatprep.subr.bf16.mxu1 %v7221_v24  ;;  %v5058_v24 = vld [vmem:[#allocation5 + $0x60] ss:$8 sps:$4 sm:$0xff]  }
 0x7f0   : >> { %2738 = vmatmul.mubr.bf16.vlgmr.msra.gmra.mrb[0].mxu1 %v5038_v10 }
 0x7f1   : >> { %2747 = vmatprep.mubr.bf16.mxu1 %v5041_v15  ;;  %3412 = vmatpush1.bf16.msra.mxu1 %v5038_v10  ;;  %v2962_v10 = vld [vmem:[#allocation8 + $0x100] sm:$0xff] }
 0x7f2   : >> { %3413 = vmatprep.subr.bf16.mxu1 %v5041_v15  ;;  %v2899_v15 = vld [vmem:[#allocation8 + $0x8] sm:$0xff] }
 0x7f5   : >> { %3414 = vmatpush1.bf16.msra.mxu1 %v5043_v62 }
 0x7f6   : >> { %3415 = vmatprep.subr.bf16.mxu1 %v5044_v45 }
 0x7f8   : >> { %2748 = vmatmul.mubr.bf16.gmra.mrb[4].mxu1 %v5043_v62  ;;  %v2963_v62 = vld [vmem:[#allocation8 + $0x108] sm:$0xff] }
 0x7f9   : >> { %2757 = vmatprep.mubr.bf16.mxu1 %v5044_v45  ;;  %3416 = vmatpush1.bf16.msra.mxu1 %v5046_v28  ;;  %v2900_v45 = vld [vmem:[#allocation8 + $0x10] sm:$0xff] }
 0x7fa   : >> { %3417 = vmatprep.subr.bf16.mxu1 %v5047_v39 }
 0x7fd   : >> { %3418 = vmatpush1.bf16.msra.mxu1 %v5049_v54 }
 0x7fe   : >> { %3419 = vmatprep.subr.bf16.mxu1 %v5050_v16 }
 0x800   : >> { %2758 = vmatmul.mubr.bf16.gmra.mrb[8].mxu1 %v5046_v28  ;;  %v2964_v28 = vld [vmem:[#allocation8 + $0x110] sm:$0xff] }
 0x801   : >> { %2767 = vmatprep.mubr.bf16.mxu1 %v5047_v39  ;;  %3420 = vmatpush1.bf16.msra.mxu1 %v5052_v21  ;;  %v2901_v39 = vld [vmem:[#allocation8 + $0x18] sm:$0xff] }
 0x802   : >> { %3421 = vmatprep.subr.bf16.mxu1 %v5053_v47 }
 0x805   : >> { %3422 = vmatpush1.bf16.msra.mxu1 %v5055_v27 }
 0x806   : >> { %3423 = vmatprep.subr.bf16.mxu1 %v5056_v41 }
 0x808   : >> { %2768 = vmatmul.mubr.bf16.gmra.mrb[12].mxu1 %v5049_v54  ;;  %v2965_v54 = vld [vmem:[#allocation8 + $0x118] sm:$0xff] }
 0x809   : >> { %2777 = vmatprep.mubr.bf16.mxu1 %v5050_v16  ;;  %3424 = vmatpush1.bf16.msra.mxu1 %v5058_v24 }
 0x80a   : >> { %3425 = vmatprep.subr.bf16.mxu1 %v5059_v58 }
 0x80d   : >> { %3426 = vmatpush1.bf16.msra.mxu1 %v5061_v32 }
 0x80e   : >> { %3427 = vmatprep.subr.bf16.mxu1 %v5062_v8 }
 0x810   : >> { %2778 = vmatmul.mubr.bf16.gmra.mrb[16].mxu1 %v5052_v21 }
 0x811   : >> { %2787 = vmatprep.mubr.bf16.mxu1 %v5053_v47  ;;  %3428 = vmatpush1.bf16.msra.mxu1 %v5064_v35 }
 0x812   : >> { %3429 = vmatprep.subr.bf16.mxu1 %v5065_v51 }
 0x815   : >> { %3430 = vmatpush1.bf16.msra.mxu1 %v5067_v30 }
 0x816   : >> { %3431 = vmatprep.subr.bf16.mxu1 %v5068_v52 }
 0x818   : >> { %2788 = vmatmul.mubr.bf16.gmra.mrb[20].mxu1 %v5055_v27 }
 0x819   : >> { %2797 = vmatprep.mubr.bf16.mxu1 %v5056_v41  ;;  %3432 = vmatpush1.bf16.msra.mxu1 %v5070_v7 }
 0x81a   : >> { %3433 = vmatprep.subr.bf16.mxu1 %v5071_v25 }
 0x81d   : >> { %3434 = vmatpush1.bf16.msra.mxu1 %v5073_v60 }
 0x81e   : >> { %3435 = vmatprep.subr.bf16.mxu1 %v5074_v17 }
 0x820   : >> { %2798 = vmatmul.mubr.bf16.gmra.mrb[24].mxu1 %v5058_v24 }
 0x821   : >> { %2807 = vmatprep.mubr.bf16.mxu1 %v5059_v58  ;;  %3436 = vmatpush1.bf16.msra.mxu1 %v5076_v40 }
 0x822   : >> { %3437 = vmatprep.subr.bf16.mxu1 %v5077_v48 }
 0x825   : >> { %3438 = vmatpush1.bf16.msra.mxu1 %v5079_v14 }
 0x826   : >> { %3439 = vmatprep.subr.bf16.mxu1 %v5080_v12 }
 0x828   : >> { %2808 = vmatmul.mubr.bf16.gmra.mrb[28].mxu1 %v5061_v32 }
 0x829   : >> { %2817 = vmatprep.mubr.bf16.mxu1 %v5062_v8  ;;  %3440 = vmatpush1.bf16.msra.mxu1 %v5082_v55 }
 0x82a   : >> { %3441 = vmatprep.subr.bf16.mxu1 %v5083_v11 }
 0x82d   : >> { %3442 = vmatpush1.bf16.msra.mxu1 %v5085_v57 }
 0x830   : >> { %2818 = vmatmul.mubr.bf16.gmra.mrb[32].mxu1 %v5064_v35 }
 0x831   : >> { %2827 = vmatprep.mubr.bf16.mxu1 %v5065_v51 }
 0x838   : >> { %2828 = vmatmul.mubr.bf16.gmra.mrb[36].mxu1 %v5067_v30 }
 0x839   : >> { %2837 = vmatprep.mubr.bf16.mxu1 %v5068_v52 }
 0x840   : >> { %2838 = vmatmul.mubr.bf16.gmra.mrb[40].mxu1 %v5070_v7 }
 0x841   : >> { %2847 = vmatprep.mubr.bf16.mxu1 %v5071_v25 }
 0x848   : >> { %2848 = vmatmul.mubr.bf16.gmra.mrb[44].mxu1 %v5073_v60 }
 0x849   : >> { %2857 = vmatprep.mubr.bf16.mxu1 %v5074_v17 }
 0x850   : >> { %2858 = vmatmul.mubr.bf16.gmra.mrb[48].mxu1 %v5076_v40 }
 0x851   : >> { %2867 = vmatprep.mubr.bf16.mxu1 %v5077_v48 }
 0x858   : >> { %2868 = vmatmul.mubr.bf16.gmra.mrb[52].mxu1 %v5079_v14 }
 0x859   : >> { %2877 = vmatprep.mubr.bf16.mxu1 %v5080_v12  ;;  %v2902_v12 = vld [vmem:[#allocation8 + $0x20] sm:$0xff] }
 0x860   : >> { %2878 = vmatmul.mubr.bf16.gmra.mrb[56].mxu1 %v5082_v55  ;;  %v2966_v55 = vld [vmem:[#allocation8 + $0x120] sm:$0xff] }
 0x861   : >> { %2887 = vmatprep.mubr.bf16.mxu1 %v5083_v11 }
 0x868   : >> { %2888 = vmatmul.mubr.bf16.gmra.mrb[60].mxu1 %v5085_v57 }
 0x8c3   : >> { %v2739_v59 = vpop.f32.mrb[0].mxu1 }
 0x8c4   : >> { %v2741_v42 = vpop.f32.mrb[1].mxu1  ;;  %v2930_v16 = vmul.f32 %v2898_v2, %v2739_v59  ;;  %v3058_v21 = vmul.f32 %v2962_v10, %v2739_v59 }
 0x8c5   : >> { %v2743_v31 = vpop.f32.mrb[2].mxu1  ;;  %v2931_v47 = vmul.f32 %v2899_v15, %v2741_v42  ;;  %v3059_v27 = vmul.f32 %v2963_v62, %v2741_v42 }
 0x8c6   : >> { %v2745_v37 = vpop.f32.mrb[3].mxu1  ;;  %v2932_v24 = vmul.f32 %v2900_v45, %v2743_v31  ;;  %v3060_v58 = vmul.f32 %v2964_v28, %v2743_v31  ;;  %v2903_v31 = vld [vmem:[#allocation8 + $0x28] sm:$0xff] }
 0x8c7   : >> { %v2933_v51 = vmul.f32 %v2901_v39, %v2745_v37  ;;  %v3061_v30 = vmul.f32 %v2965_v54, %v2745_v37 }
 0x8cb   : >> { %v7303_v50 = vpop.f32.mrb[4].mxu1 }
 0x8cc   : >> { %v7305_v22 = vpop.f32.mrb[5].mxu1 }
 0x8cd   : >> { %v7307_v38 = vpop.f32.mrb[6].mxu1 }
 0x8ce   : >> { %v7309_v1 = vpop.f32.mrb[7].mxu1 }
 0x8d3   : >> { %v7311_v0 = vpop.f32.mrb[8].mxu1 }
 0x8d4   : >> { %v7313_v43 = vpop.f32.mrb[9].mxu1 }
 0x8d5   : >> { %v7315_v36 = vpop.f32.mrb[10].mxu1 }
 0x8d6   : >> { %v7317_v53 = vpop.f32.mrb[11].mxu1 }
 0x8db   : >> { %v7319_v61 = vpop.f32.mrb[12].mxu1 }
 0x8dc   : >> { %v7321_v6 = vpop.f32.mrb[13].mxu1 }
 0x8dd   : >> { %v7323_v18 = vpop.f32.mrb[14].mxu1 }
 0x8de   : >> { %v7325_v9 = vpop.f32.mrb[15].mxu1 }
 0x8e3   : >> { %v7327_v44 = vpop.f32.mrb[16].mxu1 }
 0x8e4   : >> { %v7329_v3 = vpop.f32.mrb[17].mxu1 }
 0x8e5   : >> { %v7331_v33 = vpop.f32.mrb[18].mxu1 }
 0x8e6   : >> { %v7333_v5 = vpop.f32.mrb[19].mxu1 }
 0x8eb   : >> { %v7335_v34 = vpop.f32.mrb[20].mxu1 }
 0x8ec   : >> { %v7337_v29 = vpop.f32.mrb[21].mxu1 }
 0x8ed   : >> { %v7339_v20 = vpop.f32.mrb[22].mxu1 }
 0x8ee   : >> { %v7341_v63 = vpop.f32.mrb[23].mxu1 }
 0x8f3   : >> { %v7343_v26 = vpop.f32.mrb[24].mxu1 }
 0x8f4   : >> { %v7345_v13 = vpop.f32.mrb[25].mxu1 }
 0x8f5   : >> { %v7347_v19 = vpop.f32.mrb[26].mxu1 }
 0x8f6   : >> { %v7349_v49 = vpop.f32.mrb[27].mxu1 }
 0x8fb   : >> { %v7351_v46 = vpop.f32.mrb[28].mxu1 }
 0x8fc   : >> { %v7353_v56 = vpop.f32.mrb[29].mxu1 }
 0x8fd   : >> { %v7355_v23 = vpop.f32.mrb[30].mxu1 }
 0x8fe   : >> { %v7357_v4 = vpop.f32.mrb[31].mxu1 }
 0x903   : >> { %v2819_v41 = vpop.f32.mrb[32].mxu1 }
 0x904   : >> { %v2994_v32 = vmul.f32 %v2962_v10, %v2819_v41  ;;  %v3090_v8 = vmul.f32 %v2898_v2, %v2819_v41  ;;  %v2821_v35 = vpop.f32.mrb[33].mxu1  ;;  %v2967_v2 = vld [vmem:[#allocation8 + $0x128] sm:$0xff]  ;;  %v2905_v41 = vld [vmem:[#allocation8 + $0x38] sm:$0xff] }
 0x905   : >> { %v2995_v52 = vmul.f32 %v2963_v62, %v2821_v35  ;;  %v3091_v7 = vmul.f32 %v2899_v15, %v2821_v35  ;;  %v2823_v25 = vpop.f32.mrb[34].mxu1  ;;  %v2904_v15 = vld [vmem:[#allocation8 + $0x30] sm:$0xff] }
 0x906   : >> { %v3026_v60 = vsub.f32 %v2930_v16, %v2994_v32  ;;  %v7359_v17 = vadd.f32 %v3090_v8, %v3058_v21  ;;  %v2996_v40 = vmul.f32 %v2964_v28, %v2823_v25  ;;  %v3092_v48 = vmul.f32 %v2900_v45, %v2823_v25  ;;  %v2825_v14 = vpop.f32.mrb[35].mxu1  ;;  %v2968_v62 = vld [vmem:[#allocation8 + $0x130] sm:$0xff] }
 0x907   : >> { %v3027_v11 = vsub.f32 %v2931_v47, %v2995_v52  ;;  %v7361_v57 = vadd.f32 %v3091_v7, %v3059_v27  ;;  %v2997_v59 = vmul.f32 %v2965_v54, %v2825_v14  ;;  %v3093_v42 = vmul.f32 %v2901_v39, %v2825_v14  ;;  %v2969_v47 = vld [vmem:[#allocation8 + $0x138] sm:$0xff]  ;;  %v2907_v39 = vld [vmem:[#allocation8 + $0x48] sm:$0xff] }
 0x908   : >> { %v3028_v10 = vsub.f32 %v2932_v24, %v2996_v40  ;;  %v7363_v37 = vadd.f32 %v3092_v48, %v3060_v58  ;;  %v2934_v45 = vmul.f32 %v2902_v12, %v7303_v50  ;;  %v3062_v28 = vmul.f32 %v2966_v55, %v7303_v50 }
 0x909   : >> { %v3029_v16 = vsub.f32 %v2933_v51, %v2997_v59  ;;  %v7365_v21 = vadd.f32 %v3093_v42, %v3061_v30  ;;  %v2935_v54 = vmul.f32 %v2903_v31, %v7305_v22  ;;  %v3063_v24 = vmul.f32 %v2967_v2, %v7305_v22 }
 0x90a   : >> { %v3154_v27 = vpack.c.bf16 %v3028_v10, %v3026_v60  ;;  %v2936_v35 = vmul.f32 %v2904_v15, %v7307_v38  ;;  %v3064_v51 = vmul.f32 %v2968_v62, %v7307_v38  ;;  %v2937_v7 = vmul.f32 %v2905_v41, %v7309_v1  ;;  %v2906_v10 = vld [vmem:[#allocation8 + $0x40] sm:$0xff] }
 0x90b   : >> { %v2829_v58 = vpop.f32.mrb[36].mxu1  ;;  %v3155_v32 = vpack.c.bf16 %v3029_v16, %v3027_v11  ;;  %v3171_v8 = vpack.c.bf16 %v7365_v21, %v7361_v57  ;;  %v3065_v25 = vmul.f32 %v2969_v47, %v7309_v1  ;;  %v2970_v38 = vld [vmem:[#allocation8 + $0x140] sm:$0xff]  ;;  %v2971_v1 = vld [vmem:[#allocation8 + $0x148] sm:$0xff] }
 0x90c   : >> { %v2998_v50 = vmul.f32 %v2966_v55, %v2829_v58  ;;  %v3094_v30 = vmul.f32 %v2902_v12, %v2829_v58  ;;  %v2831_v52 = vpop.f32.mrb[37].mxu1 }
 0x90d   : >> { %v2999_v60 = vmul.f32 %v2967_v2, %v2831_v52  ;;  %v3095_v40 = vmul.f32 %v2903_v31, %v2831_v52  ;;  %v2833_v48 = vpop.f32.mrb[38].mxu1  ;;  %3186 = vmatprep.subr.bf16.mxu0 %v3155_v32  ;;  %v2908_v32 = vld [vmem:[#allocation8 + $0x50] sm:$0xff]  ;;  %v2911_v52 = vld [vmem:[#allocation8 + $0x68] sm:$0xff] }
 0x90e   : >> { %v3030_v22 = vsub.f32 %v2934_v45, %v2998_v50  ;;  %v7379_v14 = vadd.f32 %v3094_v30, %v3062_v28  ;;  %v3000_v11 = vmul.f32 %v2968_v62, %v2833_v48  ;;  %v3096_v59 = vmul.f32 %v2904_v15, %v2833_v48  ;;  %v2835_v42 = vpop.f32.mrb[39].mxu1  ;;  %3187 = vmatpush1.bf16.msra.mxu0 %v3154_v27  ;;  %v2972_v45 = vld [vmem:[#allocation8 + $0x150] sm:$0xff]  ;;  %v2909_v27 = vld [vmem:[#allocation8 + $0x58] sm:$0xff] }
 0x90f   : >> { %v3031_v55 = vsub.f32 %v2935_v54, %v2999_v60  ;;  %v7381_v12 = vadd.f32 %v3095_v40, %v3063_v24  ;;  %v3001_v16 = vmul.f32 %v2969_v47, %v2835_v42  ;;  %v3097_v58 = vmul.f32 %v2905_v41, %v2835_v42  ;;  %v2973_v54 = vld [vmem:[#allocation8 + $0x158] sm:$0xff] }
 0x910   : >> { %v3032_v2 = vsub.f32 %v2936_v35, %v3000_v11  ;;  %v7383_v31 = vadd.f32 %v3096_v59, %v3064_v51  ;;  %v2938_v15 = vmul.f32 %v2906_v10, %v7311_v0  ;;  %v3066_v62 = vmul.f32 %v2970_v38, %v7311_v0 }
 0x911   : >> { %v3033_v28 = vsub.f32 %v2937_v7, %v3001_v16  ;;  %v7385_v50 = vadd.f32 %v3097_v58, %v3065_v25  ;;  %v2939_v47 = vmul.f32 %v2907_v39, %v7313_v43  ;;  %v3067_v35 = vmul.f32 %v2971_v1, %v7313_v43 }
 0x912   : >> { %v3156_v24 = vpack.c.bf16 %v3032_v2, %v3030_v22  ;;  %v2940_v7 = vmul.f32 %v2908_v32, %v7315_v36  ;;  %v3068_v25 = vmul.f32 %v2972_v45, %v7315_v36  ;;  %v2941_v48 = vmul.f32 %v2909_v27, %v7317_v53  ;;  %v2974_v36 = vld [vmem:[#allocation8 + $0x160] sm:$0xff] }
 0x913   : >> { %v2839_v51 = vpop.f32.mrb[40].mxu1  ;;  %v3157_v30 = vpack.c.bf16 %v3033_v28, %v3031_v55  ;;  %v3069_v22 = vmul.f32 %v2973_v54, %v7317_v53  ;;  %v2910_v28 = vld [vmem:[#allocation8 + $0x60] sm:$0xff]  ;;  %v2975_v53 = vld [vmem:[#allocation8 + $0x168] sm:$0xff] }
 0x914   : >> { %v3002_v0 = vmul.f32 %v2970_v38, %v2839_v51  ;;  %v3098_v60 = vmul.f32 %v2906_v10, %v2839_v51  ;;  %v2841_v40 = vpop.f32.mrb[41].mxu1 }
 0x915   : >> { %v3003_v11 = vmul.f32 %v2971_v1, %v2841_v40  ;;  %v3099_v59 = vmul.f32 %v2907_v39, %v2841_v40  ;;  %v2843_v42 = vpop.f32.mrb[42].mxu1  ;;  %3188 = vmatprep.subr.bf16.mxu0 %v3157_v30  ;;  %v2912_v30 = vld [vmem:[#allocation8 + $0x70] sm:$0xff] }
 0x916   : >> { %v3034_v43 = vsub.f32 %v2938_v15, %v3002_v0  ;;  %v7399_v55 = vadd.f32 %v3098_v60, %v3066_v62  ;;  %v3004_v16 = vmul.f32 %v2972_v45, %v2843_v42  ;;  %v3100_v58 = vmul.f32 %v2908_v32, %v2843_v42  ;;  %v2845_v2 = vpop.f32.mrb[43].mxu1  ;;  %3189 = vmatpush1.bf16.msra.mxu0 %v3156_v24  ;;  %v2976_v15 = vld [vmem:[#allocation8 + $0x170] sm:$0xff]  ;;  %v2913_v24 = vld [vmem:[#allocation8 + $0x78] sm:$0xff] }
 0x917   : >> { %v3035_v38 = vsub.f32 %v2939_v47, %v3003_v11  ;;  %v7401_v10 = vadd.f32 %v3099_v59, %v3067_v35  ;;  %v3005_v51 = vmul.f32 %v2973_v54, %v2845_v2  ;;  %v3101_v41 = vmul.f32 %v2909_v27, %v2845_v2  ;;  %v2977_v47 = vld [vmem:[#allocation8 + $0x178] sm:$0xff] }
 0x918   : >> { %v3036_v1 = vsub.f32 %v2940_v7, %v3004_v16  ;;  %v7403_v39 = vadd.f32 %v3100_v58, %v3068_v25  ;;  %v2942_v32 = vmul.f32 %v2910_v28, %v7319_v61  ;;  %v3070_v45 = vmul.f32 %v2974_v36, %v7319_v61 }
 0x919   : >> { %v3037_v62 = vsub.f32 %v2941_v48, %v3005_v51  ;;  %v7405_v0 = vadd.f32 %v3101_v41, %v3069_v22  ;;  %v2943_v54 = vmul.f32 %v2911_v52, %v7321_v6  ;;  %v3071_v7 = vmul.f32 %v2975_v53, %v7321_v6  ;;  %v2915_v41 = vld [vmem:[#allocation8 + $0x88] sm:$0xff] }
 0x91a   : >> { %v3158_v35 = vpack.c.bf16 %v3036_v1, %v3034_v43  ;;  %v2944_v40 = vmul.f32 %v2912_v30, %v7323_v18  ;;  %v3072_v48 = vmul.f32 %v2976_v15, %v7323_v18  ;;  %v2945_v59 = vmul.f32 %v2913_v24, %v7325_v9  ;;  %v2978_v18 = vld [vmem:[#allocation8 + $0x180] sm:$0xff] }
 0x91b   : >> { %v2849_v25 = vpop.f32.mrb[44].mxu1  ;;  %v3159_v60 = vpack.c.bf16 %v3037_v62, %v3035_v38  ;;  %v3073_v42 = vmul.f32 %v2977_v47, %v7325_v9  ;;  %v2914_v62 = vld [vmem:[#allocation8 + $0x80] sm:$0xff]  ;;  %v2979_v9 = vld [vmem:[#allocation8 + $0x188] sm:$0xff]  ;;  %v8289_v57 = vpack.c.bf16 %v7403_v39, %v7399_v55  ;;  %v5088_v55 = vld [vmem:[#allocation7 + $0x10] ss:$8 sps:$4 sm:$0xff]  }
 0x91c   : >> { %v3006_v61 = vmul.f32 %v2974_v36, %v2849_v25  ;;  %v3102_v22 = vmul.f32 %v2910_v28, %v2849_v25  ;;  %v2851_v11 = vpop.f32.mrb[45].mxu1  ;;  %v5090_v39 = vld [vmem:[#allocation7 + $0x20] ss:$8 sps:$4 sm:$0xff]  }
 0x91d   : >> { %v3007_v43 = vmul.f32 %v2975_v53, %v2851_v11  ;;  %v3103_v16 = vmul.f32 %v2911_v52, %v2851_v11  ;;  %v2853_v58 = vpop.f32.mrb[46].mxu1  ;;  %3190 = vmatprep.subr.bf16.mxu0 %v3159_v60  ;;  %v2916_v60 = vld [vmem:[#allocation8 + $0x90] sm:$0xff] }
 0x91e   : >> { %v3038_v6 = vsub.f32 %v2942_v32, %v3006_v61  ;;  %v7419_v2 = vadd.f32 %v3102_v22, %v3070_v45  ;;  %v3008_v38 = vmul.f32 %v2976_v15, %v2853_v58  ;;  %v3104_v51 = vmul.f32 %v2912_v30, %v2853_v58  ;;  %v2855_v1 = vpop.f32.mrb[47].mxu1  ;;  %3191 = vmatpush1.bf16.msra.mxu0 %v3158_v35  ;;  %v2980_v32 = vld [vmem:[#allocation8 + $0x190] sm:$0xff]  ;;  %v2917_v35 = vld [vmem:[#allocation8 + $0x98] sm:$0xff] }
 0x91f   : >> { %v3039_v36 = vsub.f32 %v2943_v54, %v3007_v43  ;;  %v7421_v28 = vadd.f32 %v3103_v16, %v3071_v7  ;;  %v3009_v25 = vmul.f32 %v2977_v47, %v2855_v1  ;;  %v3105_v27 = vmul.f32 %v2913_v24, %v2855_v1  ;;  %v2981_v54 = vld [vmem:[#allocation8 + $0x198] sm:$0xff] }
 0x920   : >> { %v3040_v53 = vsub.f32 %v2944_v40, %v3008_v38  ;;  %v7423_v52 = vadd.f32 %v3104_v51, %v3072_v48  ;;  %v2946_v30 = vmul.f32 %v2914_v62, %v7327_v44  ;;  %v3074_v15 = vmul.f32 %v2978_v18, %v7327_v44 }
 0x921   : >> { %v3041_v45 = vsub.f32 %v2945_v59, %v3009_v25  ;;  %v7425_v61 = vadd.f32 %v3105_v27, %v3073_v42  ;;  %v2947_v47 = vmul.f32 %v2915_v41, %v7329_v3  ;;  %v3075_v40 = vmul.f32 %v2979_v9, %v7329_v3  ;;  %v2919_v27 = vld [vmem:[#allocation8 + $0xa8] sm:$0xff] }
 0x922   : >> { %v3160_v7 = vpack.c.bf16 %v3040_v53, %v3038_v6  ;;  %v2948_v11 = vmul.f32 %v2916_v60, %v7331_v33  ;;  %v3076_v59 = vmul.f32 %v2980_v32, %v7331_v33  ;;  %v2949_v16 = vmul.f32 %v2917_v35, %v7333_v5  ;;  %v2982_v33 = vld [vmem:[#allocation8 + $0x1a0] sm:$0xff] }
 0x923   : >> { %v2859_v48 = vpop.f32.mrb[48].mxu1  ;;  %v3161_v22 = vpack.c.bf16 %v3041_v45, %v3039_v36  ;;  %v3077_v58 = vmul.f32 %v2981_v54, %v7333_v5  ;;  %v2918_v45 = vld [vmem:[#allocation8 + $0xa0] sm:$0xff]  ;;  %v2983_v5 = vld [vmem:[#allocation8 + $0x1a8] sm:$0xff] }
 0x924   : >> { %v3010_v44 = vmul.f32 %v2978_v18, %v2859_v48  ;;  %v3106_v42 = vmul.f32 %v2914_v62, %v2859_v48  ;;  %v2861_v43 = vpop.f32.mrb[49].mxu1 }
 0x925   : >> { %v3011_v6 = vmul.f32 %v2979_v9, %v2861_v43  ;;  %v3107_v38 = vmul.f32 %v2915_v41, %v2861_v43  ;;  %v2863_v51 = vpop.f32.mrb[50].mxu1  ;;  %3192 = vmatprep.subr.bf16.mxu0 %v3161_v22  ;;  %v2920_v22 = vld [vmem:[#allocation8 + $0xb0] sm:$0xff] }
 0x926   : >> { %v3042_v3 = vsub.f32 %v2946_v30, %v3010_v44  ;;  %v7439_v1 = vadd.f32 %v3106_v42, %v3074_v15  ;;  %v3012_v36 = vmul.f32 %v2980_v32, %v2863_v51  ;;  %v3108_v25 = vmul.f32 %v2916_v60, %v2863_v51  ;;  %v2865_v53 = vpop.f32.mrb[51].mxu1  ;;  %3193 = vmatpush1.bf16.msra.mxu0 %v3160_v7  ;;  %v2984_v30 = vld [vmem:[#allocation8 + $0x1b0] sm:$0xff]  ;;  %v2921_v7 = vld [vmem:[#allocation8 + $0xb8] sm:$0xff] }
 0x927   : >> { %v3043_v18 = vsub.f32 %v2947_v47, %v3011_v6  ;;  %v7441_v62 = vadd.f32 %v3107_v38, %v3075_v40  ;;  %v3013_v48 = vmul.f32 %v2981_v54, %v2865_v53  ;;  %v3109_v24 = vmul.f32 %v2917_v35, %v2865_v53  ;;  %v2985_v47 = vld [vmem:[#allocation8 + $0x1b8] sm:$0xff] }
 0x928   : >> { %v3044_v9 = vsub.f32 %v2948_v11, %v3012_v36  ;;  %v7443_v41 = vadd.f32 %v3108_v25, %v3076_v59  ;;  %v2950_v60 = vmul.f32 %v2918_v45, %v7335_v34  ;;  %v3078_v32 = vmul.f32 %v2982_v33, %v7335_v34 }
 0x929   : >> { %v3045_v15 = vsub.f32 %v2949_v16, %v3013_v48  ;;  %v7445_v44 = vadd.f32 %v3109_v24, %v3077_v58  ;;  %v2951_v54 = vmul.f32 %v2919_v27, %v7337_v29  ;;  %v3079_v11 = vmul.f32 %v2983_v5, %v7337_v29  ;;  %v2923_v24 = vld [vmem:[#allocation8 + $0xc8] sm:$0xff] }
 0x92a   : >> { %v3162_v40 = vpack.c.bf16 %v3044_v9, %v3042_v3  ;;  %v2952_v43 = vmul.f32 %v2920_v22, %v7339_v20  ;;  %v3080_v16 = vmul.f32 %v2984_v30, %v7339_v20  ;;  %v2953_v38 = vmul.f32 %v2921_v7, %v7341_v63  ;;  %v2986_v20 = vld [vmem:[#allocation8 + $0x1c0] sm:$0xff] }
 0x92b   : >> { %v2869_v59 = vpop.f32.mrb[52].mxu1  ;;  %v3163_v42 = vpack.c.bf16 %v3045_v15, %v3043_v18  ;;  %v3081_v51 = vmul.f32 %v2985_v47, %v7341_v63  ;;  %v2922_v15 = vld [vmem:[#allocation8 + $0xc0] sm:$0xff]  ;;  %v2987_v63 = vld [vmem:[#allocation8 + $0x1c8] sm:$0xff]  ;;  %v8292_v21 = vpack.c.bf16 %v7445_v44, %v7441_v62  ;;  %v5099_v44 = vld [vmem:[#allocation7 + $0x74] ss:$8 sps:$4 sm:$0xff]  }
 0x92c   : >> { %v3014_v34 = vmul.f32 %v2982_v33, %v2869_v59  ;;  %v3110_v58 = vmul.f32 %v2918_v45, %v2869_v59  ;;  %v2871_v6 = vpop.f32.mrb[53].mxu1  ;;  %v5097_v62 = vld [vmem:[#allocation7 + $0x64] ss:$8 sps:$4 sm:$0xff]  }
 0x92d   : >> { %v3015_v3 = vmul.f32 %v2983_v5, %v2871_v6  ;;  %v3111_v36 = vmul.f32 %v2919_v27, %v2871_v6  ;;  %v2873_v25 = vpop.f32.mrb[54].mxu1  ;;  %3194 = vmatprep.subr.bf16.mxu0 %v3163_v42  ;;  %v2924_v42 = vld [vmem:[#allocation8 + $0xd0] sm:$0xff] }
 0x92e   : >> { %v3046_v29 = vsub.f32 %v2950_v60, %v3014_v34  ;;  %v7459_v53 = vadd.f32 %v3110_v58, %v3078_v32  ;;  %v3016_v18 = vmul.f32 %v2984_v30, %v2873_v25  ;;  %v3112_v48 = vmul.f32 %v2920_v22, %v2873_v25  ;;  %v2875_v9 = vpop.f32.mrb[55].mxu1  ;;  %3195 = vmatpush1.bf16.msra.mxu0 %v3162_v40  ;;  %v2988_v60 = vld [vmem:[#allocation8 + $0x1d0] sm:$0xff]  ;;  %v2925_v40 = vld [vmem:[#allocation8 + $0xd8] sm:$0xff] }
 0x92f   : >> { %v3047_v33 = vsub.f32 %v2951_v54, %v3015_v3  ;;  %v7461_v45 = vadd.f32 %v3111_v36, %v3079_v11  ;;  %v3017_v59 = vmul.f32 %v2985_v47, %v2875_v9  ;;  %v3113_v35 = vmul.f32 %v2921_v7, %v2875_v9  ;;  %v2989_v54 = vld [vmem:[#allocation8 + $0x1d8] sm:$0xff] }
 0x930   : >> { %v3048_v5 = vsub.f32 %v2952_v43, %v3016_v18  ;;  %v7463_v27 = vadd.f32 %v3112_v48, %v3080_v16  ;;  %v2954_v22 = vmul.f32 %v2922_v15, %v7343_v26  ;;  %v3082_v30 = vmul.f32 %v2986_v20, %v7343_v26 }
 0x931   : >> { %v3049_v32 = vsub.f32 %v2953_v38, %v3017_v59  ;;  %v7465_v34 = vadd.f32 %v3113_v35, %v3081_v51  ;;  %v2955_v47 = vmul.f32 %v2923_v24, %v7345_v13  ;;  %v3083_v43 = vmul.f32 %v2987_v63, %v7345_v13  ;;  %v2927_v35 = vld [vmem:[#allocation8 + $0xe8] sm:$0xff] }
 0x932   : >> { %v3164_v11 = vpack.c.bf16 %v3048_v5, %v3046_v29  ;;  %v2956_v6 = vmul.f32 %v2924_v42, %v7347_v19  ;;  %v3084_v38 = vmul.f32 %v2988_v60, %v7347_v19  ;;  %v2957_v36 = vmul.f32 %v2925_v40, %v7349_v49  ;;  %v2990_v19 = vld [vmem:[#allocation8 + $0x1e0] sm:$0xff] }
 0x933   : >> { %v2879_v16 = vpop.f32.mrb[56].mxu1  ;;  %v3165_v58 = vpack.c.bf16 %v3049_v32, %v3047_v33  ;;  %v3085_v25 = vmul.f32 %v2989_v54, %v7349_v49  ;;  %v2926_v32 = vld [vmem:[#allocation8 + $0xe0] sm:$0xff]  ;;  %v2991_v49 = vld [vmem:[#allocation8 + $0x1e8] sm:$0xff] }
 0x934   : >> { %v3018_v26 = vmul.f32 %v2986_v20, %v2879_v16  ;;  %v3114_v51 = vmul.f32 %v2922_v15, %v2879_v16  ;;  %v2881_v3 = vpop.f32.mrb[57].mxu1 }
 0x935   : >> { %v3019_v29 = vmul.f32 %v2987_v63, %v2881_v3  ;;  %v3115_v18 = vmul.f32 %v2923_v24, %v2881_v3  ;;  %v2883_v48 = vpop.f32.mrb[58].mxu1  ;;  %3196 = vmatprep.subr.bf16.mxu0 %v3165_v58  ;;  %v2928_v3 = vld [vmem:[#allocation8 + $0xf0] sm:$0xff] }
 0x936   : >> { %v3050_v13 = vsub.f32 %v2954_v22, %v3018_v26  ;;  %v7479_v9 = vadd.f32 %v3114_v51, %v3082_v30  ;;  %v3020_v33 = vmul.f32 %v2988_v60, %v2883_v48  ;;  %v3116_v59 = vmul.f32 %v2924_v42, %v2883_v48  ;;  %v2885_v5 = vpop.f32.mrb[59].mxu1  ;;  %3197 = vmatpush1.bf16.msra.mxu0 %v3164_v11  ;;  %v2992_v58 = vld [vmem:[#allocation8 + $0x1f0] sm:$0xff]  ;;  %v2929_v11 = vld [vmem:[#allocation8 + $0xf8] sm:$0xff] }
 0x937   : >> { %v3051_v20 = vsub.f32 %v2955_v47, %v3019_v29  ;;  %v7481_v15 = vadd.f32 %v3115_v18, %v3083_v43  ;;  %v3021_v16 = vmul.f32 %v2989_v54, %v2885_v5  ;;  %v3117_v7 = vmul.f32 %v2925_v40, %v2885_v5  ;;  %v2993_v26 = vld [vmem:[#allocation8 + $0x1f8] sm:$0xff] }
 0x938   : >> { %v3052_v63 = vsub.f32 %v2956_v6, %v3020_v33  ;;  %v3148_v24 = vadd.f32 %v3116_v59, %v3084_v38  ;;  %v2958_v60 = vmul.f32 %v2926_v32, %v7351_v46  ;;  %v3086_v42 = vmul.f32 %v2990_v19, %v7351_v46 }
 0x939   : >> { %v3053_v22 = vsub.f32 %v2957_v36, %v3021_v16  ;;  %v3149_v30 = vadd.f32 %v3117_v7, %v3085_v25  ;;  %v2959_v54 = vmul.f32 %v2927_v35, %v7353_v56  ;;  %v3087_v40 = vmul.f32 %v2991_v49, %v7353_v56 }
 0x93a   : >> { %v3166_v51 = vpack.c.bf16 %v3052_v63, %v3050_v13  ;;  %v3182_v47 = vpack.c.bf16 %v3148_v24, %v7479_v9  ;;  %v2960_v36 = vmul.f32 %v2928_v3, %v7355_v23  ;;  %v3088_v7 = vmul.f32 %v2992_v58, %v7355_v23 }
 0x93b   : >> { %v2889_v43 = vpop.f32.mrb[60].mxu1  ;;  %v3167_v6 = vpack.c.bf16 %v3053_v22, %v3051_v20  ;;  %v3183_v38 = vpack.c.bf16 %v3149_v30, %v7481_v15  ;;  %v2961_v18 = vmul.f32 %v2929_v11, %v7357_v4  ;;  %v3089_v48 = vmul.f32 %v2993_v26, %v7357_v4 }
 0x93c   : >> { %v3022_v25 = vmul.f32 %v2990_v19, %v2889_v43  ;;  %v3118_v29 = vmul.f32 %v2926_v32, %v2889_v43  ;;  %v2891_v46 = vpop.f32.mrb[61].mxu1 }
 0x93d   : >> { %v3023_v13 = vmul.f32 %v2991_v49, %v2891_v46  ;;  %v3119_v9 = vmul.f32 %v2927_v35, %v2891_v46  ;;  %v2893_v33 = vpop.f32.mrb[62].mxu1  ;;  %3198 = vmatprep.subr.bf16.mxu0 %v3167_v6  ;;  %v5110_v6 = vld [vmem:[#allocation7 + $0xc0] ss:$8 sps:$4 sm:$0xff]   ;;  %v5116_v46 = vld [vmem:[#allocation7 + $0xf0] ss:$8 sps:$4 sm:$0xff]  }
 0x93e   : >> { %v3054_v56 = vsub.f32 %v2958_v60, %v3022_v25  ;;  %v3150_v59 = vadd.f32 %v3118_v29, %v3086_v42  ;;  %v3024_v5 = vmul.f32 %v2992_v58, %v2893_v33  ;;  %v3120_v20 = vmul.f32 %v2928_v3, %v2893_v33  ;;  %v2895_v15 = vpop.f32.mrb[63].mxu1  ;;  %3199 = vmatpush1.bf16.msra.mxu0 %v3166_v51  ;;  %v5106_v51 = vld [vmem:[#allocation7 + $0xa0] ss:$8 sps:$4 sm:$0xff]   ;;  %v5115_v29 = vld [vmem:[#allocation7 + $0xf4] ss:$8 sps:$4 sm:$0xff]  }
 0x93f   : >> { %v3055_v16 = vsub.f32 %v2959_v54, %v3023_v13  ;;  %v3151_v63 = vadd.f32 %v3119_v9, %v3087_v40  ;;  %v3025_v23 = vmul.f32 %v2993_v26, %v2895_v15  ;;  %v3121_v19 = vmul.f32 %v2929_v11, %v2895_v15  ;;  %v5104_v11 = vld [vmem:[#allocation7 + $0x90] ss:$8 sps:$4 sm:$0xff]   ;;  %v5105_v26 = vld [vmem:[#allocation7 + $0xa4] ss:$8 sps:$4 sm:$0xff]   ;;  %v5114_v25 = vld [vmem:[#allocation7 + $0xe0] ss:$8 sps:$4 sm:$0xff]  }
 0x940   : >> { %v3056_v32 = vsub.f32 %v2960_v36, %v3024_v5  ;;  %v3152_v24 = vadd.f32 %v3120_v20, %v3088_v7  ;;  %v8285_v3 = vpack.c.bf16 %v7363_v37, %v7359_v17  ;;  %v8286_v58 = vpack.c.bf16 %v7385_v50, %v7381_v12  ;;  %v5087_v50 = vld [vmem:[#allocation7 + $0x14] ss:$8 sps:$4 sm:$0xff]   ;;  %v5108_v54 = vld [vmem:[#allocation7 + $0xb0] ss:$8 sps:$4 sm:$0xff]   ;;  %v5109_v40 = vld [vmem:[#allocation7 + $0xc4] ss:$8 sps:$4 sm:$0xff]  }
 0x941   : >> { %v3057_v22 = vsub.f32 %v2961_v18, %v3025_v23  ;;  %v3153_v30 = vadd.f32 %v3121_v19, %v3089_v48  ;;  %v8287_v60 = vpack.c.bf16 %v7383_v31, %v7379_v14  ;;  %v8288_v42 = vpack.c.bf16 %v7405_v0, %v7401_v10  ;;  %v5086_v31 = vld [vmem:[#allocation7] ss:$8 sps:$4 sm:$0xff]   ;;  %v5089_v10 = vld [vmem:[#allocation7 + $0x24] ss:$8 sps:$4 sm:$0xff]   ;;  %v5091_v0 = vld [vmem:[#allocation7 + $0x34] ss:$8 sps:$4 sm:$0xff]  }
 0x942   : >> { %v3168_v43 = vpack.c.bf16 %v3056_v32, %v3054_v56  ;;  %v3184_v4 = vpack.c.bf16 %v3152_v24, %v3150_v59  ;;  %v8290_v17 = vpack.c.bf16 %v7425_v61, %v7421_v28  ;;  %v8291_v37 = vpack.c.bf16 %v7423_v52, %v7419_v2  ;;  %v5092_v2 = vld [vmem:[#allocation7 + $0x30] ss:$8 sps:$4 sm:$0xff]   ;;  %v5093_v28 = vld [vmem:[#allocation7 + $0x44] ss:$8 sps:$4 sm:$0xff]   ;;  %v5094_v52 = vld [vmem:[#allocation7 + $0x40] ss:$8 sps:$4 sm:$0xff]  }
 0x943   : >> { %v3169_v49 = vpack.c.bf16 %v3057_v22, %v3055_v16  ;;  %v3185_v35 = vpack.c.bf16 %v3153_v30, %v3151_v63  ;;  %v8294_v14 = vpack.c.bf16 %v7465_v34, %v7461_v45  ;;  %v8295_v12 = vpack.c.bf16 %v7463_v27, %v7459_v53  ;;  %v5095_v61 = vld [vmem:[#allocation7 + $0x54] ss:$8 sps:$4 sm:$0xff]   ;;  %v5100_v53 = vld [vmem:[#allocation7 + $0x70] ss:$8 sps:$4 sm:$0xff]   ;;  %v5101_v45 = vld [vmem:[#allocation7 + $0x84] ss:$8 sps:$4 sm:$0xff]  }
 0x944   : >> { %v5102_v27 = vld [vmem:[#allocation7 + $0x80] ss:$8 sps:$4 sm:$0xff]   ;;  %v5103_v34 = vld [vmem:[#allocation7 + $0x94] ss:$8 sps:$4 sm:$0xff]   ;;  %v5112_v36 = vld [vmem:[#allocation7 + $0xd0] ss:$8 sps:$4 sm:$0xff]  }
 0x945   : >> { %3200 = vmatprep.subr.bf16.mxu0 %v3169_v49  ;;  %v5113_v7 = vld [vmem:[#allocation7 + $0xe4] ss:$8 sps:$4 sm:$0xff]  }
 0x946   : >> { %3201 = vmatpush1.bf16.msra.mxu0 %v3168_v43 }
 0x947   : >> { %3202 = vmatprep.subr.bf16.mxu0 %v3171_v8  ;;  %v8293_v8 = vpack.c.bf16 %v7443_v41, %v7439_v1  ;;  %v5096_v1 = vld [vmem:[#allocation7 + $0x50] ss:$8 sps:$4 sm:$0xff]   ;;  %v5098_v41 = vld [vmem:[#allocation7 + $0x60] ss:$8 sps:$4 sm:$0xff]  }
 0x94a   : >> { %3203 = vmatpush1.bf16.msra.mxu0 %v8285_v3 }
 0x94b   : >> { %3204 = vmatprep.subr.bf16.mxu0 %v8286_v58 }
 0x94e   : >> { %3205 = vmatpush1.bf16.msra.mxu0 %v8287_v60 }
 0x94f   : >> { %3206 = vmatprep.subr.bf16.mxu0 %v8288_v42 }
 0x952   : >> { %3207 = vmatpush1.bf16.msra.mxu0 %v8289_v57 }
 0x953   : >> { %3208 = vmatprep.subr.bf16.mxu0 %v8290_v17 }
 0x956   : >> { %3209 = vmatpush1.bf16.msra.mxu0 %v8291_v37 }
 0x957   : >> { %3210 = vmatprep.subr.bf16.mxu0 %v8292_v21 }
 0x95a   : >> { %3211 = vmatpush1.bf16.msra.mxu0 %v8293_v8 }
 0x95b   : >> { %3212 = vmatprep.subr.bf16.mxu0 %v8294_v14 }
 0x95e   : >> { %3213 = vmatpush1.bf16.msra.mxu0 %v8295_v12 }
 0x95f   : >> { %3214 = vmatprep.subr.bf16.mxu0 %v3183_v38  ;;  %v5111_v38 = vld [vmem:[#allocation7 + $0xd4] ss:$8 sps:$4 sm:$0xff]  }
 0x962   : >> { %3215 = vmatpush1.bf16.msra.mxu0 %v3182_v47  ;;  %v5107_v47 = vld [vmem:[#allocation7 + $0xb4] ss:$8 sps:$4 sm:$0xff]  }
 0x963   : >> { %3216 = vmatprep.subr.bf16.mxu0 %v3185_v35 }
 0x966   : >> { %3217 = vmatpush1.bf16.msra.mxu0 %v3184_v4 }
 0x969   : >> { %3219 = vmatmul.mubr.bf16.vlgmr.msra.gmra.mrb[64].mxu0 %v5086_v31 }
 0x96a   : >> { %3228 = vmatprep.mubr.bf16.mxu0 %v5087_v50 }
 0x971   : >> { %3229 = vmatmul.mubr.bf16.gmra.mrb[68].mxu0 %v5088_v55 }
 0x972   : >> { %3238 = vmatprep.mubr.bf16.mxu0 %v5089_v10 }
 0x979   : >> { %3239 = vmatmul.mubr.bf16.gmra.mrb[72].mxu0 %v5090_v39 }
 0x97a   : >> { %3248 = vmatprep.mubr.bf16.mxu0 %v5091_v0 }
 0x981   : >> { %3249 = vmatmul.mubr.bf16.gmra.mrb[76].mxu0 %v5092_v2 }
 0x982   : >> { %3258 = vmatprep.mubr.bf16.mxu0 %v5093_v28 }
 0x989   : >> { %3259 = vmatmul.mubr.bf16.gmra.mrb[80].mxu0 %v5094_v52 }
 0x98a   : >> { %3268 = vmatprep.mubr.bf16.mxu0 %v5095_v61 }
 0x991   : >> { %3269 = vmatmul.mubr.bf16.gmra.mrb[84].mxu0 %v5096_v1 }
 0x992   : >> { %3278 = vmatprep.mubr.bf16.mxu0 %v5097_v62 }
 0x999   : >> { %3279 = vmatmul.mubr.bf16.gmra.mrb[88].mxu0 %v5098_v41 }
 0x99a   : >> { %3288 = vmatprep.mubr.bf16.mxu0 %v5099_v44 }
 0x9a1   : >> { %3289 = vmatmul.mubr.bf16.gmra.mrb[92].mxu0 %v5100_v53 }
 0x9a2   : >> { %3298 = vmatprep.mubr.bf16.mxu0 %v5101_v45 }
 0x9a9   : >> { %3299 = vmatmul.mubr.bf16.gmra.mrb[96].mxu0 %v5102_v27 }
 0x9aa   : >> { %3308 = vmatprep.mubr.bf16.mxu0 %v5103_v34 }
 0x9b1   : >> { %3309 = vmatmul.mubr.bf16.gmra.mrb[100].mxu0 %v5104_v11 }
 0x9b2   : >> { %3318 = vmatprep.mubr.bf16.mxu0 %v5105_v26 }
 0x9b9   : >> { %3319 = vmatmul.mubr.bf16.gmra.mrb[104].mxu0 %v5106_v51 }
 0x9ba   : >> { %3328 = vmatprep.mubr.bf16.mxu0 %v5107_v47 }
 0x9c1   : >> { %3329 = vmatmul.mubr.bf16.gmra.mrb[108].mxu0 %v5108_v54 }
 0x9c2   : >> { %3338 = vmatprep.mubr.bf16.mxu0 %v5109_v40 }
 0x9c9   : >> { %3339 = vmatmul.mubr.bf16.gmra.mrb[112].mxu0 %v5110_v6 }
 0x9ca   : >> { %3348 = vmatprep.mubr.bf16.mxu0 %v5111_v38 }
 0x9d1   : >> { %3349 = vmatmul.mubr.bf16.gmra.mrb[116].mxu0 %v5112_v36 }
 0x9d2   : >> { %3358 = vmatprep.mubr.bf16.mxu0 %v5113_v7 }
 0x9d9   : >> { %3359 = vmatmul.mubr.bf16.gmra.mrb[120].mxu0 %v5114_v25 }
 0x9da   : >> { %3368 = vmatprep.mubr.bf16.mxu0 %v5115_v29 }
 0x9e1   : >> { %3369 = vmatmul.mubr.bf16.gmra.mrb[124].mxu0 %v5116_v46 }
 0xa3c   : >> { %v3220_v18 = vpop.f32.mrb[64].mxu0 }
 0xa3d   : >> { %v7529_v48 = vpop.f32.mrb[65].mxu0 }
 0xa3e   : >> { %v3224_v13 = vpop.f32.mrb[66].mxu0 }
 0xa3f   : >> { %v3379_v9 = vpack.c.bf16 %v3224_v13, %v3220_v18  ;;  %v7531_v33 = vpop.f32.mrb[67].mxu0 }
 0xa40   : >> { %v3395_v56 = vpack.c.bf16 %v7531_v33, %v7529_v48 }
 0xa44   : >> { %v3230_v59 = vpop.f32.mrb[68].mxu0 }
 0xa45   : >> { %v7535_v5 = vpop.f32.mrb[69].mxu0 }
 0xa46   : >> { %v3234_v20 = vpop.f32.mrb[70].mxu0 }
 0xa47   : >> { %v3381_v15 = vpack.c.bf16 %v3234_v20, %v3230_v59  ;;  %v7537_v16 = vpop.f32.mrb[71].mxu0 }
 0xa48   : >> { %v3397_v63 = vpack.c.bf16 %v7537_v16, %v7535_v5 }
 0xa4c   : >> { %v3240_v23 = vpop.f32.mrb[72].mxu0 }
 0xa4d   : >> { %v7541_v19 = vpop.f32.mrb[73].mxu0 }
 0xa4e   : >> { %v3244_v32 = vpop.f32.mrb[74].mxu0 }
 0xa4f   : >> { %v3383_v24 = vpack.c.bf16 %v3244_v32, %v3240_v23  ;;  %v7543_v22 = vpop.f32.mrb[75].mxu0 }
 0xa50   : >> { %v3399_v30 = vpack.c.bf16 %v7543_v22, %v7541_v19 }
 0xa54   : >> { %v3250_v43 = vpop.f32.mrb[76].mxu0 }
 0xa55   : >> { %v7547_v4 = vpop.f32.mrb[77].mxu0 }
 0xa56   : >> { %v3254_v49 = vpop.f32.mrb[78].mxu0 }
 0xa57   : >> { %v3385_v35 = vpack.c.bf16 %v3254_v49, %v3250_v43  ;;  %v7549_v3 = vpop.f32.mrb[79].mxu0 }
 0xa58   : >> { %v3401_v58 = vpack.c.bf16 %v7549_v3, %v7547_v4 }
 0xa5c   : >> { %v7553_v60 = vpop.f32.mrb[80].mxu0 }
 0xa5d   : >> { %v7555_v42 = vpop.f32.mrb[81].mxu0 }
 0xa5e   : >> { %v3264_v57 = vpop.f32.mrb[82].mxu0 }
 0xa5f   : >> { %v3387_v17 = vpack.c.bf16 %v3264_v57, %v7553_v60  ;;  %v7558_v37 = vpop.f32.mrb[83].mxu0 }
 0xa60   : >> { %v3403_v21 = vpack.c.bf16 %v7558_v37, %v7555_v42 }
 0xa64   : >> { %v7562_v8 = vpop.f32.mrb[84].mxu0 }
 0xa65   : >> { %v7564_v14 = vpop.f32.mrb[85].mxu0 }
 0xa66   : >> { %v7566_v12 = vpop.f32.mrb[86].mxu0 }
 0xa67   : >> { %v3389_v31 = vpack.c.bf16 %v7566_v12, %v7562_v8  ;;  %v7570_v50 = vpop.f32.mrb[87].mxu0 }
 0xa68   : >> { %v3405_v55 = vpack.c.bf16 %v7570_v50, %v7564_v14 }
 0xa6c   : >> { %v7574_v10 = vpop.f32.mrb[88].mxu0 }
 0xa6d   : >> { %v7576_v39 = vpop.f32.mrb[89].mxu0 }
 0xa6e   : >> { %v7578_v0 = vpop.f32.mrb[90].mxu0 }
 0xa6f   : >> { %v3391_v2 = vpack.c.bf16 %v7578_v0, %v7574_v10  ;;  %v7582_v28 = vpop.f32.mrb[91].mxu0 }
 0xa70   : >> { %v3407_v52 = vpack.c.bf16 %v7582_v28, %v7576_v39 }
 0xa74   : >> { %v7586_v61 = vpop.f32.mrb[92].mxu0 }
 0xa75   : >> { %v7588_v1 = vpop.f32.mrb[93].mxu0 }
 0xa76   : >> { %v7590_v62 = vpop.f32.mrb[94].mxu0 }
 0xa77   : >> { %v3393_v41 = vpack.c.bf16 %v7590_v62, %v7586_v61  ;;  %v7594_v44 = vpop.f32.mrb[95].mxu0 }
 0xa78   : >> { %v3409_v53 = vpack.c.bf16 %v7594_v44, %v7588_v1 }
 0xa7c   : >> { %v3300_v45 = vpop.f32.mrb[96].mxu0 }
 0xa7d   : >> { %v7598_v27 = vpop.f32.mrb[97].mxu0 }
 0xa7e   : >> { %v3304_v34 = vpop.f32.mrb[98].mxu0 }
 0xa7f   : >> { %v3380_v11 = vpack.c.bf16 %v3304_v34, %v3300_v45  ;;  %v3306_v26 = vpop.f32.mrb[99].mxu0 }
 0xa80   : >> { %v3396_v51 = vpack.c.bf16 %v3306_v26, %v7598_v27 }
 0xa81   : >> { %3443 = vmatprep.mubr.bf16.mxu1 %v3380_v11 }
 0xa82   : >> { %3444 = vmatmul.mubr.bf16.vlgmr.msra.gmra.mrb[64].mxu1 %v3379_v9 }
 0xa84   : >> { %v3310_v47 = vpop.f32.mrb[100].mxu0 }
 0xa85   : >> { %v3312_v54 = vpop.f32.mrb[101].mxu0 }
 0xa86   : >> { %v3314_v40 = vpop.f32.mrb[102].mxu0 }
 0xa87   : >> { %v3382_v6 = vpack.c.bf16 %v3314_v40, %v3310_v47  ;;  %v3316_v38 = vpop.f32.mrb[103].mxu0 }
 0xa88   : >> { %v3398_v36 = vpack.c.bf16 %v3316_v38, %v3312_v54 }
 0xa89   : >> { %3453 = vmatprep.mubr.bf16.mxu1 %v3382_v6 }
 0xa8a   : >> { %3454 = vmatmul.mubr.bf16.gmra.mrb[68].mxu1 %v3381_v15 }
 0xa8c   : >> { %v3320_v7 = vpop.f32.mrb[104].mxu0 }
 0xa8d   : >> { %v3322_v25 = vpop.f32.mrb[105].mxu0 }
 0xa8e   : >> { %v3324_v29 = vpop.f32.mrb[106].mxu0 }
 0xa8f   : >> { %v3384_v46 = vpack.c.bf16 %v3324_v29, %v3320_v7  ;;  %v3326_v18 = vpop.f32.mrb[107].mxu0 }
 0xa90   : >> { %v3400_v13 = vpack.c.bf16 %v3326_v18, %v3322_v25 }
 0xa91   : >> { %3463 = vmatprep.mubr.bf16.mxu1 %v3384_v46 }
 0xa92   : >> { %3464 = vmatmul.mubr.bf16.gmra.mrb[72].mxu1 %v3383_v24 }
 0xa94   : >> { %v3330_v59 = vpop.f32.mrb[108].mxu0 }
 0xa95   : >> { %v3332_v20 = vpop.f32.mrb[109].mxu0 }
 0xa96   : >> { %v3334_v23 = vpop.f32.mrb[110].mxu0 }
 0xa97   : >> { %v3386_v9 = vpack.c.bf16 %v3334_v23, %v3330_v59  ;;  %v3336_v32 = vpop.f32.mrb[111].mxu0 }
 0xa98   : >> { %v3402_v43 = vpack.c.bf16 %v3336_v32, %v3332_v20 }
 0xa99   : >> { %3473 = vmatprep.mubr.bf16.mxu1 %v3386_v9 }
 0xa9a   : >> { %3474 = vmatmul.mubr.bf16.gmra.mrb[76].mxu1 %v3385_v35 }
 0xa9c   : >> { %v3340_v49 = vpop.f32.mrb[112].mxu0 }
 0xa9d   : >> { %v3342_v60 = vpop.f32.mrb[113].mxu0 }
 0xa9e   : >> { %v3344_v57 = vpop.f32.mrb[114].mxu0 }
 0xa9f   : >> { %v3388_v15 = vpack.c.bf16 %v3344_v57, %v3340_v49  ;;  %v3346_v8 = vpop.f32.mrb[115].mxu0 }
 0xaa0   : >> { %v3404_v12 = vpack.c.bf16 %v3346_v8, %v3342_v60 }
 0xaa1   : >> { %3483 = vmatprep.mubr.bf16.mxu1 %v3388_v15 }
 0xaa2   : >> { %3484 = vmatmul.mubr.bf16.gmra.mrb[80].mxu1 %v3387_v17 }
 0xaa4   : >> { %v3350_v45 = vpop.f32.mrb[116].mxu0 }
 0xaa5   : >> { %v3352_v27 = vpop.f32.mrb[117].mxu0 }
 0xaa6   : >> { %v3354_v34 = vpop.f32.mrb[118].mxu0 }
 0xaa7   : >> { %v3390_v24 = vpack.c.bf16 %v3354_v34, %v3350_v45  ;;  %v3356_v11 = vpop.f32.mrb[119].mxu0 }
 0xaa8   : >> { %v3406_v26 = vpack.c.bf16 %v3356_v11, %v3352_v27 }
 0xaa9   : >> { %3493 = vmatprep.mubr.bf16.mxu1 %v3390_v24 }
 0xaaa   : >> { %3494 = vmatmul.mubr.bf16.gmra.mrb[84].mxu1 %v3389_v31 }
 0xaac   : >> { %v3360_v47 = vpop.f32.mrb[120].mxu0 }
 0xaad   : >> { %v3362_v54 = vpop.f32.mrb[121].mxu0 }
 0xaae   : >> { %v3364_v40 = vpop.f32.mrb[122].mxu0 }
 0xaaf   : >> { %v3392_v35 = vpack.c.bf16 %v3364_v40, %v3360_v47  ;;  %v3366_v6 = vpop.f32.mrb[123].mxu0 }
 0xab0   : >> { %v3408_v38 = vpack.c.bf16 %v3366_v6, %v3362_v54 }
 0xab1   : >> { %3503 = vmatprep.mubr.bf16.mxu1 %v3392_v35 }
 0xab2   : >> { %3504 = vmatmul.mubr.bf16.gmra.mrb[88].mxu1 %v3391_v2 }
 0xab4   : >> { %v3370_v17 = vpop.f32.mrb[124].mxu0 }
 0xab5   : >> { %v3372_v7 = vpop.f32.mrb[125].mxu0 }
 0xab6   : >> { %v3374_v25 = vpop.f32.mrb[126].mxu0 }
 0xab7   : >> { %v3394_v29 = vpack.c.bf16 %v3374_v25, %v3370_v17  ;;  %v3376_v46 = vpop.f32.mrb[127].mxu0 }
 0xab8   : >> { %v3410_v18 = vpack.c.bf16 %v3376_v46, %v3372_v7 }
 0xab9   : >> { %3513 = vmatprep.mubr.bf16.mxu1 %v3394_v29 }
 0xaba   : >> { %3514 = vmatmul.mubr.bf16.gmra.mrb[92].mxu1 %v3393_v41 }
 0xabb   : >> { %3523 = vmatprep.mubr.bf16.mxu1 %v3396_v51 }
 0xac2   : >> { %3524 = vmatmul.mubr.bf16.gmra.mrb[96].mxu1 %v3395_v56 }
 0xac3   : >> { %3533 = vmatprep.mubr.bf16.mxu1 %v3398_v36 }
 0xaca   : >> { %3534 = vmatmul.mubr.bf16.gmra.mrb[100].mxu1 %v3397_v63 }
 0xacb   : >> { %3543 = vmatprep.mubr.bf16.mxu1 %v3400_v13 }
 0xad2   : >> { %3544 = vmatmul.mubr.bf16.gmra.mrb[104].mxu1 %v3399_v30 }
 0xad3   : >> { %3553 = vmatprep.mubr.bf16.mxu1 %v3402_v43 }
 0xada   : >> { %3554 = vmatmul.mubr.bf16.gmra.mrb[108].mxu1 %v3401_v58 }
 0xadb   : >> { %3563 = vmatprep.mubr.bf16.mxu1 %v3404_v12 }
 0xae2   : >> { %3564 = vmatmul.mubr.bf16.gmra.mrb[112].mxu1 %v3403_v21 }
 0xae3   : >> { %3573 = vmatprep.mubr.bf16.mxu1 %v3406_v26 }
 0xaea   : >> { %3574 = vmatmul.mubr.bf16.gmra.mrb[116].mxu1 %v3405_v55 }
 0xaeb   : >> { %3583 = vmatprep.mubr.bf16.mxu1 %v3408_v38 }
 0xaf2   : >> { %3584 = vmatmul.mubr.bf16.gmra.mrb[120].mxu1 %v3407_v52 }
 0xaf3   : >> { %3593 = vmatprep.mubr.bf16.mxu1 %v3410_v18 }
 0xafa   : >> { %3594 = vmatmul.mubr.bf16.gmra.mrb[124].mxu1 %v3409_v53 }
 0xb55   : >> { %v7631_v59 = vpop.f32.mrb[64].mxu1  }
 0xb56   : >> { %8296 = vst [vmem:[#allocation41_spill] sm:$0xff] %v7631_v59  ;;  %v7633_v48 = vpop.f32.mrb[65].mxu1  }
 0xb57   : >> { %8297 = vst [vmem:[#allocation42_spill] sm:$0xff] %v7633_v48  ;;  %v7635_v18 = vpop.f32.mrb[66].mxu1  }
 0xb58   : >> { %8298 = vst [vmem:[#allocation43_spill] sm:$0xff] %v7635_v18  ;;  %v7637_v56 = vpop.f32.mrb[67].mxu1  }
 0xb59   : >> { %8299 = vst [vmem:[#allocation44_spill] sm:$0xff] %v7637_v56 }
 0xb5d   : >> { %v7639_v5 = vpop.f32.mrb[68].mxu1  }
 0xb5e   : >> { %8300 = vst [vmem:[#allocation45_spill] sm:$0xff] %v7639_v5  ;;  %v7641_v63 = vpop.f32.mrb[69].mxu1  }
 0xb5f   : >> { %8301 = vst [vmem:[#allocation46_spill] sm:$0xff] %v7641_v63  ;;  %v7643_v19 = vpop.f32.mrb[70].mxu1  }
 0xb60   : >> { %8302 = vst [vmem:[#allocation47_spill] sm:$0xff] %v7643_v19  ;;  %v7645_v22 = vpop.f32.mrb[71].mxu1  }
 0xb61   : >> { %8303 = vst [vmem:[#allocation48_spill] sm:$0xff] %v7645_v22 }
 0xb65   : >> { %v7647_v30 = vpop.f32.mrb[72].mxu1  }
 0xb66   : >> { %8304 = vst [vmem:[#allocation49_spill] sm:$0xff] %v7647_v30  ;;  %v7649_v4 = vpop.f32.mrb[73].mxu1  }
 0xb67   : >> { %8305 = vst [vmem:[#allocation50_spill] sm:$0xff] %v7649_v4  ;;  %v7651_v3 = vpop.f32.mrb[74].mxu1  }
 0xb68   : >> { %8306 = vst [vmem:[#allocation51_spill] sm:$0xff] %v7651_v3  ;;  %v7653_v58 = vpop.f32.mrb[75].mxu1  }
 0xb69   : >> { %8307 = vst [vmem:[#allocation52_spill] sm:$0xff] %v7653_v58 }
 0xb6d   : >> { %v7655_v9 = vpop.f32.mrb[76].mxu1  }
 0xb6e   : >> { %8308 = vst [vmem:[#allocation53_spill] sm:$0xff] %v7655_v9  ;;  %v7657_v25 = vpop.f32.mrb[77].mxu1  }
 0xb6f   : >> { %8309 = vst [vmem:[#allocation54_spill] sm:$0xff] %v7657_v25  ;;  %v7659_v34 = vpop.f32.mrb[78].mxu1   ;;  %v8386_v18 = vld [vmem:[#allocation51_spill] sm:$0xff] }
 0xb70   : >> { %8310 = vst [vmem:[#allocation55_spill] sm:$0xff] %v7659_v34  ;;  %v7661_v60 = vpop.f32.mrb[79].mxu1   ;;  %v8384_v59 = vld [vmem:[#allocation52_spill] sm:$0xff]  ;;  %8387 = vst [vmem:[#allocation17_spill] sm:$0xff] %v8386_v18  ;;  %v8402_v18 = vld [vmem:[#allocation43_spill] sm:$0xff] }
 0xb71   : >> { %8311 = vst [vmem:[#allocation56_spill] sm:$0xff] %v7661_v60  ;;  %8385 = vst [vmem:[#allocation16_spill] sm:$0xff] %v8384_v59  ;;  %v8405_v59 = vld [vmem:[#allocation41_spill] sm:$0xff] }
 0xb72   : > { %v8411_v59 = vld [vmem:[#allocation45_spill] sm:$0xff] (%p7762_p10) }
 0xb75   : >> { %v7663_v15 = vpop.f32.mrb[80].mxu1  }
 0xb76   : >> { %8312 = vst [vmem:[#allocation57_spill] sm:$0xff] %v7663_v15  ;;  %v7665_v29 = vpop.f32.mrb[81].mxu1  }
 0xb77   : >> { %8313 = vst [vmem:[#allocation58_spill] sm:$0xff] %v7665_v29  ;;  %v7667_v62 = vpop.f32.mrb[82].mxu1  }
 0xb78   : >> { %8314 = vst [vmem:[#allocation59_spill] sm:$0xff] %v7667_v62  ;;  %v7669_v20 = vpop.f32.mrb[83].mxu1  }
 0xb79   : >> { %8315 = vst [vmem:[#allocation60_spill] sm:$0xff] %v7669_v20 }
 0xb7d   : >> { %v7671_v1 = vpop.f32.mrb[84].mxu1   ;;  %v8423_v60 = vld [vmem:[#allocation57_spill] sm:$0xff] (%p7762_p10) }
 0xb7e   : >> { %8316 = vst [vmem:[#allocation61_spill] sm:$0xff] %v7671_v1  ;;  %v7673_v37 = vpop.f32.mrb[85].mxu1   ;;  %v8424_v15 = vld [vmem:[#allocation58_spill] sm:$0xff] (%p7762_p10) }
 0xb7f   : >> { %8317 = vst [vmem:[#allocation62_spill] sm:$0xff] %v7673_v37  ;;  %v7675_v0 = vpop.f32.mrb[86].mxu1  }
 0xb80   : >> { %8318 = vst [vmem:[#allocation63_spill] sm:$0xff] %v7675_v0  ;;  %v7677_v28 = vpop.f32.mrb[87].mxu1  }
 0xb81   : >> { %8319 = vst [vmem:[#allocation64_spill] sm:$0xff] %v7677_v28  ;;  %v8416_v28 = vld [vmem:[#allocation50_spill] sm:$0xff] (%p7762_p10) }
 0xb85   : >> { %v7679_v53 = vpop.f32.mrb[88].mxu1  }
 0xb86   : >> { %8320 = vst [vmem:[#allocation65_spill] sm:$0xff] %v7679_v53  ;;  %v7681_v27 = vpop.f32.mrb[89].mxu1  }
 0xb87   : >> { %8321 = vst [vmem:[#allocation66_spill] sm:$0xff] %v7681_v27  ;;  %v7683_v35 = vpop.f32.mrb[90].mxu1   ;;  %v8425_v27 = vld [vmem:[#allocation59_spill] sm:$0xff] (%p7762_p10) }
 0xb88   : >> { %8322 = vst [vmem:[#allocation67_spill] sm:$0xff] %v7683_v35  ;;  %v7685_v24 = vpop.f32.mrb[91].mxu1   ;;  %v3613_v34 = vmul.f32 (%p7762_p10), %v8425_v27, %v8425_v27  ;;  %v8428_v35 = vld [vmem:[#allocation62_spill] sm:$0xff] (%p7762_p10)  ;;  %v8430_v25 = vld [vmem:[#allocation64_spill] sm:$0xff] (%p7762_p10) }
 0xb89   : >> { %8323 = vst [vmem:[#allocation68_spill] sm:$0xff] %v7685_v24  ;;  %v8426_v24 = vld [vmem:[#allocation60_spill] sm:$0xff] (%p7762_p10)  ;;  %v3647_v29 = vmul.f32 (%p7762_p10), %v8430_v25, %v8430_v25 }
 0xb8d   : >> { %v7687_v40 = vpop.f32.mrb[92].mxu1  }
 0xb8e   : >> { %8324 = vst [vmem:[#allocation69_spill] sm:$0xff] %v7687_v40  ;;  %v7689_v6 = vpop.f32.mrb[93].mxu1  }
 0xb8f   : >> { %8325 = vst [vmem:[#allocation70_spill] sm:$0xff] %v7689_v6  ;;  %v7691_v48 = vpop.f32.mrb[94].mxu1   ;;  %v3646_v6 = vmul.f32 (%p7762_p10), %v8428_v35, %v8428_v35 }
 0xb90   : >> { %8326 = vst [vmem:[#allocation71_spill] sm:$0xff] %v7691_v48  ;;  %v7693_v51 = vpop.f32.mrb[95].mxu1  }
 0xb91   : >> { %8327 = vst [vmem:[#allocation72_spill] sm:$0xff] %v7693_v51 }
 0xb95   : >> { %v7695_v44 = vpop.f32.mrb[96].mxu1  }
 0xb96   : >> { %8328 = vst [vmem:[#allocation73_spill] sm:$0xff] %v7695_v44  ;;  %v7697_v14 = vpop.f32.mrb[97].mxu1   ;;  %v8418_v44 = vld [vmem:[#allocation52_spill] sm:$0xff] (%p7762_p10) }
 0xb97   : >> { %8329 = vst [vmem:[#allocation74_spill] sm:$0xff] %v7697_v14  ;;  %v7699_v3 = vpop.f32.mrb[98].mxu1   ;;  %v8414_v14 = vld [vmem:[#allocation48_spill] sm:$0xff] (%p7762_p10)  ;;  %v3641_v53 = vmul.f32 (%p7762_p10), %v8418_v44, %v8418_v44 }
 0xb98   : >> { %8330 = vst [vmem:[#allocation75_spill] sm:$0xff] %v7699_v3  ;;  %v7701_v12 = vpop.f32.mrb[99].mxu1   ;;  %v8435_v3 = vld [vmem:[#allocation69_spill] sm:$0xff] (%p7762_p10) }
 0xb99   : >> { %8331 = vst [vmem:[#allocation76_spill] sm:$0xff] %v7701_v12  ;;  %v3644_v12 = vmul.f32 (%p7762_p10), %v8424_v15, %v8424_v15 }
 0xb9d   : >> { %v7703_v19 = vpop.f32.mrb[100].mxu1  }
 0xb9e   : >> { %8332 = vst [vmem:[#allocation77_spill] sm:$0xff] %v7703_v19  ;;  %v7705_v5 = vpop.f32.mrb[101].mxu1   ;;  %v8433_v19 = vld [vmem:[#allocation67_spill] sm:$0xff] (%p7762_p10) }
 0xb9f   : >> { %8333 = vst [vmem:[#allocation78_spill] sm:$0xff] %v7705_v5  ;;  %v7707_v46 = vpop.f32.mrb[102].mxu1  }
 0xba0   : >> { %8334 = vst [vmem:[#allocation79_spill] sm:$0xff] %v7707_v46  ;;  %v7709_v42 = vpop.f32.mrb[103].mxu1   ;;  %v8431_v46 = vld [vmem:[#allocation65_spill] sm:$0xff] (%p7762_p10) }
 0xba1   : >> { %8335 = vst [vmem:[#allocation80_spill] sm:$0xff] %v7709_v42  ;;  %v8413_v42 = vld [vmem:[#allocation47_spill] sm:$0xff] (%p7762_p10)  ;;  %v3616_v48 = vmul.f32 (%p7762_p10), %v8431_v46, %v8431_v46 }
 0xba2   : > { %v3607_v37 = vmul.f32 (%p7762_p10), %v8413_v42, %v8413_v42  ;;  %v8438_v42 = vld [vmem:[#allocation72_spill] sm:$0xff] (%p7762_p10) }
 0xba5   : >> { %v7711_v45 = vpop.f32.mrb[104].mxu1  }
 0xba6   : >> { %8336 = vst [vmem:[#allocation81_spill] sm:$0xff] %v7711_v45  ;;  %v7713_v56 = vpop.f32.mrb[105].mxu1  }
 0xba7   : >> { %8337 = vst [vmem:[#allocation82_spill] sm:$0xff] %v7713_v56  ;;  %v7715_v2 = vpop.f32.mrb[106].mxu1   ;;  %v8432_v56 = vld [vmem:[#allocation66_spill] sm:$0xff] (%p7762_p10) }
 0xba8   : >> { %8338 = vst [vmem:[#allocation83_spill] sm:$0xff] %v7715_v2  ;;  %v7717_v23 = vpop.f32.mrb[107].mxu1   ;;  %v3648_v5 = vmul.f32 (%p7762_p10), %v8432_v56, %v8432_v56 }
 0xba9   : >> { %8339 = vst [vmem:[#allocation84_spill] sm:$0xff] %v7717_v23  ;;  %v8421_v23 = vld [vmem:[#allocation55_spill] sm:$0xff] (%p7762_p10) }
 0xbad   : >> { %v7719_v47 = vpop.f32.mrb[108].mxu1  }
 0xbae   : >> { %8340 = vst [vmem:[#allocation85_spill] sm:$0xff] %v7719_v47  ;;  %v7721_v61 = vpop.f32.mrb[109].mxu1  }
 0xbaf   : >> { %8341 = vst [vmem:[#allocation86_spill] sm:$0xff] %v7721_v61  ;;  %v7723_v26 = vpop.f32.mrb[110].mxu1   ;;  %v3640_v61 = vmul.f32 (%p7762_p10), %v8416_v28, %v8416_v28 }
 0xbb0   : >> { %8342 = vst [vmem:[#allocation87_spill] sm:$0xff] %v7723_v26  ;;  %v7725_v39 = vpop.f32.mrb[111].mxu1   ;;  %v8427_v26 = vld [vmem:[#allocation61_spill] sm:$0xff] (%p7762_p10) }
 0xbb1   : >> { %8343 = vst [vmem:[#allocation88_spill] sm:$0xff] %v7725_v39  ;;  %v8415_v39 = vld [vmem:[#allocation49_spill] sm:$0xff] (%p7762_p10)  ;;  %v3614_v47 = vmul.f32 (%p7762_p10), %v8427_v26, %v8427_v26 }
 0xbb2   : > { %v3608_v2 = vmul.f32 (%p7762_p10), %v8415_v39, %v8415_v39 }
 0xbb4   : > { %v3672_v51 = vadd.f32 (%p7762_p10), %v3640_v61, %v3608_v2  ;;  %v8441_v2 = vld [vmem:[#allocation75_spill] sm:$0xff] (%p7762_p10)  ;;  %v8442_v61 = vld [vmem:[#allocation76_spill] sm:$0xff] (%p7762_p10) }
 0xbb5   : >> { %v7727_v10 = vpop.f32.mrb[112].mxu1   ;;  %v3621_v28 = vmul.f32 (%p7762_p10), %v8441_v2, %v8441_v2  ;;  %v8451_v27 = vld [vmem:[#allocation85_spill] sm:$0xff] (%p7762_p10) }
 0xbb6   : >> { %8344 = vst [vmem:[#allocation89_spill] sm:$0xff] %v7727_v10  ;;  %v7729_v41 = vpop.f32.mrb[113].mxu1   ;;  %3704 = vst [vmem:[%s6705_s24 + $0x20] sm:$0xff] (%p7762_p10), %v3672_v51  ;;  %v8452_v26 = vld [vmem:[#allocation86_spill] sm:$0xff] (%p7762_p10) }
 0xbb7   : >> { %8345 = vst [vmem:[#allocation90_spill] sm:$0xff] %v7729_v41  ;;  %v7731_v63 = vpop.f32.mrb[114].mxu1  }
 0xbb8   : >> { %8346 = vst [vmem:[#allocation91_spill] sm:$0xff] %v7731_v63  ;;  %v7733_v38 = vpop.f32.mrb[115].mxu1   ;;  %v3678_v63 = vadd.f32 (%p7762_p10), %v3646_v6, %v3614_v47  ;;  %v3658_v47 = vmul.f32 (%p7762_p10), %v8452_v26, %v8452_v26  ;;  %v8454_v6 = vld [vmem:[#allocation88_spill] sm:$0xff] (%p7762_p10) }
 0xbb9   : >> { %8347 = vst [vmem:[#allocation92_spill] sm:$0xff] %v7733_v38  ;;  %v8429_v38 = vld [vmem:[#allocation63_spill] sm:$0xff] (%p7762_p10) }
 0xbba   : > { %3710 = vst [vmem:[%s6705_s24 + $0x50] sm:$0xff] (%p7762_p10), %v3678_v63 }
 0xbbd   : >> { %v7735_v36 = vpop.f32.mrb[116].mxu1  }
 0xbbe   : >> { %8348 = vst [vmem:[#allocation93_spill] sm:$0xff] %v7735_v36  ;;  %v7737_v30 = vpop.f32.mrb[117].mxu1   ;;  %v8420_v36 = vld [vmem:[#allocation54_spill] sm:$0xff] (%p7762_p10) }
 0xbbf   : >> { %8349 = vst [vmem:[#allocation94_spill] sm:$0xff] %v7737_v30  ;;  %v7739_v58 = vpop.f32.mrb[118].mxu1   ;;  %v3642_v20 = vmul.f32 (%p7762_p10), %v8420_v36, %v8420_v36  ;;  %v8434_v30 = vld [vmem:[#allocation68_spill] sm:$0xff] (%p7762_p10)  ;;  %v8456_v25 = vld [vmem:[#allocation90_spill] sm:$0xff] (%p7762_p10) }
 0xbc0   : >> { %8350 = vst [vmem:[#allocation95_spill] sm:$0xff] %v7739_v58  ;;  %v8351_v16 = vmov %v7739_v58  ;;  %v7741_v49 = vpop.f32.mrb[119].mxu1  }
 0xbc1   : >> { %8352 = vst [vmem:[#allocation96_spill] sm:$0xff] %v7741_v49  ;;  %v8353_v31 = vmov %v7741_v49  ;;  %v8383_v58 = vmov %v8351_v16  ;;  %v8412_v16 = vld [vmem:[#allocation46_spill] sm:$0xff] (%p7762_p10) }
 0xbc2   : >> { %v8382_v49 = vmov %v8353_v31  ;;  %v3606_v31 = vmul.f32 (%p7762_p10), %v8411_v59, %v8411_v59  ;;  %v3638_v0 = vmul.f32 (%p7762_p10), %v8412_v16, %v8412_v16  ;;  %v8417_v16 = vld [vmem:[#allocation51_spill] sm:$0xff] (%p7762_p10)  ;;  %v3618_v58 = vmul.f32 (%p7762_p10), %v8435_v3, %v8435_v3 }
 0xbc3   : > { %v3609_v41 = vmul.f32 (%p7762_p10), %v8417_v16, %v8417_v16 }
 0xbc4   : > { %v3670_v1 = vadd.f32 (%p7762_p10), %v3638_v0, %v3606_v31  ;;  %v3611_v31 = vmul.f32 (%p7762_p10), %v8421_v23, %v8421_v23 }
 0xbc5   : >> { %v7743_v50 = vpop.f32.mrb[120].mxu1   ;;  %v3673_v9 = vadd.f32 (%p7762_p10), %v3641_v53, %v3609_v41  ;;  %v8444_v53 = vld [vmem:[#allocation78_spill] sm:$0xff] (%p7762_p10) }
 0xbc6   : >> { %8354 = vst [vmem:[#allocation97_spill] sm:$0xff] %v7743_v50  ;;  %v8355_v21 = vmov %v7743_v50  ;;  %v7745_v22 = vpop.f32.mrb[121].mxu1   ;;  %3702 = vst [vmem:[%s6705_s24 + $0x10] sm:$0xff] (%p7762_p10), %v3670_v1  ;;  %v3653_v1 = vmul.f32 (%p7762_p10), %v8442_v61, %v8442_v61  ;;  %v3654_v51 = vmul.f32 (%p7762_p10), %v8444_v53, %v8444_v53  ;;  %v8460_v3 = vld [vmem:[#allocation94_spill] sm:$0xff] (%p7762_p10) }
 0xbc7   : >> { %8356 = vst [vmem:[#allocation98_spill] sm:$0xff] %v7745_v22  ;;  %v7747_v57 = vpop.f32.mrb[122].mxu1   ;;  %v8379_v52 = vmov %v7745_v22  ;;  %v8381_v50 = vmov %v8355_v21  ;;  %3705 = vst [vmem:[%s6705_s24 + $0x28] sm:$0xff] (%p7762_p10), %v3673_v9 }
 0xbc8   : >> { %8358 = vst [vmem:[#allocation99_spill] sm:$0xff] %v7747_v57  ;;  %v8359_v7 = vmov %v7747_v57  ;;  %v7749_v54 = vpop.f32.mrb[123].mxu1   ;;  %v8380_v22 = vmov %v8379_v52  ;;  %v3639_v50 = vmul.f32 (%p7762_p10), %v8414_v14, %v8414_v14  ;;  %v8439_v14 = vld [vmem:[#allocation73_spill] sm:$0xff] (%p7762_p10)  ;;  %v3685_v36 = vadd.f32 (%p7762_p10), %v3653_v1, %v3621_v28 }
 0xbc9   : >> { %8360 = vst [vmem:[#allocation100_spill] sm:$0xff] %v7749_v54  ;;  %v8361_v43 = vmov %v7749_v54  ;;  %v8378_v57 = vmov %v8359_v7  ;;  %v8409_v7 = vld [vmem:[#allocation43_spill] sm:$0xff] (%p7762_p10)  ;;  %v3617_v22 = vmul.f32 (%p7762_p10), %v8433_v19, %v8433_v19  ;;  %v8459_v19 = vld [vmem:[#allocation93_spill] sm:$0xff] (%p7762_p10) }
 0xbca   : >> { %v8377_v54 = vmov %v8361_v43  ;;  %v8408_v43 = vld [vmem:[#allocation42_spill] sm:$0xff] (%p7762_p10)  ;;  %v3605_v52 = vmul.f32 (%p7762_p10), %v8409_v7, %v8409_v7  ;;  %v3671_v62 = vadd.f32 (%p7762_p10), %v3639_v50, %v3607_v37  ;;  %v3612_v57 = vmul.f32 (%p7762_p10), %v8423_v60, %v8423_v60  ;;  %4223 = vst [vmem:[%s6705_s24 + $0x88] sm:$0xff] (%p7762_p10), %v3685_v36 }
 0xbcb   : > { %v3651_v37 = vmul.f32 (%p7762_p10), %v8438_v42, %v8438_v42  ;;  %v3620_v50 = vmul.f32 (%p7762_p10), %v8439_v14, %v8439_v14 }
 0xbcc   : > { %3703 = vst [vmem:[%s6705_s24 + $0x18] sm:$0xff] (%p7762_p10), %v3671_v62  ;;  %v3676_v40 = vadd.f32 (%p7762_p10), %v3644_v12, %v3612_v57  ;;  %v8443_v62 = vld [vmem:[#allocation77_spill] sm:$0xff] (%p7762_p10)  ;;  %v8449_v57 = vld [vmem:[#allocation83_spill] sm:$0xff] (%p7762_p10)  ;;  %v8450_v12 = vld [vmem:[#allocation84_spill] sm:$0xff] (%p7762_p10) }
 0xbcd   : >> { %v7751_v55 = vpop.f32.mrb[124].mxu1   ;;  %v3622_v16 = vmul.f32 (%p7762_p10), %v8443_v62, %v8443_v62  ;;  %v3625_v15 = vmul.f32 (%p7762_p10), %v8449_v57, %v8449_v57 }
 0xbce   : >> { %8362 = vst [vmem:[#allocation101_spill] sm:$0xff] %v7751_v55  ;;  %v8363_v32 = vmov %v7751_v55  ;;  %v7753_v11 = vpop.f32.mrb[125].mxu1   ;;  %1867 = sbr.rel (!%p7762_p10) target bundleno = 1590 (0x636), region = 112  ;;  %3708 = vst [vmem:[%s6705_s24 + $0x40] sm:$0xff] (%p7762_p10), %v3676_v40  ;;  %v8464_v42 = vld [vmem:[#allocation98_spill] sm:$0xff] (%p7762_p10) }
 0xbcf   : >> { %8364 = vst [vmem:[#allocation102_spill] sm:$0xff] %v7753_v11  ;;  %v8365_v8 = vmov %v7753_v11  ;;  %v7755_v17 = vpop.f32.mrb[126].mxu1   ;;  %v8376_v55 = vmov %v8363_v32  ;;  %v8394_v32 = vld [vmem:[#allocation47_spill] sm:$0xff]  ;;  %v3686_v60 = vadd.f32 (%p7762_p10), %v3654_v51, %v3622_v16 }
 0xbd0   : >> { %8366 = vst [vmem:[#allocation103_spill] sm:$0xff] %v7755_v17  ;;  %v7757_v4 = vpop.f32.mrb[127].mxu1   ;;  %v8373_v33 = vmov %v7755_v17  ;;  %v8375_v11 = vmov %v8365_v8  ;;  %v8392_v8 = vld [vmem:[#allocation48_spill] sm:$0xff]  ;;  %8395 = vst [vmem:[#allocation21_spill] sm:$0xff] %v8394_v32  ;;  %v8403_v32 = vld [vmem:[#allocation42_spill] sm:$0xff] }
 0xbd1   : >> { %8368 = vst [vmem:[#allocation104_spill] sm:$0xff] %v7757_v4  ;;  %v8371_v13 = vmov %v7757_v4  ;;  %v8374_v17 = vmov %v8373_v33  ;;  %v8390_v33 = vld [vmem:[#allocation49_spill] sm:$0xff]  ;;  %8393 = vst [vmem:[#allocation20_spill] sm:$0xff] %v8392_v8  ;;  %v8400_v8 = vld [vmem:[#allocation44_spill] sm:$0xff]  ;;  %v3645_v11 = vmul.f32 (%p7762_p10), %v8426_v24, %v8426_v24 }
 0xbd2   : >> { %v8372_v4 = vmov %v8371_v13  ;;  %v8388_v13 = vld [vmem:[#allocation50_spill] sm:$0xff]  ;;  %8391 = vst [vmem:[#allocation19_spill] sm:$0xff] %v8390_v33  ;;  %v8398_v33 = vld [vmem:[#allocation45_spill] sm:$0xff]  ;;  %8401 = vst [vmem:[#allocation24_spill] sm:$0xff] %v8400_v8  ;;  %v3636_v8 = vmul.f32 (%p7762_p10), %v8408_v43, %v8408_v43  ;;  %v3615_v17 = vmul.f32 (%p7762_p10), %v8429_v38, %v8429_v38  ;;  %v3659_v38 = vmul.f32 (%p7762_p10), %v8454_v6, %v8454_v6 }
 0xbd3   : >> { %8389 = vst [vmem:[#allocation18_spill] sm:$0xff] %v8388_v13  ;;  %v8396_v13 = vld [vmem:[#allocation46_spill] sm:$0xff]  ;;  %8399 = vst [vmem:[#allocation23_spill] sm:$0xff] %v8398_v33  ;;  %v8422_v43 = vld [vmem:[#allocation56_spill] sm:$0xff] (%p7762_p10)  ;;  %v3677_v7 = vadd.f32 (%p7762_p10), %v3645_v11, %v3613_v34  ;;  %v3649_v4 = vmul.f32 (%p7762_p10), %v8434_v30, %v8434_v30  ;;  %v3626_v34 = vmul.f32 (%p7762_p10), %v8451_v27, %v8451_v27 }
 0xbd4   : >> { %8397 = vst [vmem:[#allocation22_spill] sm:$0xff] %v8396_v13  ;;  %8404 = vst [vmem:[#allocation25_spill] sm:$0xff] %v8403_v32  ;;  %v8407_v13 = vld [vmem:[#allocation41_spill] sm:$0xff] (%p7762_p10)  ;;  %v8410_v32 = vld [vmem:[#allocation44_spill] sm:$0xff] (%p7762_p10)  ;;  %v3643_v49 = vmul.f32 (%p7762_p10), %v8422_v43, %v8422_v43  ;;  %v3679_v18 = vadd.f32 (%p7762_p10), %v3647_v29, %v3615_v17  ;;  %v3660_v29 = vmul.f32 (%p7762_p10), %v8456_v25, %v8456_v25 }
 0xbd5   : > { %v3604_v33 = vmul.f32 %v8407_v13, %v8407_v13  ;;  %v3637_v21 = vmul.f32 %v8410_v32, %v8410_v32  ;;  %3709 = vst [vmem:[%s6705_s24 + $0x48] sm:$0xff] %v3677_v7  ;;  %v3680_v13 = vadd.f32 %v3648_v5, %v3616_v48  ;;  %v8437_v32 = vld [vmem:[#allocation71_spill] sm:$0xff]  ;;  %v3681_v0 = vadd.f32 %v3649_v4, %v3617_v22  ;;  %v8448_v43 = vld [vmem:[#allocation82_spill] sm:$0xff]  ;;  %v8455_v17 = vld [vmem:[#allocation89_spill] sm:$0xff] }
 0xbd6   : > { %v3675_v54 = vadd.f32 %v3643_v49, %v3611_v31  ;;  %v3619_v59 = vmul.f32 %v8437_v32, %v8437_v32  ;;  %3711 = vst [vmem:[%s6705_s24 + $0x58] sm:$0xff] %v3679_v18  ;;  %v8447_v31 = vld [vmem:[#allocation81_spill] sm:$0xff]  ;;  %v3656_v49 = vmul.f32 %v8448_v43, %v8448_v43  ;;  %4224 = vst [vmem:[%s6705_s24 + $0x90] sm:$0xff] %v3686_v60  ;;  %v8457_v48 = vld [vmem:[#allocation91_spill] sm:$0xff] }
 0xbd7   : > { %v3668_v55 = vadd.f32 %v3636_v8, %v3604_v33  ;;  %v3669_v10 = vadd.f32 %v3637_v21, %v3605_v52  ;;  %v8419_v21 = vld [vmem:[#allocation53_spill] sm:$0xff]  ;;  %v8436_v33 = vld [vmem:[#allocation70_spill] sm:$0xff]  ;;  %3712 = vst [vmem:[%s6705_s24 + $0x60] sm:$0xff] %v3680_v13  ;;  %3713 = vst [vmem:[%s6705_s24 + $0x68] sm:$0xff] %v3681_v0  ;;  %v3624_v9 = vmul.f32 %v8447_v31, %v8447_v31 }
 0xbd8   : > { %v3610_v52 = vmul.f32 %v8419_v21, %v8419_v21  ;;  %3707 = vst [vmem:[%s6705_s24 + $0x38] sm:$0xff] %v3675_v54  ;;  %v3650_v8 = vmul.f32 %v8436_v33, %v8436_v33  ;;  %v3683_v41 = vadd.f32 %v3651_v37, %v3619_v59  ;;  %v8445_v21 = vld [vmem:[#allocation79_spill] sm:$0xff]  ;;  %v3628_v7 = vmul.f32 %v8455_v17, %v8455_v17  ;;  %v8458_v5 = vld [vmem:[#allocation92_spill] sm:$0xff]  ;;  %v8463_v59 = vld [vmem:[#allocation97_spill] sm:$0xff] }
 0xbd9   : > { %3700 = vst [vmem:[%s6705_s24] sm:$0xff] %v3668_v55  ;;  %3701 = vst [vmem:[%s6705_s24 + $0x8] sm:$0xff] %v3669_v10  ;;  %v8440_v55 = vld [vmem:[#allocation74_spill] sm:$0xff]  ;;  %v3688_v11 = vadd.f32 %v3656_v49, %v3624_v9  ;;  %v8453_v54 = vld [vmem:[#allocation87_spill] sm:$0xff]  ;;  %v3690_v46 = vadd.f32 %v3658_v47, %v3626_v34  ;;  %v3629_v56 = vmul.f32 %v8457_v48, %v8457_v48 }
 0xbda   : > { %v3674_v45 = vadd.f32 %v3642_v20, %v3610_v52  ;;  %v3652_v10 = vmul.f32 %v8440_v55, %v8440_v55  ;;  %v3682_v39 = vadd.f32 %v3650_v8, %v3618_v58  ;;  %v3623_v52 = vmul.f32 %v8445_v21, %v8445_v21  ;;  %v8446_v20 = vld [vmem:[#allocation80_spill] sm:$0xff]  ;;  %3715 = vst [vmem:[%s6705_s24 + $0x78] sm:$0xff] %v3683_v41  ;;  %v8461_v18 = vld [vmem:[#allocation95_spill] sm:$0xff]  ;;  %v8467_v2 = vld [vmem:[#allocation101_spill] sm:$0xff] }
 0xbdb   : > { %v3655_v23 = vmul.f32 %v8446_v20, %v8446_v20  ;;  %v3627_v40 = vmul.f32 %v8453_v54, %v8453_v54  ;;  %4226 = vst [vmem:[%s6705_s24 + $0xa0] sm:$0xff] %v3688_v11  ;;  %v3661_v63 = vmul.f32 %v8458_v5, %v8458_v5  ;;  %v3630_v22 = vmul.f32 %v8459_v19, %v8459_v19  ;;  %v8462_v8 = vld [vmem:[#allocation96_spill] sm:$0xff]  ;;  %v8468_v62 = vld [vmem:[#allocation102_spill] sm:$0xff]  ;;  %v8469_v41 = vld [vmem:[#allocation103_spill] sm:$0xff] }
 0xbdc   : > { %3706 = vst [vmem:[%s6705_s24 + $0x30] sm:$0xff] %v3674_v45  ;;  %v3684_v44 = vadd.f32 %v3652_v10, %v3620_v50  ;;  %3714 = vst [vmem:[%s6705_s24 + $0x70] sm:$0xff] %v3682_v39  ;;  %v3657_v45 = vmul.f32 %v8450_v12, %v8450_v12  ;;  %v3692_v4 = vadd.f32 %v3660_v29, %v3628_v7  ;;  %v8465_v50 = vld [vmem:[#allocation99_spill] sm:$0xff]  ;;  %v8466_v10 = vld [vmem:[#allocation100_spill] sm:$0xff] }
 0xbdd   : > { %v3687_v24 = vadd.f32 %v3655_v23, %v3623_v52  ;;  %v3691_v30 = vadd.f32 %v3659_v38, %v3627_v40  ;;  %v3662_v58 = vmul.f32 %v8460_v3, %v8460_v3  ;;  %v3631_v13 = vmul.f32 %v8461_v18, %v8461_v18  ;;  %4228 = vst [vmem:[%s6705_s24 + $0xb0] sm:$0xff] %v3690_v46  ;;  %v8470_v51 = vld [vmem:[#allocation104_spill] sm:$0xff] }
 0xbde   : > { %4222 = vst [vmem:[%s6705_s24 + $0x80] sm:$0xff] %v3684_v44  ;;  %v3689_v35 = vadd.f32 %v3657_v45, %v3625_v15  ;;  %v3693_v33 = vadd.f32 %v3661_v63, %v3629_v56  ;;  %v3663_v32 = vmul.f32 %v8462_v8, %v8462_v8  ;;  %v3632_v0 = vmul.f32 %v8463_v59, %v8463_v59 }
 0xbdf   : > { %4225 = vst [vmem:[%s6705_s24 + $0x98] sm:$0xff] %v3687_v24  ;;  %v3664_v37 = vmul.f32 %v8464_v42, %v8464_v42  ;;  %4229 = vst [vmem:[%s6705_s24 + $0xb8] sm:$0xff] %v3691_v30  ;;  %v3694_v14 = vadd.f32 %v3662_v58, %v3630_v22  ;;  %v3633_v55 = vmul.f32 %v8465_v50, %v8465_v50 }
 0xbe0   : > { %4227 = vst [vmem:[%s6705_s24 + $0xa8] sm:$0xff] %v3689_v35  ;;  %4230 = vst [vmem:[%s6705_s24 + $0xc0] sm:$0xff] %v3692_v4  ;;  %v3665_v39 = vmul.f32 %v8466_v10, %v8466_v10  ;;  %v3634_v28 = vmul.f32 %v8467_v2, %v8467_v2  ;;  %v3695_v61 = vadd.f32 %v3663_v32, %v3631_v13 }
 0xbe1   : > { %4231 = vst [vmem:[%s6705_s24 + $0xc8] sm:$0xff] %v3693_v33  ;;  %v3696_v1 = vadd.f32 %v3664_v37, %v3632_v0  ;;  %v3666_v16 = vmul.f32 %v8468_v62, %v8468_v62  ;;  %v3635_v44 = vmul.f32 %v8469_v41, %v8469_v41  ;;  %4232 = vst [vmem:[%s6705_s24 + $0xd0] sm:$0xff] %v3694_v14 }
 0xbe2   : > { %v3697_v53 = vadd.f32 %v3665_v39, %v3633_v55  ;;  %v3667_v21 = vmul.f32 %v8470_v51, %v8470_v51  ;;  %4233 = vst [vmem:[%s6705_s24 + $0xd8] sm:$0xff] %v3695_v61 }
 0xbe3   : > { %4234 = vst [vmem:[%s6705_s24 + $0xe0] sm:$0xff] %v3696_v1  ;;  %v3698_v52 = vadd.f32 %v3666_v16, %v3634_v28 }
 0xbe4   : > { %4235 = vst [vmem:[%s6705_s24 + $0xe8] sm:$0xff] %v3697_v53  ;;  %v3699_v36 = vadd.f32 %v3667_v21, %v3635_v44 }
 0xbe5   : > { %4236 = vst [vmem:[%s6705_s24 + $0xf0] sm:$0xff] %v3698_v52 }
 0xbe6   : > { %4237 = vst [vmem:[%s6705_s24 + $0xf8] sm:$0xff] %v3699_v36 }
 0xbe7   : > { %5272 = shalt.err (!%p5269_p9)
}
 0xbe8   : > { %s5273_s24 = scalar_lea.hbm %s8126_s27, 4096  ;;  %s5277_s16 = scalar_lea.hbm %s8180_s5, 8192 }
 0xbe9   : > { %p5274_p0 = scmp.ne.s32.totalorder %s8126_s27, %s5273_s24  ;;  %p5278_p4 = scmp.lt.u32.totalorder %s8126_s27, %s8180_s5 }
 0xbea   : > { %p5279_p8 = scmp.lt.u32.totalorder %s5277_s16, %s5273_s24  ;;  %p5281_p5 = scmp.lt.u32.totalorder %s5273_s24, %s8126_s27 }
 0xbeb   : > { %p5275_p11 = pnand %p5274_p0, %p6076_p3 }
 0xbec   : > { %p5280_p10 = por %p5279_p8, %p5278_p4 }
 0xbed   : > { %p5276_p6 = pneg %p5275_p11 }
 0xbee   : > { %p5282_p7 = por %p5281_p5, %p5280_p10 }
 0xbf0   : > { %p5283_p12 = pnand %p5282_p7, %p5276_p6 }
 0xbf2   : > { %5286 = shalt.err (!%p5283_p12)
}
 0xbf3   : > { %s5866_s8 = smov 128   ;;  %s5867_s22 = smov 8  }
 0xbf4   : > { %4267 = dma.vmem_to_hbm [thread:$0]  (%p6076_p3), %s8128_s9, 4096, %s8126_s27, %s3734_s10, %s5866_s8, %s5866_s8, %s5867_s22  }
 0xbf5 PF: > { %s3763_s28 = sand.u32 1, %s5581_s18   ;;  %p8471_p1 = scmp.ne.s32.totalorder %s8198_s25, 0 }
 0xbf6   : > { %p8472_p2 = scmp.ge.s32.totalorder %s5593_s21, 2  ;;  %s3764_s23 = scalar_lea.sflag [#allocation4], %s3763_s28 }
 0xbf8   : > { %p4287_p13 = pnand %p8472_p2, %p8471_p1 }
 0xbfa   : > { %5576 = dma.done.wait (!%p4287_p13), %s3764_s23, 4096  }
 0xbfb   : > { %5578 = vsyncadd (!%p4287_p13), %s3764_s23, 4294963200  ;;  %p20_p9 = scmp.ge.s32.totalorder %s6063_s29, 4   ;;  %s8473_s18 = smov %s5585_s19 }
 0xbfc   : > { %s8474_s19 = smov %s5589_s20  ;;  %s8475_s20 = smov %s6072_s11 }
 0xbfd   : > { %s8476_s21 = smov %s6063_s29  ;;  %22 = sbr.rel (!%p20_p9) target bundleno = 7 (0x7), region = 123 }
 0xc04   :  { %3769 = vsyncpa [#allocation3], 1 }
 0xc05   :  { %3771 = vsyncpa [#allocation3 + $0x1], 1 }
 0xc06   :  { %3772 = vsyncpa [#allocation6], 1 }
 0xc07   :  { %3773 = vsyncpa [#allocation9], 1 }
 0xc08   :  { %3774 = vsyncpa [#allocation4], 1 }
 0xc09   :  { %3776 = vsyncpa [#allocation4 + $0x1], 1 }

</bundles_post_ra>
